<compile_context>
chip_gen: v5e
topology: v5e:2x2
jax: 0.10.0
libtpu: 0.0.40
codegen_flags: <defaults>
</compile_context>

<pallas_src>
import functools

import jax
import jax.numpy as jnp
import numpy as np
from jax.experimental import pallas as pl
from jax.experimental.pallas import tpu as pltpu


# ----------------------------------------------------------------------------
# In-kernel helper: one bidirectional LSTM layer (both directions fused).
# ----------------------------------------------------------------------------
def _bilstm_layer(in_ref, out_ref, wrefs, *, seq_len, hidden):
    """Run one bidirectional LSTM layer entirely inside the kernel.

    in_ref : (B, T, D_in) VMEM ref  (this layer's input)
    out_ref: (B, T, 2H)   VMEM ref  (h_fwd in lanes [0:H], h_bwd in [H:2H])
    wrefs  : (wx_f, wh_f, b_f, wx_b, wh_b, b_b) VMEM refs where
             wx = W_ih^T (D_in, 4H), wh = W_hh^T (H, 4H),
             b  = (b_ih + b_hh)[None, :] (1, 4H),
             all with the g-gate columns pre-scaled by 2 (see prepare_params).
    """
    wxf_ref, whf_ref, bf_ref, wxb_ref, whb_ref, bb_ref = wrefs
    T, H = seq_len, hidden
    B, _, d_in = in_ref.shape

    # Hoist the input projection (and bias add) out of the recurrence:
    # a single matmul over all timesteps per direction.
    x2d = in_ref[...].reshape(B * T, d_in)
    px_f = (jnp.dot(x2d, wxf_ref[...], preferred_element_type=jnp.float32)
            + bf_ref[...]).reshape(B, T, 4 * H)
    px_b = (jnp.dot(x2d, wxb_ref[...], preferred_element_type=jnp.float32)
            + bb_ref[...]).reshape(B, T, 4 * H)

    whf = whf_ref[...]
    whb = whb_ref[...]

    hf = jnp.zeros((B, H), jnp.float32)
    cf = jnp.zeros((B, H), jnp.float32)
    hb = jnp.zeros((B, H), jnp.float32)
    cb = jnp.zeros((B, H), jnp.float32)

    # Fully-unrolled time loop (static trip count).  Forward step t and
    # backward step T-1-t are computed together so their independent
    # MXU / EUP / VPU work can be overlapped by the scheduler.
    for t in range(T):
        tb = T - 1 - t
        gates_f = px_f[:, t, :] + jnp.dot(hf, whf,
                                          preferred_element_type=jnp.float32)
        gates_b = px_b[:, tb, :] + jnp.dot(hb, whb,
                                           preferred_element_type=jnp.float32)

        # One full-width sigmoid per direction; tanh(g) is recovered as
        # 2*sigmoid(2g) - 1 because the g columns of W/b were pre-scaled by 2.
        sf = jax.nn.sigmoid(gates_f)            # (B, 4H): [i, f, s_g, o]
        sb = jax.nn.sigmoid(gates_b)

        cf = sf[:, H:2 * H] * cf + sf[:, 0:H] * (2.0 * sf[:, 2 * H:3 * H] - 1.0)
        hf = sf[:, 3 * H:4 * H] * jnp.tanh(cf)
        cb = sb[:, H:2 * H] * cb + sb[:, 0:H] * (2.0 * sb[:, 2 * H:3 * H] - 1.0)
        hb = sb[:, 3 * H:4 * H] * jnp.tanh(cb)

        # Stores go to VMEM (the out block / scratch); the HBM writeback is a
        # single DMA of the whole block at kernel end.
        out_ref[:, t:t + 1, 0:H] = hf[:, None, :]
        out_ref[:, tb:tb + 1, H:2 * H] = hb[:, None, :]


# ----------------------------------------------------------------------------
# The single Pallas kernel: all layers, both directions, whole sequence.
# refs = [x, (wx_f, wh_f, b_f, wx_b, wh_b, b_b) * num_layers, out, scr0, scr1]
# ----------------------------------------------------------------------------
def _block_lstm_kernel(*refs, num_layers, seq_len, hidden):
    x_ref = refs[0]
    out_ref = refs[1 + 6 * num_layers]
    scratch = refs[2 + 6 * num_layers:]

    cur_in = x_ref
    for layer in range(num_layers):
        wrefs = refs[1 + 6 * layer: 7 + 6 * layer]
        is_last = layer == num_layers - 1
        cur_out = out_ref if is_last else scratch[layer % 2]
        _bilstm_layer(cur_in, cur_out, wrefs, seq_len=seq_len, hidden=hidden)
        cur_in = cur_out


# ----------------------------------------------------------------------------
# Public wrapper: one pallas_call, no per-call weight prep, no transposes.
# ----------------------------------------------------------------------------
def block_lstm_forward(x_btf, prepared_params, *, num_layers, hidden):
    """x_btf: (B, T, features) -> (B, T, 2*hidden), batch_first like PyTorch."""
    B, T, _ = x_btf.shape
    H = hidden
    kernel = functools.partial(_block_lstm_kernel, num_layers=num_layers,
                               seq_len=T, hidden=H)
    n_in = 1 + 6 * num_layers
    vmem_spec = pl.BlockSpec(memory_space=pltpu.MemorySpace.VMEM)

    y = pl.pallas_call(
        kernel,
        out_shape=jax.ShapeDtypeStruct((B, T, 2 * H), jnp.float32),
        in_specs=[vmem_spec] * n_in,
        out_specs=vmem_spec,
        scratch_shapes=[
            pltpu.VMEM((B, T, 2 * H), jnp.float32),   # inter-layer buffer (ping)
            pltpu.VMEM((B, T, 2 * H), jnp.float32),   # inter-layer buffer (pong)
        ],
    )(x_btf.astype(jnp.float32), *prepared_params)
    # Dropout(p=0.4) in eval mode is the identity.
    return y


# ----------------------------------------------------------------------------
# Parameter initialization (PyTorch nn.LSTM layout) and one-time prep.
# ----------------------------------------------------------------------------
def init_params(key, features, hidden, num_layers):
    params = {}
    k = 1.0 / np.sqrt(hidden)
    for layer in range(num_layers):
        d_in = features if layer == 0 else 2 * hidden
        for direction in range(2):
            key, k1, k2, k3, k4 = jax.random.split(key, 5)
            params[(layer, direction)] = (
                jax.random.uniform(k1, (4 * hidden, d_in), jnp.float32, -k, k),   # W_ih
                jax.random.uniform(k2, (4 * hidden, hidden), jnp.float32, -k, k), # W_hh
                jax.random.uniform(k3, (4 * hidden,), jnp.float32, -k, k),        # b_ih
                jax.random.uniform(k4, (4 * hidden,), jnp.float32, -k, k),        # b_hh
            )
    return params


def prepare_params(params, num_layers, hidden):
    """Hoisted (one-time) weight prep: transpose, sum biases, and pre-scale the
    g-gate rows by 2 so the kernel can use a single full-width sigmoid."""
    H = hidden
    scale = jnp.ones((4 * H,), jnp.float32).at[2 * H:3 * H].set(2.0)
    prepared = []
    for layer in range(num_layers):
        for direction in range(2):            # 0 = forward, 1 = backward
            w_ih, w_hh, b_ih, b_hh = params[(layer, direction)]
            wx = jnp.transpose(w_ih * scale[:, None])          # (D_in, 4H)
            wh = jnp.transpose(w_hh * scale[:, None])          # (H, 4H)
            b = ((b_ih + b_hh) * scale)[None, :]               # (1, 4H)
            prepared.extend([wx, wh, b])
    return prepared


# ----------------------------------------------------------------------------
# Pure-JAX reference (lax.scan, raw PyTorch-layout params) for sanity check.
# ----------------------------------------------------------------------------
def _lstm_dir_ref(x_tbd, w_ih, w_hh, b_ih, b_hh, reverse):
    T, B, _ = x_tbd.shape
    H = w_hh.shape[1]
    xs = x_tbd[::-1] if reverse else x_tbd

    def step(carry, x_t):
        h, c = carry
        gates = x_t @ w_ih.T + h @ w_hh.T + b_ih + b_hh
        i, f, g, o = jnp.split(gates, 4, axis=-1)
        i, f, o = jax.nn.sigmoid(i), jax.nn.sigmoid(f), jax.nn.sigmoid(o)
        g = jnp.tanh(g)
        c = f * c + i * g
        h = o * jnp.tanh(c)
        return (h, c), h

    init = (jnp.zeros((B, H), jnp.float32), jnp.zeros((B, H), jnp.float32))
    _, hs = jax.lax.scan(step, init, xs)
    return hs[::-1] if reverse else hs


def block_lstm_ref(x_btf, params, *, num_layers):
    layer_in = jnp.transpose(x_btf, (1, 0, 2)).astype(jnp.float32)
    for layer in range(num_layers):
        outs = []
        for direction, rev in enumerate((False, True)):
            w_ih, w_hh, b_ih, b_hh = params[(layer, direction)]
            outs.append(_lstm_dir_ref(layer_in, w_ih, w_hh, b_ih, b_hh, rev))
        layer_in = jnp.concatenate(outs, axis=-1)
    return jnp.transpose(layer_in, (1, 0, 2))


if __name__ == "__main__":
    # Small shapes consistent with the module: batch=2, seq=8, features=4, hidden=32
    B, T, FEATS, HID, LAYERS = 2, 8, 4, 32, 2

    key = jax.random.PRNGKey(0)
    key, xk = jax.random.split(key)
    x = jax.random.normal(xk, (B, T, FEATS), dtype=jnp.float32)

    raw_params = init_params(key, FEATS, HID, LAYERS)
    prepared = prepare_params(raw_params, LAYERS, HID)

    fwd = jax.jit(functools.partial(block_lstm_forward,
                                    num_layers=LAYERS, hidden=HID))
    y = jax.block_until_ready(fwd(x, prepared))
    assert y.shape == (B, T, 2 * HID), y.shape

    y_ref = jax.block_until_ready(block_lstm_ref(x, raw_params, num_layers=LAYERS))
    np.testing.assert_allclose(np.asarray(y), np.asarray(y_ref),
                               rtol=2e-3, atol=2e-3)

    print("KERNEL_OK")
</pallas_src>

<mosaic_0001>
module attributes {stable_mosaic.version = 11 : i64} {
  func.func @_block_lstm_kernel(%arg0: memref<2x8x4xf32, #tpu.memory_space<vmem>>, %arg1: memref<4x128xf32, #tpu.memory_space<vmem>>, %arg2: memref<32x128xf32, #tpu.memory_space<vmem>>, %arg3: memref<1x128xf32, #tpu.memory_space<vmem>>, %arg4: memref<4x128xf32, #tpu.memory_space<vmem>>, %arg5: memref<32x128xf32, #tpu.memory_space<vmem>>, %arg6: memref<1x128xf32, #tpu.memory_space<vmem>>, %arg7: memref<64x128xf32, #tpu.memory_space<vmem>>, %arg8: memref<32x128xf32, #tpu.memory_space<vmem>>, %arg9: memref<1x128xf32, #tpu.memory_space<vmem>>, %arg10: memref<64x128xf32, #tpu.memory_space<vmem>>, %arg11: memref<32x128xf32, #tpu.memory_space<vmem>>, %arg12: memref<1x128xf32, #tpu.memory_space<vmem>>, %arg13: memref<2x8x64xf32, #tpu.memory_space<vmem>>, %arg14: memref<2x8x64xf32, #tpu.memory_space<vmem>>, %arg15: memref<2x8x64xf32, #tpu.memory_space<vmem>>) attributes {dimension_semantics = [], scalar_prefetch = 0 : i64, scratch_operands = 2 : i64, tpu.core_type = #tpu.core_type<tc>} {
    %c0 = arith.constant 0 : index
    %c0_0 = arith.constant 0 : index
    %c0_1 = arith.constant 0 : index
    %0 = vector.load %arg0[%c0, %c0_0, %c0_1] : memref<2x8x4xf32, #tpu.memory_space<vmem>>, vector<2x8x4xf32>
    %1 = vector.shape_cast %0 : vector<2x8x4xf32> to vector<16x4xf32>
    %c0_2 = arith.constant 0 : index
    %c0_3 = arith.constant 0 : index
    %2 = vector.load %arg1[%c0_2, %c0_3] : memref<4x128xf32, #tpu.memory_space<vmem>>, vector<4x128xf32>
    %cst = arith.constant dense<0.000000e+00> : vector<16x128xf32>
    %3 = tpu.matmul %1, %2, %cst {dimension_numbers = #tpu.dot_dimension_numbers<[1], [0], [0], [1], [0, 0, 1, 1], [], []>} : vector<16x4xf32>, vector<4x128xf32>, vector<16x128xf32> -> vector<16x128xf32>
    %c0_4 = arith.constant 0 : index
    %c0_5 = arith.constant 0 : index
    %4 = vector.load %arg3[%c0_4, %c0_5] : memref<1x128xf32, #tpu.memory_space<vmem>>, vector<1x128xf32>
    %5 = vector.broadcast %4 : vector<1x128xf32> to vector<16x128xf32>
    %6 = arith.addf %3, %5 : vector<16x128xf32>
    %7 = vector.shape_cast %6 : vector<16x128xf32> to vector<2x8x128xf32>
    %c0_6 = arith.constant 0 : index
    %c0_7 = arith.constant 0 : index
    %8 = vector.load %arg4[%c0_6, %c0_7] : memref<4x128xf32, #tpu.memory_space<vmem>>, vector<4x128xf32>
    %cst_8 = arith.constant dense<0.000000e+00> : vector<16x128xf32>
    %9 = tpu.matmul %1, %8, %cst_8 {dimension_numbers = #tpu.dot_dimension_numbers<[1], [0], [0], [1], [0, 0, 1, 1], [], []>} : vector<16x4xf32>, vector<4x128xf32>, vector<16x128xf32> -> vector<16x128xf32>
    %c0_9 = arith.constant 0 : index
    %c0_10 = arith.constant 0 : index
    %10 = vector.load %arg6[%c0_9, %c0_10] : memref<1x128xf32, #tpu.memory_space<vmem>>, vector<1x128xf32>
    %11 = vector.broadcast %10 : vector<1x128xf32> to vector<16x128xf32>
    %12 = arith.addf %9, %11 : vector<16x128xf32>
    %13 = vector.shape_cast %12 : vector<16x128xf32> to vector<2x8x128xf32>
    %c0_11 = arith.constant 0 : index
    %c0_12 = arith.constant 0 : index
    %14 = vector.load %arg2[%c0_11, %c0_12] : memref<32x128xf32, #tpu.memory_space<vmem>>, vector<32x128xf32>
    %c0_13 = arith.constant 0 : index
    %c0_14 = arith.constant 0 : index
    %15 = vector.load %arg5[%c0_13, %c0_14] : memref<32x128xf32, #tpu.memory_space<vmem>>, vector<32x128xf32>
    %cst_15 = arith.constant 0.000000e+00 : f32
    %16 = vector.broadcast %cst_15 : f32 to vector<2x32xf32>
    %cst_16 = arith.constant 0.000000e+00 : f32
    %17 = vector.broadcast %cst_16 : f32 to vector<2x32xf32>
    %cst_17 = arith.constant 0.000000e+00 : f32
    %18 = vector.broadcast %cst_17 : f32 to vector<2x32xf32>
    %cst_18 = arith.constant 0.000000e+00 : f32
    %19 = vector.broadcast %cst_18 : f32 to vector<2x32xf32>
    %20 = vector.extract_strided_slice %7 {offsets = [0, 0, 0], sizes = [2, 1, 128], strides = [1, 1, 1]} : vector<2x8x128xf32> to vector<2x1x128xf32>
    %21 = vector.shape_cast %20 : vector<2x1x128xf32> to vector<2x128xf32>
    %cst_19 = arith.constant dense<0.000000e+00> : vector<2x128xf32>
    %22 = tpu.matmul %16, %14, %cst_19 {dimension_numbers = #tpu.dot_dimension_numbers<[1], [0], [0], [1], [0, 0, 1, 1], [], []>} : vector<2x32xf32>, vector<32x128xf32>, vector<2x128xf32> -> vector<2x128xf32>
    %23 = arith.addf %21, %22 : vector<2x128xf32>
    %24 = vector.extract_strided_slice %13 {offsets = [0, 7, 0], sizes = [2, 1, 128], strides = [1, 1, 1]} : vector<2x8x128xf32> to vector<2x1x128xf32>
    %25 = vector.shape_cast %24 : vector<2x1x128xf32> to vector<2x128xf32>
    %cst_20 = arith.constant dense<0.000000e+00> : vector<2x128xf32>
    %26 = tpu.matmul %18, %15, %cst_20 {dimension_numbers = #tpu.dot_dimension_numbers<[1], [0], [0], [1], [0, 0, 1, 1], [], []>} : vector<2x32xf32>, vector<32x128xf32>, vector<2x128xf32> -> vector<2x128xf32>
    %27 = arith.addf %25, %26 : vector<2x128xf32>
    %28 = arith.negf %23 : vector<2x128xf32>
    %29 = math.exp %28 : vector<2x128xf32>
    %cst_21 = arith.constant 1.000000e+00 : f32
    %30 = vector.broadcast %cst_21 : f32 to vector<2x128xf32>
    %31 = arith.addf %30, %29 : vector<2x128xf32>
    %32 = arith.divf %30, %31 : vector<2x128xf32>
    %33 = arith.negf %27 : vector<2x128xf32>
    %34 = math.exp %33 : vector<2x128xf32>
    %cst_22 = arith.constant 1.000000e+00 : f32
    %35 = vector.broadcast %cst_22 : f32 to vector<2x128xf32>
    %36 = arith.addf %35, %34 : vector<2x128xf32>
    %37 = arith.divf %35, %36 : vector<2x128xf32>
    %38 = vector.extract_strided_slice %32 {offsets = [0, 32], sizes = [2, 32], strides = [1, 1]} : vector<2x128xf32> to vector<2x32xf32>
    %39 = arith.mulf %38, %17 : vector<2x32xf32>
    %40 = vector.extract_strided_slice %32 {offsets = [0, 0], sizes = [2, 32], strides = [1, 1]} : vector<2x128xf32> to vector<2x32xf32>
    %41 = vector.extract_strided_slice %32 {offsets = [0, 64], sizes = [2, 32], strides = [1, 1]} : vector<2x128xf32> to vector<2x32xf32>
    %cst_23 = arith.constant 2.000000e+00 : f32
    %42 = vector.broadcast %cst_23 : f32 to vector<2x32xf32>
    %43 = arith.mulf %42, %41 : vector<2x32xf32>
    %cst_24 = arith.constant 1.000000e+00 : f32
    %44 = vector.broadcast %cst_24 : f32 to vector<2x32xf32>
    %45 = arith.subf %43, %44 : vector<2x32xf32>
    %46 = arith.mulf %40, %45 : vector<2x32xf32>
    %47 = arith.addf %39, %46 : vector<2x32xf32>
    %48 = vector.extract_strided_slice %32 {offsets = [0, 96], sizes = [2, 32], strides = [1, 1]} : vector<2x128xf32> to vector<2x32xf32>
    %49 = math.tanh %47 : vector<2x32xf32>
    %50 = arith.mulf %48, %49 : vector<2x32xf32>
    %51 = vector.extract_strided_slice %37 {offsets = [0, 32], sizes = [2, 32], strides = [1, 1]} : vector<2x128xf32> to vector<2x32xf32>
    %52 = arith.mulf %51, %19 : vector<2x32xf32>
    %53 = vector.extract_strided_slice %37 {offsets = [0, 0], sizes = [2, 32], strides = [1, 1]} : vector<2x128xf32> to vector<2x32xf32>
    %54 = vector.extract_strided_slice %37 {offsets = [0, 64], sizes = [2, 32], strides = [1, 1]} : vector<2x128xf32> to vector<2x32xf32>
    %cst_25 = arith.constant 2.000000e+00 : f32
    %55 = vector.broadcast %cst_25 : f32 to vector<2x32xf32>
    %56 = arith.mulf %55, %54 : vector<2x32xf32>
    %cst_26 = arith.constant 1.000000e+00 : f32
    %57 = vector.broadcast %cst_26 : f32 to vector<2x32xf32>
    %58 = arith.subf %56, %57 : vector<2x32xf32>
    %59 = arith.mulf %53, %58 : vector<2x32xf32>
    %60 = arith.addf %52, %59 : vector<2x32xf32>
    %61 = vector.extract_strided_slice %37 {offsets = [0, 96], sizes = [2, 32], strides = [1, 1]} : vector<2x128xf32> to vector<2x32xf32>
    %62 = math.tanh %60 : vector<2x32xf32>
    %63 = arith.mulf %61, %62 : vector<2x32xf32>
    %64 = vector.shape_cast %50 : vector<2x32xf32> to vector<2x1x32xf32>
    %c0_27 = arith.constant 0 : index
    %c0_28 = arith.constant 0 : index
    %c0_29 = arith.constant 0 : index
    %65 = vector.load %arg14[%c0_27, %c0_28, %c0_29] : memref<2x8x64xf32, #tpu.memory_space<vmem>>, vector<2x1x32xf32>
    tpu.vector_store %arg14[%c0_27, %c0_28, %c0_29], %64 {strides = array<i32>} : memref<2x8x64xf32, #tpu.memory_space<vmem>>, vector<2x1x32xf32>,
    %66 = vector.shape_cast %63 : vector<2x32xf32> to vector<2x1x32xf32>
    %c0_30 = arith.constant 0 : index
    %c7 = arith.constant 7 : index
    %c32 = arith.constant 32 : index
    %67 = vector.load %arg14[%c0_30, %c7, %c32] : memref<2x8x64xf32, #tpu.memory_space<vmem>>, vector<2x1x32xf32>
    tpu.vector_store %arg14[%c0_30, %c7, %c32], %66 {strides = array<i32>} : memref<2x8x64xf32, #tpu.memory_space<vmem>>, vector<2x1x32xf32>,
    %68 = vector.extract_strided_slice %7 {offsets = [0, 1, 0], sizes = [2, 1, 128], strides = [1, 1, 1]} : vector<2x8x128xf32> to vector<2x1x128xf32>
    %69 = vector.shape_cast %68 : vector<2x1x128xf32> to vector<2x128xf32>
    %cst_31 = arith.constant dense<0.000000e+00> : vector<2x128xf32>
    %70 = tpu.matmul %50, %14, %cst_31 {dimension_numbers = #tpu.dot_dimension_numbers<[1], [0], [0], [1], [0, 0, 1, 1], [], []>} : vector<2x32xf32>, vector<32x128xf32>, vector<2x128xf32> -> vector<2x128xf32>
    %71 = arith.addf %69, %70 : vector<2x128xf32>
    %72 = vector.extract_strided_slice %13 {offsets = [0, 6, 0], sizes = [2, 1, 128], strides = [1, 1, 1]} : vector<2x8x128xf32> to vector<2x1x128xf32>
    %73 = vector.shape_cast %72 : vector<2x1x128xf32> to vector<2x128xf32>
    %cst_32 = arith.constant dense<0.000000e+00> : vector<2x128xf32>
    %74 = tpu.matmul %63, %15, %cst_32 {dimension_numbers = #tpu.dot_dimension_numbers<[1], [0], [0], [1], [0, 0, 1, 1], [], []>} : vector<2x32xf32>, vector<32x128xf32>, vector<2x128xf32> -> vector<2x128xf32>
    %75 = arith.addf %73, %74 : vector<2x128xf32>
    %76 = arith.negf %71 : vector<2x128xf32>
    %77 = math.exp %76 : vector<2x128xf32>
    %cst_33 = arith.constant 1.000000e+00 : f32
    %78 = vector.broadcast %cst_33 : f32 to vector<2x128xf32>
    %79 = arith.addf %78, %77 : vector<2x128xf32>
    %80 = arith.divf %78, %79 : vector<2x128xf32>
    %81 = arith.negf %75 : vector<2x128xf32>
    %82 = math.exp %81 : vector<2x128xf32>
    %cst_34 = arith.constant 1.000000e+00 : f32
    %83 = vector.broadcast %cst_34 : f32 to vector<2x128xf32>
    %84 = arith.addf %83, %82 : vector<2x128xf32>
    %85 = arith.divf %83, %84 : vector<2x128xf32>
    %86 = vector.extract_strided_slice %80 {offsets = [0, 32], sizes = [2, 32], strides = [1, 1]} : vector<2x128xf32> to vector<2x32xf32>
    %87 = arith.mulf %86, %47 : vector<2x32xf32>
    %88 = vector.extract_strided_slice %80 {offsets = [0, 0], sizes = [2, 32], strides = [1, 1]} : vector<2x128xf32> to vector<2x32xf32>
    %89 = vector.extract_strided_slice %80 {offsets = [0, 64], sizes = [2, 32], strides = [1, 1]} : vector<2x128xf32> to vector<2x32xf32>
    %cst_35 = arith.constant 2.000000e+00 : f32
    %90 = vector.broadcast %cst_35 : f32 to vector<2x32xf32>
    %91 = arith.mulf %90, %89 : vector<2x32xf32>
    %cst_36 = arith.constant 1.000000e+00 : f32
    %92 = vector.broadcast %cst_36 : f32 to vector<2x32xf32>
    %93 = arith.subf %91, %92 : vector<2x32xf32>
    %94 = arith.mulf %88, %93 : vector<2x32xf32>
    %95 = arith.addf %87, %94 : vector<2x32xf32>
    %96 = vector.extract_strided_slice %80 {offsets = [0, 96], sizes = [2, 32], strides = [1, 1]} : vector<2x128xf32> to vector<2x32xf32>
    %97 = math.tanh %95 : vector<2x32xf32>
    %98 = arith.mulf %96, %97 : vector<2x32xf32>
    %99 = vector.extract_strided_slice %85 {offsets = [0, 32], sizes = [2, 32], strides = [1, 1]} : vector<2x128xf32> to vector<2x32xf32>
    %100 = arith.mulf %99, %60 : vector<2x32xf32>
    %101 = vector.extract_strided_slice %85 {offsets = [0, 0], sizes = [2, 32], strides = [1, 1]} : vector<2x128xf32> to vector<2x32xf32>
    %102 = vector.extract_strided_slice %85 {offsets = [0, 64], sizes = [2, 32], strides = [1, 1]} : vector<2x128xf32> to vector<2x32xf32>
    %cst_37 = arith.constant 2.000000e+00 : f32
    %103 = vector.broadcast %cst_37 : f32 to vector<2x32xf32>
    %104 = arith.mulf %103, %102 : vector<2x32xf32>
    %cst_38 = arith.constant 1.000000e+00 : f32
    %105 = vector.broadcast %cst_38 : f32 to vector<2x32xf32>
    %106 = arith.subf %104, %105 : vector<2x32xf32>
    %107 = arith.mulf %101, %106 : vector<2x32xf32>
    %108 = arith.addf %100, %107 : vector<2x32xf32>
    %109 = vector.extract_strided_slice %85 {offsets = [0, 96], sizes = [2, 32], strides = [1, 1]} : vector<2x128xf32> to vector<2x32xf32>
    %110 = math.tanh %108 : vector<2x32xf32>
    %111 = arith.mulf %109, %110 : vector<2x32xf32>
    %112 = vector.shape_cast %98 : vector<2x32xf32> to vector<2x1x32xf32>
    %c0_39 = arith.constant 0 : index
    %c1 = arith.constant 1 : index
    %c0_40 = arith.constant 0 : index
    %113 = vector.load %arg14[%c0_39, %c1, %c0_40] : memref<2x8x64xf32, #tpu.memory_space<vmem>>, vector<2x1x32xf32>
    tpu.vector_store %arg14[%c0_39, %c1, %c0_40], %112 {strides = array<i32>} : memref<2x8x64xf32, #tpu.memory_space<vmem>>, vector<2x1x32xf32>,
    %114 = vector.shape_cast %111 : vector<2x32xf32> to vector<2x1x32xf32>
    %c0_41 = arith.constant 0 : index
    %c6 = arith.constant 6 : index
    %c32_42 = arith.constant 32 : index
    %115 = vector.load %arg14[%c0_41, %c6, %c32_42] : memref<2x8x64xf32, #tpu.memory_space<vmem>>, vector<2x1x32xf32>
    tpu.vector_store %arg14[%c0_41, %c6, %c32_42], %114 {strides = array<i32>} : memref<2x8x64xf32, #tpu.memory_space<vmem>>, vector<2x1x32xf32>,
    %116 = vector.extract_strided_slice %7 {offsets = [0, 2, 0], sizes = [2, 1, 128], strides = [1, 1, 1]} : vector<2x8x128xf32> to vector<2x1x128xf32>
    %117 = vector.shape_cast %116 : vector<2x1x128xf32> to vector<2x128xf32>
    %cst_43 = arith.constant dense<0.000000e+00> : vector<2x128xf32>
    %118 = tpu.matmul %98, %14, %cst_43 {dimension_numbers = #tpu.dot_dimension_numbers<[1], [0], [0], [1], [0, 0, 1, 1], [], []>} : vector<2x32xf32>, vector<32x128xf32>, vector<2x128xf32> -> vector<2x128xf32>
    %119 = arith.addf %117, %118 : vector<2x128xf32>
    %120 = vector.extract_strided_slice %13 {offsets = [0, 5, 0], sizes = [2, 1, 128], strides = [1, 1, 1]} : vector<2x8x128xf32> to vector<2x1x128xf32>
    %121 = vector.shape_cast %120 : vector<2x1x128xf32> to vector<2x128xf32>
    %cst_44 = arith.constant dense<0.000000e+00> : vector<2x128xf32>
    %122 = tpu.matmul %111, %15, %cst_44 {dimension_numbers = #tpu.dot_dimension_numbers<[1], [0], [0], [1], [0, 0, 1, 1], [], []>} : vector<2x32xf32>, vector<32x128xf32>, vector<2x128xf32> -> vector<2x128xf32>
    %123 = arith.addf %121, %122 : vector<2x128xf32>
    %124 = arith.negf %119 : vector<2x128xf32>
    %125 = math.exp %124 : vector<2x128xf32>
    %cst_45 = arith.constant 1.000000e+00 : f32
    %126 = vector.broadcast %cst_45 : f32 to vector<2x128xf32>
    %127 = arith.addf %126, %125 : vector<2x128xf32>
    %128 = arith.divf %126, %127 : vector<2x128xf32>
    %129 = arith.negf %123 : vector<2x128xf32>
    %130 = math.exp %129 : vector<2x128xf32>
    %cst_46 = arith.constant 1.000000e+00 : f32
    %131 = vector.broadcast %cst_46 : f32 to vector<2x128xf32>
    %132 = arith.addf %131, %130 : vector<2x128xf32>
    %133 = arith.divf %131, %132 : vector<2x128xf32>
    %134 = vector.extract_strided_slice %128 {offsets = [0, 32], sizes = [2, 32], strides = [1, 1]} : vector<2x128xf32> to vector<2x32xf32>
    %135 = arith.mulf %134, %95 : vector<2x32xf32>
    %136 = vector.extract_strided_slice %128 {offsets = [0, 0], sizes = [2, 32], strides = [1, 1]} : vector<2x128xf32> to vector<2x32xf32>
    %137 = vector.extract_strided_slice %128 {offsets = [0, 64], sizes = [2, 32], strides = [1, 1]} : vector<2x128xf32> to vector<2x32xf32>
    %cst_47 = arith.constant 2.000000e+00 : f32
    %138 = vector.broadcast %cst_47 : f32 to vector<2x32xf32>
    %139 = arith.mulf %138, %137 : vector<2x32xf32>
    %cst_48 = arith.constant 1.000000e+00 : f32
    %140 = vector.broadcast %cst_48 : f32 to vector<2x32xf32>
    %141 = arith.subf %139, %140 : vector<2x32xf32>
    %142 = arith.mulf %136, %141 : vector<2x32xf32>
    %143 = arith.addf %135, %142 : vector<2x32xf32>
    %144 = vector.extract_strided_slice %128 {offsets = [0, 96], sizes = [2, 32], strides = [1, 1]} : vector<2x128xf32> to vector<2x32xf32>
    %145 = math.tanh %143 : vector<2x32xf32>
    %146 = arith.mulf %144, %145 : vector<2x32xf32>
    %147 = vector.extract_strided_slice %133 {offsets = [0, 32], sizes = [2, 32], strides = [1, 1]} : vector<2x128xf32> to vector<2x32xf32>
    %148 = arith.mulf %147, %108 : vector<2x32xf32>
    %149 = vector.extract_strided_slice %133 {offsets = [0, 0], sizes = [2, 32], strides = [1, 1]} : vector<2x128xf32> to vector<2x32xf32>
    %150 = vector.extract_strided_slice %133 {offsets = [0, 64], sizes = [2, 32], strides = [1, 1]} : vector<2x128xf32> to vector<2x32xf32>
    %cst_49 = arith.constant 2.000000e+00 : f32
    %151 = vector.broadcast %cst_49 : f32 to vector<2x32xf32>
    %152 = arith.mulf %151, %150 : vector<2x32xf32>
    %cst_50 = arith.constant 1.000000e+00 : f32
    %153 = vector.broadcast %cst_50 : f32 to vector<2x32xf32>
    %154 = arith.subf %152, %153 : vector<2x32xf32>
    %155 = arith.mulf %149, %154 : vector<2x32xf32>
    %156 = arith.addf %148, %155 : vector<2x32xf32>
    %157 = vector.extract_strided_slice %133 {offsets = [0, 96], sizes = [2, 32], strides = [1, 1]} : vector<2x128xf32> to vector<2x32xf32>
    %158 = math.tanh %156 : vector<2x32xf32>
    %159 = arith.mulf %157, %158 : vector<2x32xf32>
    %160 = vector.shape_cast %146 : vector<2x32xf32> to vector<2x1x32xf32>
    %c0_51 = arith.constant 0 : index
    %c2 = arith.constant 2 : index
    %c0_52 = arith.constant 0 : index
    %161 = vector.load %arg14[%c0_51, %c2, %c0_52] : memref<2x8x64xf32, #tpu.memory_space<vmem>>, vector<2x1x32xf32>
    tpu.vector_store %arg14[%c0_51, %c2, %c0_52], %160 {strides = array<i32>} : memref<2x8x64xf32, #tpu.memory_space<vmem>>, vector<2x1x32xf32>,
    %162 = vector.shape_cast %159 : vector<2x32xf32> to vector<2x1x32xf32>
    %c0_53 = arith.constant 0 : index
    %c5 = arith.constant 5 : index
    %c32_54 = arith.constant 32 : index
    %163 = vector.load %arg14[%c0_53, %c5, %c32_54] : memref<2x8x64xf32, #tpu.memory_space<vmem>>, vector<2x1x32xf32>
    tpu.vector_store %arg14[%c0_53, %c5, %c32_54], %162 {strides = array<i32>} : memref<2x8x64xf32, #tpu.memory_space<vmem>>, vector<2x1x32xf32>,
    %164 = vector.extract_strided_slice %7 {offsets = [0, 3, 0], sizes = [2, 1, 128], strides = [1, 1, 1]} : vector<2x8x128xf32> to vector<2x1x128xf32>
    %165 = vector.shape_cast %164 : vector<2x1x128xf32> to vector<2x128xf32>
    %cst_55 = arith.constant dense<0.000000e+00> : vector<2x128xf32>
    %166 = tpu.matmul %146, %14, %cst_55 {dimension_numbers = #tpu.dot_dimension_numbers<[1], [0], [0], [1], [0, 0, 1, 1], [], []>} : vector<2x32xf32>, vector<32x128xf32>, vector<2x128xf32> -> vector<2x128xf32>
    %167 = arith.addf %165, %166 : vector<2x128xf32>
    %168 = vector.extract_strided_slice %13 {offsets = [0, 4, 0], sizes = [2, 1, 128], strides = [1, 1, 1]} : vector<2x8x128xf32> to vector<2x1x128xf32>
    %169 = vector.shape_cast %168 : vector<2x1x128xf32> to vector<2x128xf32>
    %cst_56 = arith.constant dense<0.000000e+00> : vector<2x128xf32>
    %170 = tpu.matmul %159, %15, %cst_56 {dimension_numbers = #tpu.dot_dimension_numbers<[1], [0], [0], [1], [0, 0, 1, 1], [], []>} : vector<2x32xf32>, vector<32x128xf32>, vector<2x128xf32> -> vector<2x128xf32>
    %171 = arith.addf %169, %170 : vector<2x128xf32>
    %172 = arith.negf %167 : vector<2x128xf32>
    %173 = math.exp %172 : vector<2x128xf32>
    %cst_57 = arith.constant 1.000000e+00 : f32
    %174 = vector.broadcast %cst_57 : f32 to vector<2x128xf32>
    %175 = arith.addf %174, %173 : vector<2x128xf32>
    %176 = arith.divf %174, %175 : vector<2x128xf32>
    %177 = arith.negf %171 : vector<2x128xf32>
    %178 = math.exp %177 : vector<2x128xf32>
    %cst_58 = arith.constant 1.000000e+00 : f32
    %179 = vector.broadcast %cst_58 : f32 to vector<2x128xf32>
    %180 = arith.addf %179, %178 : vector<2x128xf32>
    %181 = arith.divf %179, %180 : vector<2x128xf32>
    %182 = vector.extract_strided_slice %176 {offsets = [0, 32], sizes = [2, 32], strides = [1, 1]} : vector<2x128xf32> to vector<2x32xf32>
    %183 = arith.mulf %182, %143 : vector<2x32xf32>
    %184 = vector.extract_strided_slice %176 {offsets = [0, 0], sizes = [2, 32], strides = [1, 1]} : vector<2x128xf32> to vector<2x32xf32>
    %185 = vector.extract_strided_slice %176 {offsets = [0, 64], sizes = [2, 32], strides = [1, 1]} : vector<2x128xf32> to vector<2x32xf32>
    %cst_59 = arith.constant 2.000000e+00 : f32
    %186 = vector.broadcast %cst_59 : f32 to vector<2x32xf32>
    %187 = arith.mulf %186, %185 : vector<2x32xf32>
    %cst_60 = arith.constant 1.000000e+00 : f32
    %188 = vector.broadcast %cst_60 : f32 to vector<2x32xf32>
    %189 = arith.subf %187, %188 : vector<2x32xf32>
    %190 = arith.mulf %184, %189 : vector<2x32xf32>
    %191 = arith.addf %183, %190 : vector<2x32xf32>
    %192 = vector.extract_strided_slice %176 {offsets = [0, 96], sizes = [2, 32], strides = [1, 1]} : vector<2x128xf32> to vector<2x32xf32>
    %193 = math.tanh %191 : vector<2x32xf32>
    %194 = arith.mulf %192, %193 : vector<2x32xf32>
    %195 = vector.extract_strided_slice %181 {offsets = [0, 32], sizes = [2, 32], strides = [1, 1]} : vector<2x128xf32> to vector<2x32xf32>
    %196 = arith.mulf %195, %156 : vector<2x32xf32>
    %197 = vector.extract_strided_slice %181 {offsets = [0, 0], sizes = [2, 32], strides = [1, 1]} : vector<2x128xf32> to vector<2x32xf32>
    %198 = vector.extract_strided_slice %181 {offsets = [0, 64], sizes = [2, 32], strides = [1, 1]} : vector<2x128xf32> to vector<2x32xf32>
    %cst_61 = arith.constant 2.000000e+00 : f32
    %199 = vector.broadcast %cst_61 : f32 to vector<2x32xf32>
    %200 = arith.mulf %199, %198 : vector<2x32xf32>
    %cst_62 = arith.constant 1.000000e+00 : f32
    %201 = vector.broadcast %cst_62 : f32 to vector<2x32xf32>
    %202 = arith.subf %200, %201 : vector<2x32xf32>
    %203 = arith.mulf %197, %202 : vector<2x32xf32>
    %204 = arith.addf %196, %203 : vector<2x32xf32>
    %205 = vector.extract_strided_slice %181 {offsets = [0, 96], sizes = [2, 32], strides = [1, 1]} : vector<2x128xf32> to vector<2x32xf32>
    %206 = math.tanh %204 : vector<2x32xf32>
    %207 = arith.mulf %205, %206 : vector<2x32xf32>
    %208 = vector.shape_cast %194 : vector<2x32xf32> to vector<2x1x32xf32>
    %c0_63 = arith.constant 0 : index
    %c3 = arith.constant 3 : index
    %c0_64 = arith.constant 0 : index
    %209 = vector.load %arg14[%c0_63, %c3, %c0_64] : memref<2x8x64xf32, #tpu.memory_space<vmem>>, vector<2x1x32xf32>
    tpu.vector_store %arg14[%c0_63, %c3, %c0_64], %208 {strides = array<i32>} : memref<2x8x64xf32, #tpu.memory_space<vmem>>, vector<2x1x32xf32>,
    %210 = vector.shape_cast %207 : vector<2x32xf32> to vector<2x1x32xf32>
    %c0_65 = arith.constant 0 : index
    %c4 = arith.constant 4 : index
    %c32_66 = arith.constant 32 : index
    %211 = vector.load %arg14[%c0_65, %c4, %c32_66] : memref<2x8x64xf32, #tpu.memory_space<vmem>>, vector<2x1x32xf32>
    tpu.vector_store %arg14[%c0_65, %c4, %c32_66], %210 {strides = array<i32>} : memref<2x8x64xf32, #tpu.memory_space<vmem>>, vector<2x1x32xf32>,
    %212 = vector.extract_strided_slice %7 {offsets = [0, 4, 0], sizes = [2, 1, 128], strides = [1, 1, 1]} : vector<2x8x128xf32> to vector<2x1x128xf32>
    %213 = vector.shape_cast %212 : vector<2x1x128xf32> to vector<2x128xf32>
    %cst_67 = arith.constant dense<0.000000e+00> : vector<2x128xf32>
    %214 = tpu.matmul %194, %14, %cst_67 {dimension_numbers = #tpu.dot_dimension_numbers<[1], [0], [0], [1], [0, 0, 1, 1], [], []>} : vector<2x32xf32>, vector<32x128xf32>, vector<2x128xf32> -> vector<2x128xf32>
    %215 = arith.addf %213, %214 : vector<2x128xf32>
    %216 = vector.extract_strided_slice %13 {offsets = [0, 3, 0], sizes = [2, 1, 128], strides = [1, 1, 1]} : vector<2x8x128xf32> to vector<2x1x128xf32>
    %217 = vector.shape_cast %216 : vector<2x1x128xf32> to vector<2x128xf32>
    %cst_68 = arith.constant dense<0.000000e+00> : vector<2x128xf32>
    %218 = tpu.matmul %207, %15, %cst_68 {dimension_numbers = #tpu.dot_dimension_numbers<[1], [0], [0], [1], [0, 0, 1, 1], [], []>} : vector<2x32xf32>, vector<32x128xf32>, vector<2x128xf32> -> vector<2x128xf32>
    %219 = arith.addf %217, %218 : vector<2x128xf32>
    %220 = arith.negf %215 : vector<2x128xf32>
    %221 = math.exp %220 : vector<2x128xf32>
    %cst_69 = arith.constant 1.000000e+00 : f32
    %222 = vector.broadcast %cst_69 : f32 to vector<2x128xf32>
    %223 = arith.addf %222, %221 : vector<2x128xf32>
    %224 = arith.divf %222, %223 : vector<2x128xf32>
    %225 = arith.negf %219 : vector<2x128xf32>
    %226 = math.exp %225 : vector<2x128xf32>
    %cst_70 = arith.constant 1.000000e+00 : f32
    %227 = vector.broadcast %cst_70 : f32 to vector<2x128xf32>
    %228 = arith.addf %227, %226 : vector<2x128xf32>
    %229 = arith.divf %227, %228 : vector<2x128xf32>
    %230 = vector.extract_strided_slice %224 {offsets = [0, 32], sizes = [2, 32], strides = [1, 1]} : vector<2x128xf32> to vector<2x32xf32>
    %231 = arith.mulf %230, %191 : vector<2x32xf32>
    %232 = vector.extract_strided_slice %224 {offsets = [0, 0], sizes = [2, 32], strides = [1, 1]} : vector<2x128xf32> to vector<2x32xf32>
    %233 = vector.extract_strided_slice %224 {offsets = [0, 64], sizes = [2, 32], strides = [1, 1]} : vector<2x128xf32> to vector<2x32xf32>
    %cst_71 = arith.constant 2.000000e+00 : f32
    %234 = vector.broadcast %cst_71 : f32 to vector<2x32xf32>
    %235 = arith.mulf %234, %233 : vector<2x32xf32>
    %cst_72 = arith.constant 1.000000e+00 : f32
    %236 = vector.broadcast %cst_72 : f32 to vector<2x32xf32>
    %237 = arith.subf %235, %236 : vector<2x32xf32>
    %238 = arith.mulf %232, %237 : vector<2x32xf32>
    %239 = arith.addf %231, %238 : vector<2x32xf32>
    %240 = vector.extract_strided_slice %224 {offsets = [0, 96], sizes = [2, 32], strides = [1, 1]} : vector<2x128xf32> to vector<2x32xf32>
    %241 = math.tanh %239 : vector<2x32xf32>
    %242 = arith.mulf %240, %241 : vector<2x32xf32>
    %243 = vector.extract_strided_slice %229 {offsets = [0, 32], sizes = [2, 32], strides = [1, 1]} : vector<2x128xf32> to vector<2x32xf32>
    %244 = arith.mulf %243, %204 : vector<2x32xf32>
    %245 = vector.extract_strided_slice %229 {offsets = [0, 0], sizes = [2, 32], strides = [1, 1]} : vector<2x128xf32> to vector<2x32xf32>
    %246 = vector.extract_strided_slice %229 {offsets = [0, 64], sizes = [2, 32], strides = [1, 1]} : vector<2x128xf32> to vector<2x32xf32>
    %cst_73 = arith.constant 2.000000e+00 : f32
    %247 = vector.broadcast %cst_73 : f32 to vector<2x32xf32>
    %248 = arith.mulf %247, %246 : vector<2x32xf32>
    %cst_74 = arith.constant 1.000000e+00 : f32
    %249 = vector.broadcast %cst_74 : f32 to vector<2x32xf32>
    %250 = arith.subf %248, %249 : vector<2x32xf32>
    %251 = arith.mulf %245, %250 : vector<2x32xf32>
    %252 = arith.addf %244, %251 : vector<2x32xf32>
    %253 = vector.extract_strided_slice %229 {offsets = [0, 96], sizes = [2, 32], strides = [1, 1]} : vector<2x128xf32> to vector<2x32xf32>
    %254 = math.tanh %252 : vector<2x32xf32>
    %255 = arith.mulf %253, %254 : vector<2x32xf32>
    %256 = vector.shape_cast %242 : vector<2x32xf32> to vector<2x1x32xf32>
    %c0_75 = arith.constant 0 : index
    %c4_76 = arith.constant 4 : index
    %c0_77 = arith.constant 0 : index
    %257 = vector.load %arg14[%c0_75, %c4_76, %c0_77] : memref<2x8x64xf32, #tpu.memory_space<vmem>>, vector<2x1x32xf32>
    tpu.vector_store %arg14[%c0_75, %c4_76, %c0_77], %256 {strides = array<i32>} : memref<2x8x64xf32, #tpu.memory_space<vmem>>, vector<2x1x32xf32>,
    %258 = vector.shape_cast %255 : vector<2x32xf32> to vector<2x1x32xf32>
    %c0_78 = arith.constant 0 : index
    %c3_79 = arith.constant 3 : index
    %c32_80 = arith.constant 32 : index
    %259 = vector.load %arg14[%c0_78, %c3_79, %c32_80] : memref<2x8x64xf32, #tpu.memory_space<vmem>>, vector<2x1x32xf32>
    tpu.vector_store %arg14[%c0_78, %c3_79, %c32_80], %258 {strides = array<i32>} : memref<2x8x64xf32, #tpu.memory_space<vmem>>, vector<2x1x32xf32>,
    %260 = vector.extract_strided_slice %7 {offsets = [0, 5, 0], sizes = [2, 1, 128], strides = [1, 1, 1]} : vector<2x8x128xf32> to vector<2x1x128xf32>
    %261 = vector.shape_cast %260 : vector<2x1x128xf32> to vector<2x128xf32>
    %cst_81 = arith.constant dense<0.000000e+00> : vector<2x128xf32>
    %262 = tpu.matmul %242, %14, %cst_81 {dimension_numbers = #tpu.dot_dimension_numbers<[1], [0], [0], [1], [0, 0, 1, 1], [], []>} : vector<2x32xf32>, vector<32x128xf32>, vector<2x128xf32> -> vector<2x128xf32>
    %263 = arith.addf %261, %262 : vector<2x128xf32>
    %264 = vector.extract_strided_slice %13 {offsets = [0, 2, 0], sizes = [2, 1, 128], strides = [1, 1, 1]} : vector<2x8x128xf32> to vector<2x1x128xf32>
    %265 = vector.shape_cast %264 : vector<2x1x128xf32> to vector<2x128xf32>
    %cst_82 = arith.constant dense<0.000000e+00> : vector<2x128xf32>
    %266 = tpu.matmul %255, %15, %cst_82 {dimension_numbers = #tpu.dot_dimension_numbers<[1], [0], [0], [1], [0, 0, 1, 1], [], []>} : vector<2x32xf32>, vector<32x128xf32>, vector<2x128xf32> -> vector<2x128xf32>
    %267 = arith.addf %265, %266 : vector<2x128xf32>
    %268 = arith.negf %263 : vector<2x128xf32>
    %269 = math.exp %268 : vector<2x128xf32>
    %cst_83 = arith.constant 1.000000e+00 : f32
    %270 = vector.broadcast %cst_83 : f32 to vector<2x128xf32>
    %271 = arith.addf %270, %269 : vector<2x128xf32>
    %272 = arith.divf %270, %271 : vector<2x128xf32>
    %273 = arith.negf %267 : vector<2x128xf32>
    %274 = math.exp %273 : vector<2x128xf32>
    %cst_84 = arith.constant 1.000000e+00 : f32
    %275 = vector.broadcast %cst_84 : f32 to vector<2x128xf32>
    %276 = arith.addf %275, %274 : vector<2x128xf32>
    %277 = arith.divf %275, %276 : vector<2x128xf32>
    %278 = vector.extract_strided_slice %272 {offsets = [0, 32], sizes = [2, 32], strides = [1, 1]} : vector<2x128xf32> to vector<2x32xf32>
    %279 = arith.mulf %278, %239 : vector<2x32xf32>
    %280 = vector.extract_strided_slice %272 {offsets = [0, 0], sizes = [2, 32], strides = [1, 1]} : vector<2x128xf32> to vector<2x32xf32>
    %281 = vector.extract_strided_slice %272 {offsets = [0, 64], sizes = [2, 32], strides = [1, 1]} : vector<2x128xf32> to vector<2x32xf32>
    %cst_85 = arith.constant 2.000000e+00 : f32
    %282 = vector.broadcast %cst_85 : f32 to vector<2x32xf32>
    %283 = arith.mulf %282, %281 : vector<2x32xf32>
    %cst_86 = arith.constant 1.000000e+00 : f32
    %284 = vector.broadcast %cst_86 : f32 to vector<2x32xf32>
    %285 = arith.subf %283, %284 : vector<2x32xf32>
    %286 = arith.mulf %280, %285 : vector<2x32xf32>
    %287 = arith.addf %279, %286 : vector<2x32xf32>
    %288 = vector.extract_strided_slice %272 {offsets = [0, 96], sizes = [2, 32], strides = [1, 1]} : vector<2x128xf32> to vector<2x32xf32>
    %289 = math.tanh %287 : vector<2x32xf32>
    %290 = arith.mulf %288, %289 : vector<2x32xf32>
    %291 = vector.extract_strided_slice %277 {offsets = [0, 32], sizes = [2, 32], strides = [1, 1]} : vector<2x128xf32> to vector<2x32xf32>
    %292 = arith.mulf %291, %252 : vector<2x32xf32>
    %293 = vector.extract_strided_slice %277 {offsets = [0, 0], sizes = [2, 32], strides = [1, 1]} : vector<2x128xf32> to vector<2x32xf32>
    %294 = vector.extract_strided_slice %277 {offsets = [0, 64], sizes = [2, 32], strides = [1, 1]} : vector<2x128xf32> to vector<2x32xf32>
    %cst_87 = arith.constant 2.000000e+00 : f32
    %295 = vector.broadcast %cst_87 : f32 to vector<2x32xf32>
    %296 = arith.mulf %295, %294 : vector<2x32xf32>
    %cst_88 = arith.constant 1.000000e+00 : f32
    %297 = vector.broadcast %cst_88 : f32 to vector<2x32xf32>
    %298 = arith.subf %296, %297 : vector<2x32xf32>
    %299 = arith.mulf %293, %298 : vector<2x32xf32>
    %300 = arith.addf %292, %299 : vector<2x32xf32>
    %301 = vector.extract_strided_slice %277 {offsets = [0, 96], sizes = [2, 32], strides = [1, 1]} : vector<2x128xf32> to vector<2x32xf32>
    %302 = math.tanh %300 : vector<2x32xf32>
    %303 = arith.mulf %301, %302 : vector<2x32xf32>
    %304 = vector.shape_cast %290 : vector<2x32xf32> to vector<2x1x32xf32>
    %c0_89 = arith.constant 0 : index
    %c5_90 = arith.constant 5 : index
    %c0_91 = arith.constant 0 : index
    %305 = vector.load %arg14[%c0_89, %c5_90, %c0_91] : memref<2x8x64xf32, #tpu.memory_space<vmem>>, vector<2x1x32xf32>
    tpu.vector_store %arg14[%c0_89, %c5_90, %c0_91], %304 {strides = array<i32>} : memref<2x8x64xf32, #tpu.memory_space<vmem>>, vector<2x1x32xf32>,
    %306 = vector.shape_cast %303 : vector<2x32xf32> to vector<2x1x32xf32>
    %c0_92 = arith.constant 0 : index
    %c2_93 = arith.constant 2 : index
    %c32_94 = arith.constant 32 : index
    %307 = vector.load %arg14[%c0_92, %c2_93, %c32_94] : memref<2x8x64xf32, #tpu.memory_space<vmem>>, vector<2x1x32xf32>
    tpu.vector_store %arg14[%c0_92, %c2_93, %c32_94], %306 {strides = array<i32>} : memref<2x8x64xf32, #tpu.memory_space<vmem>>, vector<2x1x32xf32>,
    %308 = vector.extract_strided_slice %7 {offsets = [0, 6, 0], sizes = [2, 1, 128], strides = [1, 1, 1]} : vector<2x8x128xf32> to vector<2x1x128xf32>
    %309 = vector.shape_cast %308 : vector<2x1x128xf32> to vector<2x128xf32>
    %cst_95 = arith.constant dense<0.000000e+00> : vector<2x128xf32>
    %310 = tpu.matmul %290, %14, %cst_95 {dimension_numbers = #tpu.dot_dimension_numbers<[1], [0], [0], [1], [0, 0, 1, 1], [], []>} : vector<2x32xf32>, vector<32x128xf32>, vector<2x128xf32> -> vector<2x128xf32>
    %311 = arith.addf %309, %310 : vector<2x128xf32>
    %312 = vector.extract_strided_slice %13 {offsets = [0, 1, 0], sizes = [2, 1, 128], strides = [1, 1, 1]} : vector<2x8x128xf32> to vector<2x1x128xf32>
    %313 = vector.shape_cast %312 : vector<2x1x128xf32> to vector<2x128xf32>
    %cst_96 = arith.constant dense<0.000000e+00> : vector<2x128xf32>
    %314 = tpu.matmul %303, %15, %cst_96 {dimension_numbers = #tpu.dot_dimension_numbers<[1], [0], [0], [1], [0, 0, 1, 1], [], []>} : vector<2x32xf32>, vector<32x128xf32>, vector<2x128xf32> -> vector<2x128xf32>
    %315 = arith.addf %313, %314 : vector<2x128xf32>
    %316 = arith.negf %311 : vector<2x128xf32>
    %317 = math.exp %316 : vector<2x128xf32>
    %cst_97 = arith.constant 1.000000e+00 : f32
    %318 = vector.broadcast %cst_97 : f32 to vector<2x128xf32>
    %319 = arith.addf %318, %317 : vector<2x128xf32>
    %320 = arith.divf %318, %319 : vector<2x128xf32>
    %321 = arith.negf %315 : vector<2x128xf32>
    %322 = math.exp %321 : vector<2x128xf32>
    %cst_98 = arith.constant 1.000000e+00 : f32
    %323 = vector.broadcast %cst_98 : f32 to vector<2x128xf32>
    %324 = arith.addf %323, %322 : vector<2x128xf32>
    %325 = arith.divf %323, %324 : vector<2x128xf32>
    %326 = vector.extract_strided_slice %320 {offsets = [0, 32], sizes = [2, 32], strides = [1, 1]} : vector<2x128xf32> to vector<2x32xf32>
    %327 = arith.mulf %326, %287 : vector<2x32xf32>
    %328 = vector.extract_strided_slice %320 {offsets = [0, 0], sizes = [2, 32], strides = [1, 1]} : vector<2x128xf32> to vector<2x32xf32>
    %329 = vector.extract_strided_slice %320 {offsets = [0, 64], sizes = [2, 32], strides = [1, 1]} : vector<2x128xf32> to vector<2x32xf32>
    %cst_99 = arith.constant 2.000000e+00 : f32
    %330 = vector.broadcast %cst_99 : f32 to vector<2x32xf32>
    %331 = arith.mulf %330, %329 : vector<2x32xf32>
    %cst_100 = arith.constant 1.000000e+00 : f32
    %332 = vector.broadcast %cst_100 : f32 to vector<2x32xf32>
    %333 = arith.subf %331, %332 : vector<2x32xf32>
    %334 = arith.mulf %328, %333 : vector<2x32xf32>
    %335 = arith.addf %327, %334 : vector<2x32xf32>
    %336 = vector.extract_strided_slice %320 {offsets = [0, 96], sizes = [2, 32], strides = [1, 1]} : vector<2x128xf32> to vector<2x32xf32>
    %337 = math.tanh %335 : vector<2x32xf32>
    %338 = arith.mulf %336, %337 : vector<2x32xf32>
    %339 = vector.extract_strided_slice %325 {offsets = [0, 32], sizes = [2, 32], strides = [1, 1]} : vector<2x128xf32> to vector<2x32xf32>
    %340 = arith.mulf %339, %300 : vector<2x32xf32>
    %341 = vector.extract_strided_slice %325 {offsets = [0, 0], sizes = [2, 32], strides = [1, 1]} : vector<2x128xf32> to vector<2x32xf32>
    %342 = vector.extract_strided_slice %325 {offsets = [0, 64], sizes = [2, 32], strides = [1, 1]} : vector<2x128xf32> to vector<2x32xf32>
    %cst_101 = arith.constant 2.000000e+00 : f32
    %343 = vector.broadcast %cst_101 : f32 to vector<2x32xf32>
    %344 = arith.mulf %343, %342 : vector<2x32xf32>
    %cst_102 = arith.constant 1.000000e+00 : f32
    %345 = vector.broadcast %cst_102 : f32 to vector<2x32xf32>
    %346 = arith.subf %344, %345 : vector<2x32xf32>
    %347 = arith.mulf %341, %346 : vector<2x32xf32>
    %348 = arith.addf %340, %347 : vector<2x32xf32>
    %349 = vector.extract_strided_slice %325 {offsets = [0, 96], sizes = [2, 32], strides = [1, 1]} : vector<2x128xf32> to vector<2x32xf32>
    %350 = math.tanh %348 : vector<2x32xf32>
    %351 = arith.mulf %349, %350 : vector<2x32xf32>
    %352 = vector.shape_cast %338 : vector<2x32xf32> to vector<2x1x32xf32>
    %c0_103 = arith.constant 0 : index
    %c6_104 = arith.constant 6 : index
    %c0_105 = arith.constant 0 : index
    %353 = vector.load %arg14[%c0_103, %c6_104, %c0_105] : memref<2x8x64xf32, #tpu.memory_space<vmem>>, vector<2x1x32xf32>
    tpu.vector_store %arg14[%c0_103, %c6_104, %c0_105], %352 {strides = array<i32>} : memref<2x8x64xf32, #tpu.memory_space<vmem>>, vector<2x1x32xf32>,
    %354 = vector.shape_cast %351 : vector<2x32xf32> to vector<2x1x32xf32>
    %c0_106 = arith.constant 0 : index
    %c1_107 = arith.constant 1 : index
    %c32_108 = arith.constant 32 : index
    %355 = vector.load %arg14[%c0_106, %c1_107, %c32_108] : memref<2x8x64xf32, #tpu.memory_space<vmem>>, vector<2x1x32xf32>
    tpu.vector_store %arg14[%c0_106, %c1_107, %c32_108], %354 {strides = array<i32>} : memref<2x8x64xf32, #tpu.memory_space<vmem>>, vector<2x1x32xf32>,
    %356 = vector.extract_strided_slice %7 {offsets = [0, 7, 0], sizes = [2, 1, 128], strides = [1, 1, 1]} : vector<2x8x128xf32> to vector<2x1x128xf32>
    %357 = vector.shape_cast %356 : vector<2x1x128xf32> to vector<2x128xf32>
    %cst_109 = arith.constant dense<0.000000e+00> : vector<2x128xf32>
    %358 = tpu.matmul %338, %14, %cst_109 {dimension_numbers = #tpu.dot_dimension_numbers<[1], [0], [0], [1], [0, 0, 1, 1], [], []>} : vector<2x32xf32>, vector<32x128xf32>, vector<2x128xf32> -> vector<2x128xf32>
    %359 = arith.addf %357, %358 : vector<2x128xf32>
    %360 = vector.extract_strided_slice %13 {offsets = [0, 0, 0], sizes = [2, 1, 128], strides = [1, 1, 1]} : vector<2x8x128xf32> to vector<2x1x128xf32>
    %361 = vector.shape_cast %360 : vector<2x1x128xf32> to vector<2x128xf32>
    %cst_110 = arith.constant dense<0.000000e+00> : vector<2x128xf32>
    %362 = tpu.matmul %351, %15, %cst_110 {dimension_numbers = #tpu.dot_dimension_numbers<[1], [0], [0], [1], [0, 0, 1, 1], [], []>} : vector<2x32xf32>, vector<32x128xf32>, vector<2x128xf32> -> vector<2x128xf32>
    %363 = arith.addf %361, %362 : vector<2x128xf32>
    %364 = arith.negf %359 : vector<2x128xf32>
    %365 = math.exp %364 : vector<2x128xf32>
    %cst_111 = arith.constant 1.000000e+00 : f32
    %366 = vector.broadcast %cst_111 : f32 to vector<2x128xf32>
    %367 = arith.addf %366, %365 : vector<2x128xf32>
    %368 = arith.divf %366, %367 : vector<2x128xf32>
    %369 = arith.negf %363 : vector<2x128xf32>
    %370 = math.exp %369 : vector<2x128xf32>
    %cst_112 = arith.constant 1.000000e+00 : f32
    %371 = vector.broadcast %cst_112 : f32 to vector<2x128xf32>
    %372 = arith.addf %371, %370 : vector<2x128xf32>
    %373 = arith.divf %371, %372 : vector<2x128xf32>
    %374 = vector.extract_strided_slice %368 {offsets = [0, 32], sizes = [2, 32], strides = [1, 1]} : vector<2x128xf32> to vector<2x32xf32>
    %375 = arith.mulf %374, %335 : vector<2x32xf32>
    %376 = vector.extract_strided_slice %368 {offsets = [0, 0], sizes = [2, 32], strides = [1, 1]} : vector<2x128xf32> to vector<2x32xf32>
    %377 = vector.extract_strided_slice %368 {offsets = [0, 64], sizes = [2, 32], strides = [1, 1]} : vector<2x128xf32> to vector<2x32xf32>
    %cst_113 = arith.constant 2.000000e+00 : f32
    %378 = vector.broadcast %cst_113 : f32 to vector<2x32xf32>
    %379 = arith.mulf %378, %377 : vector<2x32xf32>
    %cst_114 = arith.constant 1.000000e+00 : f32
    %380 = vector.broadcast %cst_114 : f32 to vector<2x32xf32>
    %381 = arith.subf %379, %380 : vector<2x32xf32>
    %382 = arith.mulf %376, %381 : vector<2x32xf32>
    %383 = arith.addf %375, %382 : vector<2x32xf32>
    %384 = vector.extract_strided_slice %368 {offsets = [0, 96], sizes = [2, 32], strides = [1, 1]} : vector<2x128xf32> to vector<2x32xf32>
    %385 = math.tanh %383 : vector<2x32xf32>
    %386 = arith.mulf %384, %385 : vector<2x32xf32>
    %387 = vector.extract_strided_slice %373 {offsets = [0, 32], sizes = [2, 32], strides = [1, 1]} : vector<2x128xf32> to vector<2x32xf32>
    %388 = arith.mulf %387, %348 : vector<2x32xf32>
    %389 = vector.extract_strided_slice %373 {offsets = [0, 0], sizes = [2, 32], strides = [1, 1]} : vector<2x128xf32> to vector<2x32xf32>
    %390 = vector.extract_strided_slice %373 {offsets = [0, 64], sizes = [2, 32], strides = [1, 1]} : vector<2x128xf32> to vector<2x32xf32>
    %cst_115 = arith.constant 2.000000e+00 : f32
    %391 = vector.broadcast %cst_115 : f32 to vector<2x32xf32>
    %392 = arith.mulf %391, %390 : vector<2x32xf32>
    %cst_116 = arith.constant 1.000000e+00 : f32
    %393 = vector.broadcast %cst_116 : f32 to vector<2x32xf32>
    %394 = arith.subf %392, %393 : vector<2x32xf32>
    %395 = arith.mulf %389, %394 : vector<2x32xf32>
    %396 = arith.addf %388, %395 : vector<2x32xf32>
    %397 = vector.extract_strided_slice %373 {offsets = [0, 96], sizes = [2, 32], strides = [1, 1]} : vector<2x128xf32> to vector<2x32xf32>
    %398 = math.tanh %396 : vector<2x32xf32>
    %399 = arith.mulf %397, %398 : vector<2x32xf32>
    %400 = vector.shape_cast %386 : vector<2x32xf32> to vector<2x1x32xf32>
    %c0_117 = arith.constant 0 : index
    %c7_118 = arith.constant 7 : index
    %c0_119 = arith.constant 0 : index
    %401 = vector.load %arg14[%c0_117, %c7_118, %c0_119] : memref<2x8x64xf32, #tpu.memory_space<vmem>>, vector<2x1x32xf32>
    tpu.vector_store %arg14[%c0_117, %c7_118, %c0_119], %400 {strides = array<i32>} : memref<2x8x64xf32, #tpu.memory_space<vmem>>, vector<2x1x32xf32>,
    %402 = vector.shape_cast %399 : vector<2x32xf32> to vector<2x1x32xf32>
    %c0_120 = arith.constant 0 : index
    %c0_121 = arith.constant 0 : index
    %c32_122 = arith.constant 32 : index
    %403 = vector.load %arg14[%c0_120, %c0_121, %c32_122] : memref<2x8x64xf32, #tpu.memory_space<vmem>>, vector<2x1x32xf32>
    tpu.vector_store %arg14[%c0_120, %c0_121, %c32_122], %402 {strides = array<i32>} : memref<2x8x64xf32, #tpu.memory_space<vmem>>, vector<2x1x32xf32>,
    %c0_123 = arith.constant 0 : index
    %c0_124 = arith.constant 0 : index
    %c0_125 = arith.constant 0 : index
    %404 = vector.load %arg14[%c0_123, %c0_124, %c0_125] : memref<2x8x64xf32, #tpu.memory_space<vmem>>, vector<2x8x64xf32>
    %405 = vector.shape_cast %404 : vector<2x8x64xf32> to vector<16x64xf32>
    %c0_126 = arith.constant 0 : index
    %c0_127 = arith.constant 0 : index
    %406 = vector.load %arg7[%c0_126, %c0_127] : memref<64x128xf32, #tpu.memory_space<vmem>>, vector<64x128xf32>
    %cst_128 = arith.constant dense<0.000000e+00> : vector<16x128xf32>
    %407 = tpu.matmul %405, %406, %cst_128 {dimension_numbers = #tpu.dot_dimension_numbers<[1], [0], [0], [1], [0, 0, 1, 1], [], []>} : vector<16x64xf32>, vector<64x128xf32>, vector<16x128xf32> -> vector<16x128xf32>
    %c0_129 = arith.constant 0 : index
    %c0_130 = arith.constant 0 : index
    %408 = vector.load %arg9[%c0_129, %c0_130] : memref<1x128xf32, #tpu.memory_space<vmem>>, vector<1x128xf32>
    %409 = vector.broadcast %408 : vector<1x128xf32> to vector<16x128xf32>
    %410 = arith.addf %407, %409 : vector<16x128xf32>
    %411 = vector.shape_cast %410 : vector<16x128xf32> to vector<2x8x128xf32>
    %c0_131 = arith.constant 0 : index
    %c0_132 = arith.constant 0 : index
    %412 = vector.load %arg10[%c0_131, %c0_132] : memref<64x128xf32, #tpu.memory_space<vmem>>, vector<64x128xf32>
    %cst_133 = arith.constant dense<0.000000e+00> : vector<16x128xf32>
    %413 = tpu.matmul %405, %412, %cst_133 {dimension_numbers = #tpu.dot_dimension_numbers<[1], [0], [0], [1], [0, 0, 1, 1], [], []>} : vector<16x64xf32>, vector<64x128xf32>, vector<16x128xf32> -> vector<16x128xf32>
    %c0_134 = arith.constant 0 : index
    %c0_135 = arith.constant 0 : index
    %414 = vector.load %arg12[%c0_134, %c0_135] : memref<1x128xf32, #tpu.memory_space<vmem>>, vector<1x128xf32>
    %415 = vector.broadcast %414 : vector<1x128xf32> to vector<16x128xf32>
    %416 = arith.addf %413, %415 : vector<16x128xf32>
    %417 = vector.shape_cast %416 : vector<16x128xf32> to vector<2x8x128xf32>
    %c0_136 = arith.constant 0 : index
    %c0_137 = arith.constant 0 : index
    %418 = vector.load %arg8[%c0_136, %c0_137] : memref<32x128xf32, #tpu.memory_space<vmem>>, vector<32x128xf32>
    %c0_138 = arith.constant 0 : index
    %c0_139 = arith.constant 0 : index
    %419 = vector.load %arg11[%c0_138, %c0_139] : memref<32x128xf32, #tpu.memory_space<vmem>>, vector<32x128xf32>
    %cst_140 = arith.constant 0.000000e+00 : f32
    %420 = vector.broadcast %cst_140 : f32 to vector<2x32xf32>
    %cst_141 = arith.constant 0.000000e+00 : f32
    %421 = vector.broadcast %cst_141 : f32 to vector<2x32xf32>
    %cst_142 = arith.constant 0.000000e+00 : f32
    %422 = vector.broadcast %cst_142 : f32 to vector<2x32xf32>
    %cst_143 = arith.constant 0.000000e+00 : f32
    %423 = vector.broadcast %cst_143 : f32 to vector<2x32xf32>
    %424 = vector.extract_strided_slice %411 {offsets = [0, 0, 0], sizes = [2, 1, 128], strides = [1, 1, 1]} : vector<2x8x128xf32> to vector<2x1x128xf32>
    %425 = vector.shape_cast %424 : vector<2x1x128xf32> to vector<2x128xf32>
    %cst_144 = arith.constant dense<0.000000e+00> : vector<2x128xf32>
    %426 = tpu.matmul %420, %418, %cst_144 {dimension_numbers = #tpu.dot_dimension_numbers<[1], [0], [0], [1], [0, 0, 1, 1], [], []>} : vector<2x32xf32>, vector<32x128xf32>, vector<2x128xf32> -> vector<2x128xf32>
    %427 = arith.addf %425, %426 : vector<2x128xf32>
    %428 = vector.extract_strided_slice %417 {offsets = [0, 7, 0], sizes = [2, 1, 128], strides = [1, 1, 1]} : vector<2x8x128xf32> to vector<2x1x128xf32>
    %429 = vector.shape_cast %428 : vector<2x1x128xf32> to vector<2x128xf32>
    %cst_145 = arith.constant dense<0.000000e+00> : vector<2x128xf32>
    %430 = tpu.matmul %422, %419, %cst_145 {dimension_numbers = #tpu.dot_dimension_numbers<[1], [0], [0], [1], [0, 0, 1, 1], [], []>} : vector<2x32xf32>, vector<32x128xf32>, vector<2x128xf32> -> vector<2x128xf32>
    %431 = arith.addf %429, %430 : vector<2x128xf32>
    %432 = arith.negf %427 : vector<2x128xf32>
    %433 = math.exp %432 : vector<2x128xf32>
    %cst_146 = arith.constant 1.000000e+00 : f32
    %434 = vector.broadcast %cst_146 : f32 to vector<2x128xf32>
    %435 = arith.addf %434, %433 : vector<2x128xf32>
    %436 = arith.divf %434, %435 : vector<2x128xf32>
    %437 = arith.negf %431 : vector<2x128xf32>
    %438 = math.exp %437 : vector<2x128xf32>
    %cst_147 = arith.constant 1.000000e+00 : f32
    %439 = vector.broadcast %cst_147 : f32 to vector<2x128xf32>
    %440 = arith.addf %439, %438 : vector<2x128xf32>
    %441 = arith.divf %439, %440 : vector<2x128xf32>
    %442 = vector.extract_strided_slice %436 {offsets = [0, 32], sizes = [2, 32], strides = [1, 1]} : vector<2x128xf32> to vector<2x32xf32>
    %443 = arith.mulf %442, %421 : vector<2x32xf32>
    %444 = vector.extract_strided_slice %436 {offsets = [0, 0], sizes = [2, 32], strides = [1, 1]} : vector<2x128xf32> to vector<2x32xf32>
    %445 = vector.extract_strided_slice %436 {offsets = [0, 64], sizes = [2, 32], strides = [1, 1]} : vector<2x128xf32> to vector<2x32xf32>
    %cst_148 = arith.constant 2.000000e+00 : f32
    %446 = vector.broadcast %cst_148 : f32 to vector<2x32xf32>
    %447 = arith.mulf %446, %445 : vector<2x32xf32>
    %cst_149 = arith.constant 1.000000e+00 : f32
    %448 = vector.broadcast %cst_149 : f32 to vector<2x32xf32>
    %449 = arith.subf %447, %448 : vector<2x32xf32>
    %450 = arith.mulf %444, %449 : vector<2x32xf32>
    %451 = arith.addf %443, %450 : vector<2x32xf32>
    %452 = vector.extract_strided_slice %436 {offsets = [0, 96], sizes = [2, 32], strides = [1, 1]} : vector<2x128xf32> to vector<2x32xf32>
    %453 = math.tanh %451 : vector<2x32xf32>
    %454 = arith.mulf %452, %453 : vector<2x32xf32>
    %455 = vector.extract_strided_slice %441 {offsets = [0, 32], sizes = [2, 32], strides = [1, 1]} : vector<2x128xf32> to vector<2x32xf32>
    %456 = arith.mulf %455, %423 : vector<2x32xf32>
    %457 = vector.extract_strided_slice %441 {offsets = [0, 0], sizes = [2, 32], strides = [1, 1]} : vector<2x128xf32> to vector<2x32xf32>
    %458 = vector.extract_strided_slice %441 {offsets = [0, 64], sizes = [2, 32], strides = [1, 1]} : vector<2x128xf32> to vector<2x32xf32>
    %cst_150 = arith.constant 2.000000e+00 : f32
    %459 = vector.broadcast %cst_150 : f32 to vector<2x32xf32>
    %460 = arith.mulf %459, %458 : vector<2x32xf32>
    %cst_151 = arith.constant 1.000000e+00 : f32
    %461 = vector.broadcast %cst_151 : f32 to vector<2x32xf32>
    %462 = arith.subf %460, %461 : vector<2x32xf32>
    %463 = arith.mulf %457, %462 : vector<2x32xf32>
    %464 = arith.addf %456, %463 : vector<2x32xf32>
    %465 = vector.extract_strided_slice %441 {offsets = [0, 96], sizes = [2, 32], strides = [1, 1]} : vector<2x128xf32> to vector<2x32xf32>
    %466 = math.tanh %464 : vector<2x32xf32>
    %467 = arith.mulf %465, %466 : vector<2x32xf32>
    %468 = vector.shape_cast %454 : vector<2x32xf32> to vector<2x1x32xf32>
    %c0_152 = arith.constant 0 : index
    %c0_153 = arith.constant 0 : index
    %c0_154 = arith.constant 0 : index
    %469 = vector.load %arg13[%c0_152, %c0_153, %c0_154] : memref<2x8x64xf32, #tpu.memory_space<vmem>>, vector<2x1x32xf32>
    tpu.vector_store %arg13[%c0_152, %c0_153, %c0_154], %468 {strides = array<i32>} : memref<2x8x64xf32, #tpu.memory_space<vmem>>, vector<2x1x32xf32>,
    %470 = vector.shape_cast %467 : vector<2x32xf32> to vector<2x1x32xf32>
    %c0_155 = arith.constant 0 : index
    %c7_156 = arith.constant 7 : index
    %c32_157 = arith.constant 32 : index
    %471 = vector.load %arg13[%c0_155, %c7_156, %c32_157] : memref<2x8x64xf32, #tpu.memory_space<vmem>>, vector<2x1x32xf32>
    tpu.vector_store %arg13[%c0_155, %c7_156, %c32_157], %470 {strides = array<i32>} : memref<2x8x64xf32, #tpu.memory_space<vmem>>, vector<2x1x32xf32>,
    %472 = vector.extract_strided_slice %411 {offsets = [0, 1, 0], sizes = [2, 1, 128], strides = [1, 1, 1]} : vector<2x8x128xf32> to vector<2x1x128xf32>
    %473 = vector.shape_cast %472 : vector<2x1x128xf32> to vector<2x128xf32>
    %cst_158 = arith.constant dense<0.000000e+00> : vector<2x128xf32>
    %474 = tpu.matmul %454, %418, %cst_158 {dimension_numbers = #tpu.dot_dimension_numbers<[1], [0], [0], [1], [0, 0, 1, 1], [], []>} : vector<2x32xf32>, vector<32x128xf32>, vector<2x128xf32> -> vector<2x128xf32>
    %475 = arith.addf %473, %474 : vector<2x128xf32>
    %476 = vector.extract_strided_slice %417 {offsets = [0, 6, 0], sizes = [2, 1, 128], strides = [1, 1, 1]} : vector<2x8x128xf32> to vector<2x1x128xf32>
    %477 = vector.shape_cast %476 : vector<2x1x128xf32> to vector<2x128xf32>
    %cst_159 = arith.constant dense<0.000000e+00> : vector<2x128xf32>
    %478 = tpu.matmul %467, %419, %cst_159 {dimension_numbers = #tpu.dot_dimension_numbers<[1], [0], [0], [1], [0, 0, 1, 1], [], []>} : vector<2x32xf32>, vector<32x128xf32>, vector<2x128xf32> -> vector<2x128xf32>
    %479 = arith.addf %477, %478 : vector<2x128xf32>
    %480 = arith.negf %475 : vector<2x128xf32>
    %481 = math.exp %480 : vector<2x128xf32>
    %cst_160 = arith.constant 1.000000e+00 : f32
    %482 = vector.broadcast %cst_160 : f32 to vector<2x128xf32>
    %483 = arith.addf %482, %481 : vector<2x128xf32>
    %484 = arith.divf %482, %483 : vector<2x128xf32>
    %485 = arith.negf %479 : vector<2x128xf32>
    %486 = math.exp %485 : vector<2x128xf32>
    %cst_161 = arith.constant 1.000000e+00 : f32
    %487 = vector.broadcast %cst_161 : f32 to vector<2x128xf32>
    %488 = arith.addf %487, %486 : vector<2x128xf32>
    %489 = arith.divf %487, %488 : vector<2x128xf32>
    %490 = vector.extract_strided_slice %484 {offsets = [0, 32], sizes = [2, 32], strides = [1, 1]} : vector<2x128xf32> to vector<2x32xf32>
    %491 = arith.mulf %490, %451 : vector<2x32xf32>
    %492 = vector.extract_strided_slice %484 {offsets = [0, 0], sizes = [2, 32], strides = [1, 1]} : vector<2x128xf32> to vector<2x32xf32>
    %493 = vector.extract_strided_slice %484 {offsets = [0, 64], sizes = [2, 32], strides = [1, 1]} : vector<2x128xf32> to vector<2x32xf32>
    %cst_162 = arith.constant 2.000000e+00 : f32
    %494 = vector.broadcast %cst_162 : f32 to vector<2x32xf32>
    %495 = arith.mulf %494, %493 : vector<2x32xf32>
    %cst_163 = arith.constant 1.000000e+00 : f32
    %496 = vector.broadcast %cst_163 : f32 to vector<2x32xf32>
    %497 = arith.subf %495, %496 : vector<2x32xf32>
    %498 = arith.mulf %492, %497 : vector<2x32xf32>
    %499 = arith.addf %491, %498 : vector<2x32xf32>
    %500 = vector.extract_strided_slice %484 {offsets = [0, 96], sizes = [2, 32], strides = [1, 1]} : vector<2x128xf32> to vector<2x32xf32>
    %501 = math.tanh %499 : vector<2x32xf32>
    %502 = arith.mulf %500, %501 : vector<2x32xf32>
    %503 = vector.extract_strided_slice %489 {offsets = [0, 32], sizes = [2, 32], strides = [1, 1]} : vector<2x128xf32> to vector<2x32xf32>
    %504 = arith.mulf %503, %464 : vector<2x32xf32>
    %505 = vector.extract_strided_slice %489 {offsets = [0, 0], sizes = [2, 32], strides = [1, 1]} : vector<2x128xf32> to vector<2x32xf32>
    %506 = vector.extract_strided_slice %489 {offsets = [0, 64], sizes = [2, 32], strides = [1, 1]} : vector<2x128xf32> to vector<2x32xf32>
    %cst_164 = arith.constant 2.000000e+00 : f32
    %507 = vector.broadcast %cst_164 : f32 to vector<2x32xf32>
    %508 = arith.mulf %507, %506 : vector<2x32xf32>
    %cst_165 = arith.constant 1.000000e+00 : f32
    %509 = vector.broadcast %cst_165 : f32 to vector<2x32xf32>
    %510 = arith.subf %508, %509 : vector<2x32xf32>
    %511 = arith.mulf %505, %510 : vector<2x32xf32>
    %512 = arith.addf %504, %511 : vector<2x32xf32>
    %513 = vector.extract_strided_slice %489 {offsets = [0, 96], sizes = [2, 32], strides = [1, 1]} : vector<2x128xf32> to vector<2x32xf32>
    %514 = math.tanh %512 : vector<2x32xf32>
    %515 = arith.mulf %513, %514 : vector<2x32xf32>
    %516 = vector.shape_cast %502 : vector<2x32xf32> to vector<2x1x32xf32>
    %c0_166 = arith.constant 0 : index
    %c1_167 = arith.constant 1 : index
    %c0_168 = arith.constant 0 : index
    %517 = vector.load %arg13[%c0_166, %c1_167, %c0_168] : memref<2x8x64xf32, #tpu.memory_space<vmem>>, vector<2x1x32xf32>
    tpu.vector_store %arg13[%c0_166, %c1_167, %c0_168], %516 {strides = array<i32>} : memref<2x8x64xf32, #tpu.memory_space<vmem>>, vector<2x1x32xf32>,
    %518 = vector.shape_cast %515 : vector<2x32xf32> to vector<2x1x32xf32>
    %c0_169 = arith.constant 0 : index
    %c6_170 = arith.constant 6 : index
    %c32_171 = arith.constant 32 : index
    %519 = vector.load %arg13[%c0_169, %c6_170, %c32_171] : memref<2x8x64xf32, #tpu.memory_space<vmem>>, vector<2x1x32xf32>
    tpu.vector_store %arg13[%c0_169, %c6_170, %c32_171], %518 {strides = array<i32>} : memref<2x8x64xf32, #tpu.memory_space<vmem>>, vector<2x1x32xf32>,
    %520 = vector.extract_strided_slice %411 {offsets = [0, 2, 0], sizes = [2, 1, 128], strides = [1, 1, 1]} : vector<2x8x128xf32> to vector<2x1x128xf32>
    %521 = vector.shape_cast %520 : vector<2x1x128xf32> to vector<2x128xf32>
    %cst_172 = arith.constant dense<0.000000e+00> : vector<2x128xf32>
    %522 = tpu.matmul %502, %418, %cst_172 {dimension_numbers = #tpu.dot_dimension_numbers<[1], [0], [0], [1], [0, 0, 1, 1], [], []>} : vector<2x32xf32>, vector<32x128xf32>, vector<2x128xf32> -> vector<2x128xf32>
    %523 = arith.addf %521, %522 : vector<2x128xf32>
    %524 = vector.extract_strided_slice %417 {offsets = [0, 5, 0], sizes = [2, 1, 128], strides = [1, 1, 1]} : vector<2x8x128xf32> to vector<2x1x128xf32>
    %525 = vector.shape_cast %524 : vector<2x1x128xf32> to vector<2x128xf32>
    %cst_173 = arith.constant dense<0.000000e+00> : vector<2x128xf32>
    %526 = tpu.matmul %515, %419, %cst_173 {dimension_numbers = #tpu.dot_dimension_numbers<[1], [0], [0], [1], [0, 0, 1, 1], [], []>} : vector<2x32xf32>, vector<32x128xf32>, vector<2x128xf32> -> vector<2x128xf32>
    %527 = arith.addf %525, %526 : vector<2x128xf32>
    %528 = arith.negf %523 : vector<2x128xf32>
    %529 = math.exp %528 : vector<2x128xf32>
    %cst_174 = arith.constant 1.000000e+00 : f32
    %530 = vector.broadcast %cst_174 : f32 to vector<2x128xf32>
    %531 = arith.addf %530, %529 : vector<2x128xf32>
    %532 = arith.divf %530, %531 : vector<2x128xf32>
    %533 = arith.negf %527 : vector<2x128xf32>
    %534 = math.exp %533 : vector<2x128xf32>
    %cst_175 = arith.constant 1.000000e+00 : f32
    %535 = vector.broadcast %cst_175 : f32 to vector<2x128xf32>
    %536 = arith.addf %535, %534 : vector<2x128xf32>
    %537 = arith.divf %535, %536 : vector<2x128xf32>
    %538 = vector.extract_strided_slice %532 {offsets = [0, 32], sizes = [2, 32], strides = [1, 1]} : vector<2x128xf32> to vector<2x32xf32>
    %539 = arith.mulf %538, %499 : vector<2x32xf32>
    %540 = vector.extract_strided_slice %532 {offsets = [0, 0], sizes = [2, 32], strides = [1, 1]} : vector<2x128xf32> to vector<2x32xf32>
    %541 = vector.extract_strided_slice %532 {offsets = [0, 64], sizes = [2, 32], strides = [1, 1]} : vector<2x128xf32> to vector<2x32xf32>
    %cst_176 = arith.constant 2.000000e+00 : f32
    %542 = vector.broadcast %cst_176 : f32 to vector<2x32xf32>
    %543 = arith.mulf %542, %541 : vector<2x32xf32>
    %cst_177 = arith.constant 1.000000e+00 : f32
    %544 = vector.broadcast %cst_177 : f32 to vector<2x32xf32>
    %545 = arith.subf %543, %544 : vector<2x32xf32>
    %546 = arith.mulf %540, %545 : vector<2x32xf32>
    %547 = arith.addf %539, %546 : vector<2x32xf32>
    %548 = vector.extract_strided_slice %532 {offsets = [0, 96], sizes = [2, 32], strides = [1, 1]} : vector<2x128xf32> to vector<2x32xf32>
    %549 = math.tanh %547 : vector<2x32xf32>
    %550 = arith.mulf %548, %549 : vector<2x32xf32>
    %551 = vector.extract_strided_slice %537 {offsets = [0, 32], sizes = [2, 32], strides = [1, 1]} : vector<2x128xf32> to vector<2x32xf32>
    %552 = arith.mulf %551, %512 : vector<2x32xf32>
    %553 = vector.extract_strided_slice %537 {offsets = [0, 0], sizes = [2, 32], strides = [1, 1]} : vector<2x128xf32> to vector<2x32xf32>
    %554 = vector.extract_strided_slice %537 {offsets = [0, 64], sizes = [2, 32], strides = [1, 1]} : vector<2x128xf32> to vector<2x32xf32>
    %cst_178 = arith.constant 2.000000e+00 : f32
    %555 = vector.broadcast %cst_178 : f32 to vector<2x32xf32>
    %556 = arith.mulf %555, %554 : vector<2x32xf32>
    %cst_179 = arith.constant 1.000000e+00 : f32
    %557 = vector.broadcast %cst_179 : f32 to vector<2x32xf32>
    %558 = arith.subf %556, %557 : vector<2x32xf32>
    %559 = arith.mulf %553, %558 : vector<2x32xf32>
    %560 = arith.addf %552, %559 : vector<2x32xf32>
    %561 = vector.extract_strided_slice %537 {offsets = [0, 96], sizes = [2, 32], strides = [1, 1]} : vector<2x128xf32> to vector<2x32xf32>
    %562 = math.tanh %560 : vector<2x32xf32>
    %563 = arith.mulf %561, %562 : vector<2x32xf32>
    %564 = vector.shape_cast %550 : vector<2x32xf32> to vector<2x1x32xf32>
    %c0_180 = arith.constant 0 : index
    %c2_181 = arith.constant 2 : index
    %c0_182 = arith.constant 0 : index
    %565 = vector.load %arg13[%c0_180, %c2_181, %c0_182] : memref<2x8x64xf32, #tpu.memory_space<vmem>>, vector<2x1x32xf32>
    tpu.vector_store %arg13[%c0_180, %c2_181, %c0_182], %564 {strides = array<i32>} : memref<2x8x64xf32, #tpu.memory_space<vmem>>, vector<2x1x32xf32>,
    %566 = vector.shape_cast %563 : vector<2x32xf32> to vector<2x1x32xf32>
    %c0_183 = arith.constant 0 : index
    %c5_184 = arith.constant 5 : index
    %c32_185 = arith.constant 32 : index
    %567 = vector.load %arg13[%c0_183, %c5_184, %c32_185] : memref<2x8x64xf32, #tpu.memory_space<vmem>>, vector<2x1x32xf32>
    tpu.vector_store %arg13[%c0_183, %c5_184, %c32_185], %566 {strides = array<i32>} : memref<2x8x64xf32, #tpu.memory_space<vmem>>, vector<2x1x32xf32>,
    %568 = vector.extract_strided_slice %411 {offsets = [0, 3, 0], sizes = [2, 1, 128], strides = [1, 1, 1]} : vector<2x8x128xf32> to vector<2x1x128xf32>
    %569 = vector.shape_cast %568 : vector<2x1x128xf32> to vector<2x128xf32>
    %cst_186 = arith.constant dense<0.000000e+00> : vector<2x128xf32>
    %570 = tpu.matmul %550, %418, %cst_186 {dimension_numbers = #tpu.dot_dimension_numbers<[1], [0], [0], [1], [0, 0, 1, 1], [], []>} : vector<2x32xf32>, vector<32x128xf32>, vector<2x128xf32> -> vector<2x128xf32>
    %571 = arith.addf %569, %570 : vector<2x128xf32>
    %572 = vector.extract_strided_slice %417 {offsets = [0, 4, 0], sizes = [2, 1, 128], strides = [1, 1, 1]} : vector<2x8x128xf32> to vector<2x1x128xf32>
    %573 = vector.shape_cast %572 : vector<2x1x128xf32> to vector<2x128xf32>
    %cst_187 = arith.constant dense<0.000000e+00> : vector<2x128xf32>
    %574 = tpu.matmul %563, %419, %cst_187 {dimension_numbers = #tpu.dot_dimension_numbers<[1], [0], [0], [1], [0, 0, 1, 1], [], []>} : vector<2x32xf32>, vector<32x128xf32>, vector<2x128xf32> -> vector<2x128xf32>
    %575 = arith.addf %573, %574 : vector<2x128xf32>
    %576 = arith.negf %571 : vector<2x128xf32>
    %577 = math.exp %576 : vector<2x128xf32>
    %cst_188 = arith.constant 1.000000e+00 : f32
    %578 = vector.broadcast %cst_188 : f32 to vector<2x128xf32>
    %579 = arith.addf %578, %577 : vector<2x128xf32>
    %580 = arith.divf %578, %579 : vector<2x128xf32>
    %581 = arith.negf %575 : vector<2x128xf32>
    %582 = math.exp %581 : vector<2x128xf32>
    %cst_189 = arith.constant 1.000000e+00 : f32
    %583 = vector.broadcast %cst_189 : f32 to vector<2x128xf32>
    %584 = arith.addf %583, %582 : vector<2x128xf32>
    %585 = arith.divf %583, %584 : vector<2x128xf32>
    %586 = vector.extract_strided_slice %580 {offsets = [0, 32], sizes = [2, 32], strides = [1, 1]} : vector<2x128xf32> to vector<2x32xf32>
    %587 = arith.mulf %586, %547 : vector<2x32xf32>
    %588 = vector.extract_strided_slice %580 {offsets = [0, 0], sizes = [2, 32], strides = [1, 1]} : vector<2x128xf32> to vector<2x32xf32>
    %589 = vector.extract_strided_slice %580 {offsets = [0, 64], sizes = [2, 32], strides = [1, 1]} : vector<2x128xf32> to vector<2x32xf32>
    %cst_190 = arith.constant 2.000000e+00 : f32
    %590 = vector.broadcast %cst_190 : f32 to vector<2x32xf32>
    %591 = arith.mulf %590, %589 : vector<2x32xf32>
    %cst_191 = arith.constant 1.000000e+00 : f32
    %592 = vector.broadcast %cst_191 : f32 to vector<2x32xf32>
    %593 = arith.subf %591, %592 : vector<2x32xf32>
    %594 = arith.mulf %588, %593 : vector<2x32xf32>
    %595 = arith.addf %587, %594 : vector<2x32xf32>
    %596 = vector.extract_strided_slice %580 {offsets = [0, 96], sizes = [2, 32], strides = [1, 1]} : vector<2x128xf32> to vector<2x32xf32>
    %597 = math.tanh %595 : vector<2x32xf32>
    %598 = arith.mulf %596, %597 : vector<2x32xf32>
    %599 = vector.extract_strided_slice %585 {offsets = [0, 32], sizes = [2, 32], strides = [1, 1]} : vector<2x128xf32> to vector<2x32xf32>
    %600 = arith.mulf %599, %560 : vector<2x32xf32>
    %601 = vector.extract_strided_slice %585 {offsets = [0, 0], sizes = [2, 32], strides = [1, 1]} : vector<2x128xf32> to vector<2x32xf32>
    %602 = vector.extract_strided_slice %585 {offsets = [0, 64], sizes = [2, 32], strides = [1, 1]} : vector<2x128xf32> to vector<2x32xf32>
    %cst_192 = arith.constant 2.000000e+00 : f32
    %603 = vector.broadcast %cst_192 : f32 to vector<2x32xf32>
    %604 = arith.mulf %603, %602 : vector<2x32xf32>
    %cst_193 = arith.constant 1.000000e+00 : f32
    %605 = vector.broadcast %cst_193 : f32 to vector<2x32xf32>
    %606 = arith.subf %604, %605 : vector<2x32xf32>
    %607 = arith.mulf %601, %606 : vector<2x32xf32>
    %608 = arith.addf %600, %607 : vector<2x32xf32>
    %609 = vector.extract_strided_slice %585 {offsets = [0, 96], sizes = [2, 32], strides = [1, 1]} : vector<2x128xf32> to vector<2x32xf32>
    %610 = math.tanh %608 : vector<2x32xf32>
    %611 = arith.mulf %609, %610 : vector<2x32xf32>
    %612 = vector.shape_cast %598 : vector<2x32xf32> to vector<2x1x32xf32>
    %c0_194 = arith.constant 0 : index
    %c3_195 = arith.constant 3 : index
    %c0_196 = arith.constant 0 : index
    %613 = vector.load %arg13[%c0_194, %c3_195, %c0_196] : memref<2x8x64xf32, #tpu.memory_space<vmem>>, vector<2x1x32xf32>
    tpu.vector_store %arg13[%c0_194, %c3_195, %c0_196], %612 {strides = array<i32>} : memref<2x8x64xf32, #tpu.memory_space<vmem>>, vector<2x1x32xf32>,
    %614 = vector.shape_cast %611 : vector<2x32xf32> to vector<2x1x32xf32>
    %c0_197 = arith.constant 0 : index
    %c4_198 = arith.constant 4 : index
    %c32_199 = arith.constant 32 : index
    %615 = vector.load %arg13[%c0_197, %c4_198, %c32_199] : memref<2x8x64xf32, #tpu.memory_space<vmem>>, vector<2x1x32xf32>
    tpu.vector_store %arg13[%c0_197, %c4_198, %c32_199], %614 {strides = array<i32>} : memref<2x8x64xf32, #tpu.memory_space<vmem>>, vector<2x1x32xf32>,
    %616 = vector.extract_strided_slice %411 {offsets = [0, 4, 0], sizes = [2, 1, 128], strides = [1, 1, 1]} : vector<2x8x128xf32> to vector<2x1x128xf32>
    %617 = vector.shape_cast %616 : vector<2x1x128xf32> to vector<2x128xf32>
    %cst_200 = arith.constant dense<0.000000e+00> : vector<2x128xf32>
    %618 = tpu.matmul %598, %418, %cst_200 {dimension_numbers = #tpu.dot_dimension_numbers<[1], [0], [0], [1], [0, 0, 1, 1], [], []>} : vector<2x32xf32>, vector<32x128xf32>, vector<2x128xf32> -> vector<2x128xf32>
    %619 = arith.addf %617, %618 : vector<2x128xf32>
    %620 = vector.extract_strided_slice %417 {offsets = [0, 3, 0], sizes = [2, 1, 128], strides = [1, 1, 1]} : vector<2x8x128xf32> to vector<2x1x128xf32>
    %621 = vector.shape_cast %620 : vector<2x1x128xf32> to vector<2x128xf32>
    %cst_201 = arith.constant dense<0.000000e+00> : vector<2x128xf32>
    %622 = tpu.matmul %611, %419, %cst_201 {dimension_numbers = #tpu.dot_dimension_numbers<[1], [0], [0], [1], [0, 0, 1, 1], [], []>} : vector<2x32xf32>, vector<32x128xf32>, vector<2x128xf32> -> vector<2x128xf32>
    %623 = arith.addf %621, %622 : vector<2x128xf32>
    %624 = arith.negf %619 : vector<2x128xf32>
    %625 = math.exp %624 : vector<2x128xf32>
    %cst_202 = arith.constant 1.000000e+00 : f32
    %626 = vector.broadcast %cst_202 : f32 to vector<2x128xf32>
    %627 = arith.addf %626, %625 : vector<2x128xf32>
    %628 = arith.divf %626, %627 : vector<2x128xf32>
    %629 = arith.negf %623 : vector<2x128xf32>
    %630 = math.exp %629 : vector<2x128xf32>
    %cst_203 = arith.constant 1.000000e+00 : f32
    %631 = vector.broadcast %cst_203 : f32 to vector<2x128xf32>
    %632 = arith.addf %631, %630 : vector<2x128xf32>
    %633 = arith.divf %631, %632 : vector<2x128xf32>
    %634 = vector.extract_strided_slice %628 {offsets = [0, 32], sizes = [2, 32], strides = [1, 1]} : vector<2x128xf32> to vector<2x32xf32>
    %635 = arith.mulf %634, %595 : vector<2x32xf32>
    %636 = vector.extract_strided_slice %628 {offsets = [0, 0], sizes = [2, 32], strides = [1, 1]} : vector<2x128xf32> to vector<2x32xf32>
    %637 = vector.extract_strided_slice %628 {offsets = [0, 64], sizes = [2, 32], strides = [1, 1]} : vector<2x128xf32> to vector<2x32xf32>
    %cst_204 = arith.constant 2.000000e+00 : f32
    %638 = vector.broadcast %cst_204 : f32 to vector<2x32xf32>
    %639 = arith.mulf %638, %637 : vector<2x32xf32>
    %cst_205 = arith.constant 1.000000e+00 : f32
    %640 = vector.broadcast %cst_205 : f32 to vector<2x32xf32>
    %641 = arith.subf %639, %640 : vector<2x32xf32>
    %642 = arith.mulf %636, %641 : vector<2x32xf32>
    %643 = arith.addf %635, %642 : vector<2x32xf32>
    %644 = vector.extract_strided_slice %628 {offsets = [0, 96], sizes = [2, 32], strides = [1, 1]} : vector<2x128xf32> to vector<2x32xf32>
    %645 = math.tanh %643 : vector<2x32xf32>
    %646 = arith.mulf %644, %645 : vector<2x32xf32>
    %647 = vector.extract_strided_slice %633 {offsets = [0, 32], sizes = [2, 32], strides = [1, 1]} : vector<2x128xf32> to vector<2x32xf32>
    %648 = arith.mulf %647, %608 : vector<2x32xf32>
    %649 = vector.extract_strided_slice %633 {offsets = [0, 0], sizes = [2, 32], strides = [1, 1]} : vector<2x128xf32> to vector<2x32xf32>
    %650 = vector.extract_strided_slice %633 {offsets = [0, 64], sizes = [2, 32], strides = [1, 1]} : vector<2x128xf32> to vector<2x32xf32>
    %cst_206 = arith.constant 2.000000e+00 : f32
    %651 = vector.broadcast %cst_206 : f32 to vector<2x32xf32>
    %652 = arith.mulf %651, %650 : vector<2x32xf32>
    %cst_207 = arith.constant 1.000000e+00 : f32
    %653 = vector.broadcast %cst_207 : f32 to vector<2x32xf32>
    %654 = arith.subf %652, %653 : vector<2x32xf32>
    %655 = arith.mulf %649, %654 : vector<2x32xf32>
    %656 = arith.addf %648, %655 : vector<2x32xf32>
    %657 = vector.extract_strided_slice %633 {offsets = [0, 96], sizes = [2, 32], strides = [1, 1]} : vector<2x128xf32> to vector<2x32xf32>
    %658 = math.tanh %656 : vector<2x32xf32>
    %659 = arith.mulf %657, %658 : vector<2x32xf32>
    %660 = vector.shape_cast %646 : vector<2x32xf32> to vector<2x1x32xf32>
    %c0_208 = arith.constant 0 : index
    %c4_209 = arith.constant 4 : index
    %c0_210 = arith.constant 0 : index
    %661 = vector.load %arg13[%c0_208, %c4_209, %c0_210] : memref<2x8x64xf32, #tpu.memory_space<vmem>>, vector<2x1x32xf32>
    tpu.vector_store %arg13[%c0_208, %c4_209, %c0_210], %660 {strides = array<i32>} : memref<2x8x64xf32, #tpu.memory_space<vmem>>, vector<2x1x32xf32>,
    %662 = vector.shape_cast %659 : vector<2x32xf32> to vector<2x1x32xf32>
    %c0_211 = arith.constant 0 : index
    %c3_212 = arith.constant 3 : index
    %c32_213 = arith.constant 32 : index
    %663 = vector.load %arg13[%c0_211, %c3_212, %c32_213] : memref<2x8x64xf32, #tpu.memory_space<vmem>>, vector<2x1x32xf32>
    tpu.vector_store %arg13[%c0_211, %c3_212, %c32_213], %662 {strides = array<i32>} : memref<2x8x64xf32, #tpu.memory_space<vmem>>, vector<2x1x32xf32>,
    %664 = vector.extract_strided_slice %411 {offsets = [0, 5, 0], sizes = [2, 1, 128], strides = [1, 1, 1]} : vector<2x8x128xf32> to vector<2x1x128xf32>
    %665 = vector.shape_cast %664 : vector<2x1x128xf32> to vector<2x128xf32>
    %cst_214 = arith.constant dense<0.000000e+00> : vector<2x128xf32>
    %666 = tpu.matmul %646, %418, %cst_214 {dimension_numbers = #tpu.dot_dimension_numbers<[1], [0], [0], [1], [0, 0, 1, 1], [], []>} : vector<2x32xf32>, vector<32x128xf32>, vector<2x128xf32> -> vector<2x128xf32>
    %667 = arith.addf %665, %666 : vector<2x128xf32>
    %668 = vector.extract_strided_slice %417 {offsets = [0, 2, 0], sizes = [2, 1, 128], strides = [1, 1, 1]} : vector<2x8x128xf32> to vector<2x1x128xf32>
    %669 = vector.shape_cast %668 : vector<2x1x128xf32> to vector<2x128xf32>
    %cst_215 = arith.constant dense<0.000000e+00> : vector<2x128xf32>
    %670 = tpu.matmul %659, %419, %cst_215 {dimension_numbers = #tpu.dot_dimension_numbers<[1], [0], [0], [1], [0, 0, 1, 1], [], []>} : vector<2x32xf32>, vector<32x128xf32>, vector<2x128xf32> -> vector<2x128xf32>
    %671 = arith.addf %669, %670 : vector<2x128xf32>
    %672 = arith.negf %667 : vector<2x128xf32>
    %673 = math.exp %672 : vector<2x128xf32>
    %cst_216 = arith.constant 1.000000e+00 : f32
    %674 = vector.broadcast %cst_216 : f32 to vector<2x128xf32>
    %675 = arith.addf %674, %673 : vector<2x128xf32>
    %676 = arith.divf %674, %675 : vector<2x128xf32>
    %677 = arith.negf %671 : vector<2x128xf32>
    %678 = math.exp %677 : vector<2x128xf32>
    %cst_217 = arith.constant 1.000000e+00 : f32
    %679 = vector.broadcast %cst_217 : f32 to vector<2x128xf32>
    %680 = arith.addf %679, %678 : vector<2x128xf32>
    %681 = arith.divf %679, %680 : vector<2x128xf32>
    %682 = vector.extract_strided_slice %676 {offsets = [0, 32], sizes = [2, 32], strides = [1, 1]} : vector<2x128xf32> to vector<2x32xf32>
    %683 = arith.mulf %682, %643 : vector<2x32xf32>
    %684 = vector.extract_strided_slice %676 {offsets = [0, 0], sizes = [2, 32], strides = [1, 1]} : vector<2x128xf32> to vector<2x32xf32>
    %685 = vector.extract_strided_slice %676 {offsets = [0, 64], sizes = [2, 32], strides = [1, 1]} : vector<2x128xf32> to vector<2x32xf32>
    %cst_218 = arith.constant 2.000000e+00 : f32
    %686 = vector.broadcast %cst_218 : f32 to vector<2x32xf32>
    %687 = arith.mulf %686, %685 : vector<2x32xf32>
    %cst_219 = arith.constant 1.000000e+00 : f32
    %688 = vector.broadcast %cst_219 : f32 to vector<2x32xf32>
    %689 = arith.subf %687, %688 : vector<2x32xf32>
    %690 = arith.mulf %684, %689 : vector<2x32xf32>
    %691 = arith.addf %683, %690 : vector<2x32xf32>
    %692 = vector.extract_strided_slice %676 {offsets = [0, 96], sizes = [2, 32], strides = [1, 1]} : vector<2x128xf32> to vector<2x32xf32>
    %693 = math.tanh %691 : vector<2x32xf32>
    %694 = arith.mulf %692, %693 : vector<2x32xf32>
    %695 = vector.extract_strided_slice %681 {offsets = [0, 32], sizes = [2, 32], strides = [1, 1]} : vector<2x128xf32> to vector<2x32xf32>
    %696 = arith.mulf %695, %656 : vector<2x32xf32>
    %697 = vector.extract_strided_slice %681 {offsets = [0, 0], sizes = [2, 32], strides = [1, 1]} : vector<2x128xf32> to vector<2x32xf32>
    %698 = vector.extract_strided_slice %681 {offsets = [0, 64], sizes = [2, 32], strides = [1, 1]} : vector<2x128xf32> to vector<2x32xf32>
    %cst_220 = arith.constant 2.000000e+00 : f32
    %699 = vector.broadcast %cst_220 : f32 to vector<2x32xf32>
    %700 = arith.mulf %699, %698 : vector<2x32xf32>
    %cst_221 = arith.constant 1.000000e+00 : f32
    %701 = vector.broadcast %cst_221 : f32 to vector<2x32xf32>
    %702 = arith.subf %700, %701 : vector<2x32xf32>
    %703 = arith.mulf %697, %702 : vector<2x32xf32>
    %704 = arith.addf %696, %703 : vector<2x32xf32>
    %705 = vector.extract_strided_slice %681 {offsets = [0, 96], sizes = [2, 32], strides = [1, 1]} : vector<2x128xf32> to vector<2x32xf32>
    %706 = math.tanh %704 : vector<2x32xf32>
    %707 = arith.mulf %705, %706 : vector<2x32xf32>
    %708 = vector.shape_cast %694 : vector<2x32xf32> to vector<2x1x32xf32>
    %c0_222 = arith.constant 0 : index
    %c5_223 = arith.constant 5 : index
    %c0_224 = arith.constant 0 : index
    %709 = vector.load %arg13[%c0_222, %c5_223, %c0_224] : memref<2x8x64xf32, #tpu.memory_space<vmem>>, vector<2x1x32xf32>
    tpu.vector_store %arg13[%c0_222, %c5_223, %c0_224], %708 {strides = array<i32>} : memref<2x8x64xf32, #tpu.memory_space<vmem>>, vector<2x1x32xf32>,
    %710 = vector.shape_cast %707 : vector<2x32xf32> to vector<2x1x32xf32>
    %c0_225 = arith.constant 0 : index
    %c2_226 = arith.constant 2 : index
    %c32_227 = arith.constant 32 : index
    %711 = vector.load %arg13[%c0_225, %c2_226, %c32_227] : memref<2x8x64xf32, #tpu.memory_space<vmem>>, vector<2x1x32xf32>
    tpu.vector_store %arg13[%c0_225, %c2_226, %c32_227], %710 {strides = array<i32>} : memref<2x8x64xf32, #tpu.memory_space<vmem>>, vector<2x1x32xf32>,
    %712 = vector.extract_strided_slice %411 {offsets = [0, 6, 0], sizes = [2, 1, 128], strides = [1, 1, 1]} : vector<2x8x128xf32> to vector<2x1x128xf32>
    %713 = vector.shape_cast %712 : vector<2x1x128xf32> to vector<2x128xf32>
    %cst_228 = arith.constant dense<0.000000e+00> : vector<2x128xf32>
    %714 = tpu.matmul %694, %418, %cst_228 {dimension_numbers = #tpu.dot_dimension_numbers<[1], [0], [0], [1], [0, 0, 1, 1], [], []>} : vector<2x32xf32>, vector<32x128xf32>, vector<2x128xf32> -> vector<2x128xf32>
    %715 = arith.addf %713, %714 : vector<2x128xf32>
    %716 = vector.extract_strided_slice %417 {offsets = [0, 1, 0], sizes = [2, 1, 128], strides = [1, 1, 1]} : vector<2x8x128xf32> to vector<2x1x128xf32>
    %717 = vector.shape_cast %716 : vector<2x1x128xf32> to vector<2x128xf32>
    %cst_229 = arith.constant dense<0.000000e+00> : vector<2x128xf32>
    %718 = tpu.matmul %707, %419, %cst_229 {dimension_numbers = #tpu.dot_dimension_numbers<[1], [0], [0], [1], [0, 0, 1, 1], [], []>} : vector<2x32xf32>, vector<32x128xf32>, vector<2x128xf32> -> vector<2x128xf32>
    %719 = arith.addf %717, %718 : vector<2x128xf32>
    %720 = arith.negf %715 : vector<2x128xf32>
    %721 = math.exp %720 : vector<2x128xf32>
    %cst_230 = arith.constant 1.000000e+00 : f32
    %722 = vector.broadcast %cst_230 : f32 to vector<2x128xf32>
    %723 = arith.addf %722, %721 : vector<2x128xf32>
    %724 = arith.divf %722, %723 : vector<2x128xf32>
    %725 = arith.negf %719 : vector<2x128xf32>
    %726 = math.exp %725 : vector<2x128xf32>
    %cst_231 = arith.constant 1.000000e+00 : f32
    %727 = vector.broadcast %cst_231 : f32 to vector<2x128xf32>
    %728 = arith.addf %727, %726 : vector<2x128xf32>
    %729 = arith.divf %727, %728 : vector<2x128xf32>
    %730 = vector.extract_strided_slice %724 {offsets = [0, 32], sizes = [2, 32], strides = [1, 1]} : vector<2x128xf32> to vector<2x32xf32>
    %731 = arith.mulf %730, %691 : vector<2x32xf32>
    %732 = vector.extract_strided_slice %724 {offsets = [0, 0], sizes = [2, 32], strides = [1, 1]} : vector<2x128xf32> to vector<2x32xf32>
    %733 = vector.extract_strided_slice %724 {offsets = [0, 64], sizes = [2, 32], strides = [1, 1]} : vector<2x128xf32> to vector<2x32xf32>
    %cst_232 = arith.constant 2.000000e+00 : f32
    %734 = vector.broadcast %cst_232 : f32 to vector<2x32xf32>
    %735 = arith.mulf %734, %733 : vector<2x32xf32>
    %cst_233 = arith.constant 1.000000e+00 : f32
    %736 = vector.broadcast %cst_233 : f32 to vector<2x32xf32>
    %737 = arith.subf %735, %736 : vector<2x32xf32>
    %738 = arith.mulf %732, %737 : vector<2x32xf32>
    %739 = arith.addf %731, %738 : vector<2x32xf32>
    %740 = vector.extract_strided_slice %724 {offsets = [0, 96], sizes = [2, 32], strides = [1, 1]} : vector<2x128xf32> to vector<2x32xf32>
    %741 = math.tanh %739 : vector<2x32xf32>
    %742 = arith.mulf %740, %741 : vector<2x32xf32>
    %743 = vector.extract_strided_slice %729 {offsets = [0, 32], sizes = [2, 32], strides = [1, 1]} : vector<2x128xf32> to vector<2x32xf32>
    %744 = arith.mulf %743, %704 : vector<2x32xf32>
    %745 = vector.extract_strided_slice %729 {offsets = [0, 0], sizes = [2, 32], strides = [1, 1]} : vector<2x128xf32> to vector<2x32xf32>
    %746 = vector.extract_strided_slice %729 {offsets = [0, 64], sizes = [2, 32], strides = [1, 1]} : vector<2x128xf32> to vector<2x32xf32>
    %cst_234 = arith.constant 2.000000e+00 : f32
    %747 = vector.broadcast %cst_234 : f32 to vector<2x32xf32>
    %748 = arith.mulf %747, %746 : vector<2x32xf32>
    %cst_235 = arith.constant 1.000000e+00 : f32
    %749 = vector.broadcast %cst_235 : f32 to vector<2x32xf32>
    %750 = arith.subf %748, %749 : vector<2x32xf32>
    %751 = arith.mulf %745, %750 : vector<2x32xf32>
    %752 = arith.addf %744, %751 : vector<2x32xf32>
    %753 = vector.extract_strided_slice %729 {offsets = [0, 96], sizes = [2, 32], strides = [1, 1]} : vector<2x128xf32> to vector<2x32xf32>
    %754 = math.tanh %752 : vector<2x32xf32>
    %755 = arith.mulf %753, %754 : vector<2x32xf32>
    %756 = vector.shape_cast %742 : vector<2x32xf32> to vector<2x1x32xf32>
    %c0_236 = arith.constant 0 : index
    %c6_237 = arith.constant 6 : index
    %c0_238 = arith.constant 0 : index
    %757 = vector.load %arg13[%c0_236, %c6_237, %c0_238] : memref<2x8x64xf32, #tpu.memory_space<vmem>>, vector<2x1x32xf32>
    tpu.vector_store %arg13[%c0_236, %c6_237, %c0_238], %756 {strides = array<i32>} : memref<2x8x64xf32, #tpu.memory_space<vmem>>, vector<2x1x32xf32>,
    %758 = vector.shape_cast %755 : vector<2x32xf32> to vector<2x1x32xf32>
    %c0_239 = arith.constant 0 : index
    %c1_240 = arith.constant 1 : index
    %c32_241 = arith.constant 32 : index
    %759 = vector.load %arg13[%c0_239, %c1_240, %c32_241] : memref<2x8x64xf32, #tpu.memory_space<vmem>>, vector<2x1x32xf32>
    tpu.vector_store %arg13[%c0_239, %c1_240, %c32_241], %758 {strides = array<i32>} : memref<2x8x64xf32, #tpu.memory_space<vmem>>, vector<2x1x32xf32>,
    %760 = vector.extract_strided_slice %411 {offsets = [0, 7, 0], sizes = [2, 1, 128], strides = [1, 1, 1]} : vector<2x8x128xf32> to vector<2x1x128xf32>
    %761 = vector.shape_cast %760 : vector<2x1x128xf32> to vector<2x128xf32>
    %cst_242 = arith.constant dense<0.000000e+00> : vector<2x128xf32>
    %762 = tpu.matmul %742, %418, %cst_242 {dimension_numbers = #tpu.dot_dimension_numbers<[1], [0], [0], [1], [0, 0, 1, 1], [], []>} : vector<2x32xf32>, vector<32x128xf32>, vector<2x128xf32> -> vector<2x128xf32>
    %763 = arith.addf %761, %762 : vector<2x128xf32>
    %764 = vector.extract_strided_slice %417 {offsets = [0, 0, 0], sizes = [2, 1, 128], strides = [1, 1, 1]} : vector<2x8x128xf32> to vector<2x1x128xf32>
    %765 = vector.shape_cast %764 : vector<2x1x128xf32> to vector<2x128xf32>
    %cst_243 = arith.constant dense<0.000000e+00> : vector<2x128xf32>
    %766 = tpu.matmul %755, %419, %cst_243 {dimension_numbers = #tpu.dot_dimension_numbers<[1], [0], [0], [1], [0, 0, 1, 1], [], []>} : vector<2x32xf32>, vector<32x128xf32>, vector<2x128xf32> -> vector<2x128xf32>
    %767 = arith.addf %765, %766 : vector<2x128xf32>
    %768 = arith.negf %763 : vector<2x128xf32>
    %769 = math.exp %768 : vector<2x128xf32>
    %cst_244 = arith.constant 1.000000e+00 : f32
    %770 = vector.broadcast %cst_244 : f32 to vector<2x128xf32>
    %771 = arith.addf %770, %769 : vector<2x128xf32>
    %772 = arith.divf %770, %771 : vector<2x128xf32>
    %773 = arith.negf %767 : vector<2x128xf32>
    %774 = math.exp %773 : vector<2x128xf32>
    %cst_245 = arith.constant 1.000000e+00 : f32
    %775 = vector.broadcast %cst_245 : f32 to vector<2x128xf32>
    %776 = arith.addf %775, %774 : vector<2x128xf32>
    %777 = arith.divf %775, %776 : vector<2x128xf32>
    %778 = vector.extract_strided_slice %772 {offsets = [0, 32], sizes = [2, 32], strides = [1, 1]} : vector<2x128xf32> to vector<2x32xf32>
    %779 = arith.mulf %778, %739 : vector<2x32xf32>
    %780 = vector.extract_strided_slice %772 {offsets = [0, 0], sizes = [2, 32], strides = [1, 1]} : vector<2x128xf32> to vector<2x32xf32>
    %781 = vector.extract_strided_slice %772 {offsets = [0, 64], sizes = [2, 32], strides = [1, 1]} : vector<2x128xf32> to vector<2x32xf32>
    %cst_246 = arith.constant 2.000000e+00 : f32
    %782 = vector.broadcast %cst_246 : f32 to vector<2x32xf32>
    %783 = arith.mulf %782, %781 : vector<2x32xf32>
    %cst_247 = arith.constant 1.000000e+00 : f32
    %784 = vector.broadcast %cst_247 : f32 to vector<2x32xf32>
    %785 = arith.subf %783, %784 : vector<2x32xf32>
    %786 = arith.mulf %780, %785 : vector<2x32xf32>
    %787 = arith.addf %779, %786 : vector<2x32xf32>
    %788 = vector.extract_strided_slice %772 {offsets = [0, 96], sizes = [2, 32], strides = [1, 1]} : vector<2x128xf32> to vector<2x32xf32>
    %789 = math.tanh %787 : vector<2x32xf32>
    %790 = arith.mulf %788, %789 : vector<2x32xf32>
    %791 = vector.extract_strided_slice %777 {offsets = [0, 32], sizes = [2, 32], strides = [1, 1]} : vector<2x128xf32> to vector<2x32xf32>
    %792 = arith.mulf %791, %752 : vector<2x32xf32>
    %793 = vector.extract_strided_slice %777 {offsets = [0, 0], sizes = [2, 32], strides = [1, 1]} : vector<2x128xf32> to vector<2x32xf32>
    %794 = vector.extract_strided_slice %777 {offsets = [0, 64], sizes = [2, 32], strides = [1, 1]} : vector<2x128xf32> to vector<2x32xf32>
    %cst_248 = arith.constant 2.000000e+00 : f32
    %795 = vector.broadcast %cst_248 : f32 to vector<2x32xf32>
    %796 = arith.mulf %795, %794 : vector<2x32xf32>
    %cst_249 = arith.constant 1.000000e+00 : f32
    %797 = vector.broadcast %cst_249 : f32 to vector<2x32xf32>
    %798 = arith.subf %796, %797 : vector<2x32xf32>
    %799 = arith.mulf %793, %798 : vector<2x32xf32>
    %800 = arith.addf %792, %799 : vector<2x32xf32>
    %801 = vector.extract_strided_slice %777 {offsets = [0, 96], sizes = [2, 32], strides = [1, 1]} : vector<2x128xf32> to vector<2x32xf32>
    %802 = math.tanh %800 : vector<2x32xf32>
    %803 = arith.mulf %801, %802 : vector<2x32xf32>
    %804 = vector.shape_cast %790 : vector<2x32xf32> to vector<2x1x32xf32>
    %c0_250 = arith.constant 0 : index
    %c7_251 = arith.constant 7 : index
    %c0_252 = arith.constant 0 : index
    %805 = vector.load %arg13[%c0_250, %c7_251, %c0_252] : memref<2x8x64xf32, #tpu.memory_space<vmem>>, vector<2x1x32xf32>
    tpu.vector_store %arg13[%c0_250, %c7_251, %c0_252], %804 {strides = array<i32>} : memref<2x8x64xf32, #tpu.memory_space<vmem>>, vector<2x1x32xf32>,
    %806 = vector.shape_cast %803 : vector<2x32xf32> to vector<2x1x32xf32>
    %c0_253 = arith.constant 0 : index
    %c0_254 = arith.constant 0 : index
    %c32_255 = arith.constant 32 : index
    %807 = vector.load %arg13[%c0_253, %c0_254, %c32_255] : memref<2x8x64xf32, #tpu.memory_space<vmem>>, vector<2x1x32xf32>
    tpu.vector_store %arg13[%c0_253, %c0_254, %c32_255], %806 {strides = array<i32>} : memref<2x8x64xf32, #tpu.memory_space<vmem>>, vector<2x1x32xf32>,
    return
  }
}

</mosaic_0001>

<bundles_post_ra>
// kernel: block_lstm_forward.1
= control target key start
LH: loop header
LB: loop body
LE: loop exit
PB: predicated region body
PF: predicated region fallthrough
CT: control target
= control target key end

     0   :  { %18 = vsyncpa [#allocation5], 0  ;;  %s6677_s0 = inlined_call_operand.vmem [shape: f32[2,8,4], index: 0, kind: input, shape index: {}]   ;;  %s6678_s1 = inlined_call_operand.hbm [shape: f32[4,128], index: 1, kind: input, shape index: {}]   ;;  %s6679_s2 = inlined_call_operand.hbm [shape: f32[32,128], index: 2, kind: input, shape index: {}]   ;;  %s6680_s3 = inlined_call_operand.vmem [shape: f32[1,128], index: 3, kind: input, shape index: {}]   ;;  %s6681_s4 = inlined_call_operand.hbm [shape: f32[4,128], index: 4, kind: input, shape index: {}]   ;;  %s6682_s5 = inlined_call_operand.hbm [shape: f32[32,128], index: 5, kind: input, shape index: {}]   ;;  %s6683_s6 = inlined_call_operand.vmem [shape: f32[1,128], index: 6, kind: input, shape index: {}]   ;;  %s6684_s7 = inlined_call_operand.hbm [shape: f32[64,128], index: 7, kind: input, shape index: {}]   ;;  %s6685_s8 = inlined_call_operand.hbm [shape: f32[32,128], index: 8, kind: input, shape index: {}]   ;;  %s6686_s9 = inlined_call_operand.hbm [shape: f32[1,128], index: 9, kind: input, shape index: {}]   ;;  %s6687_s10 = inlined_call_operand.hbm [shape: f32[64,128], index: 10, kind: input, shape index: {}]   ;;  %s6688_s11 = inlined_call_operand.vmem [shape: f32[32,128], index: 11, kind: input, shape index: {}]   ;;  %s6689_s12 = inlined_call_operand.vmem [shape: f32[1,128], index: 12, kind: input, shape index: {}]   ;;  %s6690_s13 = inlined_call_operand.hbm [shape: f32[2,8,64], index: 13, kind: output, shape index: {}]  }
   0x1   :  { %19 = vsyncpa [#allocation8], 0 }
   0x2   :  { %20 = vsyncpa [#allocation11], 0 }
   0x3   :  { %21 = vsyncpa [#allocation14], 0 }
   0x4   :  { %22 = vsyncpa [#allocation17], 0  ;;  %s41_s27 = sshll.u32 %s6679_s2, 4  ;;  %s42_s27 = int_to_ptr.hbm [resolvable:$true] %s41_s27 }
   0x5   :  { %23 = vsyncpa [#allocation6], 0  ;;  %s5153_s28 = smov [#allocation7]   ;;  %s67_s15 = sshll.u32 %s6682_s5, 4  ;;  %s68_s15 = int_to_ptr.hbm [resolvable:$true] %s67_s15 }
   0x6   :  { %s43_s29 = sshll.u32 %s5153_s28, 4  ;;  %s5154_s16 = smov 128   ;;  %s44_s29 = int_to_ptr.vmem [resolvable:$true] %s43_s29 }
   0x7   :  { %s5155_s17 = smov 8   ;;  %s5156_s18 = smov [#allocation10]  }
   0x8   :  { %49 = dma.hbm_to_vmem [thread:$0]  %s42_s27, 512, %s44_s29, [#allocation8], %s5154_s16, %s5154_s16, %s5155_s17  }
   0x9   :  { %s69_s19 = sshll.u32 %s5156_s18, 4  ;;  %s95_s21 = sshll.u32 %s6685_s8, 4  ;;  %s70_s19 = int_to_ptr.vmem [resolvable:$true] %s69_s19  ;;  %s96_s21 = int_to_ptr.hbm [resolvable:$true] %s95_s21 }
   0xa   :  { %75 = dma.hbm_to_vmem [thread:$0]  %s68_s15, 512, %s70_s19, [#allocation11], %s5154_s16, %s5154_s16, %s5155_s17  }
   0xb   :  { %s31_s23 = sshll.u32 %s6678_s1, 4  ;;  %s5157_s24 = smov [#allocation13]   ;;  %s32_s23 = int_to_ptr.hbm [resolvable:$true] %s31_s23 }
   0xc   :  { %s97_s25 = sshll.u32 %s5157_s24, 4  ;;  %s5158_s26 = smov [#allocation4]   ;;  %s98_s25 = int_to_ptr.vmem [resolvable:$true] %s97_s25 }
   0xd   :  { %103 = dma.hbm_to_vmem [thread:$0]  %s96_s21, 512, %s98_s25, [#allocation14], %s5154_s16, %s5154_s16, %s5155_s17  }
   0xe   :  { %s33_s8 = sshll.u32 %s5158_s26, 4  ;;  %s57_s29 = sshll.u32 %s6681_s4, 4  ;;  %s34_s8 = int_to_ptr.vmem [resolvable:$true] %s33_s8  ;;  %s58_s29 = int_to_ptr.hbm [resolvable:$true] %s57_s29 }
   0xf   :  { %36 = dma.hbm_to_vmem [thread:$0]  %s32_s23, 64, %s34_s8, [#allocation5]  }
  0x10   :  { %s82_s1 = sshll.u32 %s6684_s7, 4  ;;  %s5159_s15 = smov [#allocation9]   ;;  %s83_s1 = int_to_ptr.hbm [resolvable:$true] %s82_s1 }
  0x11   :  { %s59_s18 = sshll.u32 %s5159_s15, 4  ;;  %s5160_s19 = smov [#allocation12]   ;;  %s60_s18 = int_to_ptr.vmem [resolvable:$true] %s59_s18 }
  0x12   :  { %62 = dma.hbm_to_vmem [thread:$0]  %s58_s29, 64, %s60_s18, [#allocation8]  }
  0x13   :  { %s84_s20 = sshll.u32 %s5160_s19, 4  ;;  %s109_s5 = sshll.u32 %s6686_s9, 4  ;;  %s85_s20 = int_to_ptr.vmem [resolvable:$true] %s84_s20  ;;  %s110_s5 = int_to_ptr.hbm [resolvable:$true] %s109_s5 }
  0x14   :  { %90 = dma.hbm_to_vmem [thread:$0]  %s83_s1, 1024, %s85_s20, [#allocation11], %s5154_s16, %s5154_s16, %s5155_s17  }
  0x15   :  { %s119_s7 = sshll.u32 %s6687_s10, 4  ;;  %s5161_s23 = smov [#allocation15]   ;;  %s120_s7 = int_to_ptr.hbm [resolvable:$true] %s119_s7 }
  0x16   :  { %s111_s24 = sshll.u32 %s5161_s23, 4  ;;  %s5162_s25 = smov [#allocation16]   ;;  %s112_s24 = int_to_ptr.vmem [resolvable:$true] %s111_s24 }
  0x17   :  { %114 = dma.hbm_to_vmem [thread:$0]  %s110_s5, 16, %s112_s24, [#allocation14]  }
  0x18   :  { %s121_s26 = sshll.u32 %s5162_s25, 4  ;;  %s122_s26 = int_to_ptr.vmem [resolvable:$true] %s121_s26 }
  0x19   :  { %127 = dma.hbm_to_vmem [thread:$0]  %s120_s7, 1024, %s122_s26, [#allocation17], %s5154_s16, %s5154_s16, %s5155_s17  }
  0x1a   :  { %5141 = dma.done.wait [#allocation5], 64  }
  0x1b   :  { %5142 = vsyncadd [#allocation5], 4294967232 }
  0x1c   :  { %5143 = dma.done.wait [#allocation8], 576  }
  0x1d   :  { %5144 = vsyncadd [#allocation8], 4294966720 }
  0x1e   :  { %5145 = dma.done.wait [#allocation11], 1536  }
  0x1f   :  { %5146 = vsyncadd [#allocation11], 4294965760 }
  0x20   :  { %5147 = dma.done.wait [#allocation14], 528  }
  0x21   :  { %5148 = vsyncadd [#allocation14], 4294966768 }
  0x22   :  { %5149 = dma.done.wait [#allocation17], 1024  }
  0x23   :  { %5150 = vsyncadd [#allocation17], 4294966272  ;;  %vm178_vm0 = vcmask 1043456   ;;  %v5276_v0 = vld [vmem:[#allocation7 + $0x18] sm:$0xff]  ;;  %v5280_v2 = vld [vmem:[#allocation7 + $0x10] sm:$0xff]  ;;  %vm171_vm1 = vcmask 31744  }
  0x24   :  { %v5278_v1 = vld [vmem:[#allocation10 + $0x18] sm:$0xff]  ;;  %260 = vmatpush.msra.mxu2 %v5276_v0  ;;  %v5284_v3 = vld [vmem:[#allocation10 + $0x10] sm:$0xff]  ;;  %v5286_v6 = vld [vmem:[#allocation7 + $0x8] sm:$0xff]  ;;  %v5163_v11 = vmov 0.0  }
  0x25   :  { %286 = vmatpush.msra.mxu3 %v5278_v1  ;;  %v166_v4 = vld [vmem:[#allocation4] sm:$0xf]  ;;  %v205_v5 = vld [vmem:[#allocation9] sm:$0xf]  ;;  %v5288_v7 = vld [vmem:[#allocation10 + $0x8] sm:$0xff] }
  0x26   :  { %4341 = vmatpush.msk.msra.mxu0 %vm178_vm0, %v166_v4  ;;  %4344 = vmatpush.msk.msra.mxu1 %vm178_vm0, %v205_v5  ;;  %v164_v8 = vld [vmem:[%s6677_s0] sm:$0xff]  ;;  %v5295_v9 = vld [vmem:[#allocation7] sm:$0xff]  ;;  %v165_v12 = vld [vmem:[%s6677_s0 + $0x8] sm:$0xff]  ;;  %s4324_s0 = sshll.u32 %s6690_s13, 4  ;;  %s4325_s0 = int_to_ptr.hbm [resolvable:$true] %s4324_s0 }
  0x27   :  { %261 = vmatpush.msra.mxu2 %v5280_v2  ;;  %287 = vmatpush.msra.mxu3 %v5284_v3  ;;  %v5299_v10 = vld [vmem:[#allocation10] sm:$0xff]  ;;  %v4521_v15 = vld [vmem:[%s6680_s3] ss:$0 sm:$0xff]  ;;  %s5164_s3 = smov 64  }
  0x28   :  { %4342 = vmatmul.msk.f32.vlgmr.msra.gmra.mxu0 %vm171_vm1, %v164_v8  ;;  %4345 = vmatmul.msk.f32.vlgmr.msra.gmra.mxu1 %vm171_vm1, %v164_v8  ;;  %v4522_v16 = vld [vmem:[%s6683_s6] ss:$0 sm:$0xff]  ;;  %s5165_s6 = smov 32  }
  0x29   :  { %262 = vmatpush.msra.mxu2 %v5286_v6  ;;  %288 = vmatpush.msra.mxu3 %v5288_v7 }
  0x2a   :  { %746 = vmatpush.msrb.mxu0 %v5276_v0  ;;  %780 = vmatpush.msrb.mxu1 %v5278_v1 }
  0x2b   :  { %263 = vmatpush.msra.mxu2 %v5295_v9  ;;  %289 = vmatpush.msra.mxu3 %v5299_v10 }
  0x2c   :  { %264 = vmatmul.f32.vlgmr.msra.gmra.mxu2 %v5163_v11  ;;  %290 = vmatmul.f32.vlgmr.msra.gmra.mxu3 %v5163_v11 }
  0x2d   :  { %494 = vmatpush.msrb.mxu2 %v5276_v0  ;;  %527 = vmatpush.msrb.mxu3 %v5278_v1 }
  0x2e   :  { %747 = vmatpush.msrb.mxu0 %v5280_v2  ;;  %781 = vmatpush.msrb.mxu1 %v5284_v3 }
  0x2f   :  { %495 = vmatpush.msrb.mxu2 %v5280_v2  ;;  %528 = vmatpush.msrb.mxu3 %v5284_v3 }
  0x30   :  { %4343 = vmatmul.msk.f32.gmra.mxu0 %vm171_vm1, %v165_v12  ;;  %4346 = vmatmul.msk.f32.gmra.mxu1 %vm171_vm1, %v165_v12 }
  0x31   :  { %496 = vmatpush.msrb.mxu2 %v5286_v6  ;;  %529 = vmatpush.msrb.mxu3 %v5288_v7 }
  0x32   :  { %748 = vmatpush.msrb.mxu0 %v5286_v6  ;;  %782 = vmatpush.msrb.mxu1 %v5288_v7 }
  0x33   :  { %497 = vmatpush.msrb.mxu2 %v5295_v9  ;;  %530 = vmatpush.msrb.mxu3 %v5299_v10 }
  0x34   :  { %749 = vmatpush.msrb.mxu0 %v5295_v9  ;;  %783 = vmatpush.msrb.mxu1 %v5299_v10 }
  0x35   :  { %1000 = vmatpush.msra.mxu2 %v5276_v0  ;;  %1034 = vmatpush.msra.mxu3 %v5278_v1 }
  0x36   :  { %1254 = vmatpush.msra.mxu0 %v5276_v0  ;;  %1288 = vmatpush.msra.mxu1 %v5278_v1 }
  0x37   :  { %1001 = vmatpush.msra.mxu2 %v5280_v2  ;;  %1035 = vmatpush.msra.mxu3 %v5284_v3 }
  0x38   :  { %1255 = vmatpush.msra.mxu0 %v5280_v2  ;;  %1289 = vmatpush.msra.mxu1 %v5284_v3 }
  0x39   :  { %1002 = vmatpush.msra.mxu2 %v5286_v6  ;;  %1036 = vmatpush.msra.mxu3 %v5288_v7 }
  0x3a   :  { %1256 = vmatpush.msra.mxu0 %v5286_v6  ;;  %1290 = vmatpush.msra.mxu1 %v5288_v7 }
  0x3b   :  { %1003 = vmatpush.msra.mxu2 %v5295_v9  ;;  %1037 = vmatpush.msra.mxu3 %v5299_v10 }
  0x3c   :  { %1257 = vmatpush.msra.mxu0 %v5295_v9  ;;  %1291 = vmatpush.msra.mxu1 %v5299_v10 }
  0xa5   :  { %v199_v13 = vpop.f32.mrf.mxu0  ;;  %v230_v14 = vpop.f32.mrf.mxu1 }
  0xa6   :  { %v5350_v17 = vadd.f32 %v4521_v15, %v199_v13  ;;  %v5352_v20 = vadd.f32 %v4522_v16, %v230_v14 }
  0xad   :  { %v202_v18 = vpop.f32.mrf.mxu0  ;;  %v233_v19 = vpop.f32.mrf.mxu1 }
  0xae   :  { %v5354_v21 = vadd.f32 %v4521_v15, %v202_v18  ;;  %v5356_v22 = vadd.f32 %v4522_v16, %v233_v19 }
  0xaf   :  { %v265_v23 = vpop.f32.mrf.mxu2  ;;  %v291_v24 = vpop.f32.mrf.mxu3 }
  0xb0   :  { %v269_v25 = vrot.slane %v265_v23, 1  ;;  %v272_v26 = vadd.f32 %v265_v23, %v5350_v17  ;;  %v295_v27 = vrot.slane %v291_v24, 1  ;;  %v296_v28 = vrot.slane %v291_v24, 2 }
  0xb2   :  { %v273_v29 = vadd.f32 %v269_v25, %v5354_v21  ;;  %v4347_v30 = vmul.f32 -1.442695, %v272_v26  ;;  %v299_v31 = vadd.f32 %v295_v27, %v5352_v20  ;;  %v300_v32 = vadd.f32 %v296_v28, %v5356_v22 }
  0xb4   :  { %4525 = vpow2.f32 %v4347_v30  ;;  %v4348_v33 = vmul.f32 -1.442695, %v273_v29  ;;  %v4349_v34 = vmul.f32 -1.442695, %v299_v31  ;;  %v4350_v35 = vmul.f32 -1.442695, %v300_v32 }
  0xb6   :  { %4527 = vpow2.f32 %v4348_v33 }
  0xb7   :  { %4529 = vpow2.f32 %v4349_v34 }
  0xb8   :  { %4531 = vpow2.f32 %v4350_v35 }
  0xba   :  { %v4526_v36 = vpop.eup %4525 }
  0xbb   :  { %v5362_v37 = vadd.f32 1.0, %v4526_v36 }
  0xbc   :  { %v4528_v38 = vpop.eup %4527 }
  0xbd   :  { %v4530_v39 = vpop.eup %4529  ;;  %v308_v40 = vadd.f32 1.0, %v4528_v38  ;;  %4533 = vrcp.f32 %v5362_v37  ;;  %vm314_vm2 = vweird.f32 %v5362_v37  ;;  %v318_v53 = vand.u32 2147483647, %v5362_v37 }
  0xbe   :  { %v4532_v41 = vpop.eup %4531  ;;  %v345_v42 = vadd.f32 1.0, %v4530_v39  ;;  %v320_v57 = vand.u32 2147483648, %v5362_v37 }
  0xbf   :  { %4535 = vrcp.f32 %v308_v40  ;;  %v346_v43 = vadd.f32 1.0, %v4532_v41  ;;  %v333_v52 = vand.u32 2147483647, %v308_v40  ;;  %vm329_vm4 = vweird.f32 %v308_v40 }
  0xc0   :  { %4537 = vrcp.f32 %v345_v42  ;;  %vm352_vm3 = vweird.f32 %v345_v42  ;;  %v335_v59 = vand.u32 2147483648, %v308_v40  ;;  %v358_v60 = vand.u32 2147483648, %v345_v42 }
  0xc1   :  { %4539 = vrcp.f32 %v346_v43  ;;  %v356_v4 = vand.u32 2147483647, %v345_v42  ;;  %vm5369_vm7 = vcmp.eq.f32.partialorder %v333_v52, 8.507059e+37  ;;  %vm367_vm10 = vweird.f32 %v346_v43 }
  0xc2   :  { %v336_v15 = vor.u32 1.1754944e-38, %v335_v59  ;;  %v359_v16 = vor.u32 1.1754944e-38, %v358_v60  ;;  %v373_v23 = vand.u32 2147483648, %v346_v43  ;;  %v371_v26 = vand.u32 2147483647, %v346_v43 }
  0xc3   :  { %v4534_v44 = vpop.eup %4533  ;;  %vm357_vm13 = vcmp.eq.f32.partialorder %v356_v4, 8.507059e+37  ;;  %v321_v32 = vor.u32 1.1754944e-38, %v320_v57  ;;  %vm319_vm0 = vcmp.eq.f32.partialorder %v318_v53, 8.507059e+37 }
  0xc4   :  { %v310_v45 = vmul.f32 %v4534_v44, %v5362_v37  ;;  %vm315_vm8 = vweird.f32 %v4534_v44  ;;  %v374_v34 = vor.u32 1.1754944e-38, %v373_v23  ;;  %vm372_vm1 = vcmp.eq.f32.partialorder %v371_v26, 8.507059e+37 }
  0xc5   :  { %v4536_v46 = vpop.eup %4535  ;;  %vm316_vm14 = vmor %vm314_vm2, %vm315_vm8  ;;  %vm476_vm2 = vcmask 1041409  }
  0xc6   :  { %v4538_v47 = vpop.eup %4537  ;;  %v311_v48 = vsub.f32 1.0, %v310_v45  ;;  %v325_v49 = vmul.f32 %v4536_v46, %v308_v40  ;;  %vm330_vm5 = vweird.f32 %v4536_v46 }
  0xc7   :  { %v4540_v50 = vpop.eup %4539  ;;  %v348_v51 = vmul.f32 %v4538_v47, %v345_v42  ;;  %vm353_vm6 = vweird.f32 %v4538_v47  ;;  %vm331_vm9 = vmor %vm329_vm4, %vm330_vm5 }
  0xc8   :  { %v363_v54 = vmul.f32 %v4540_v50, %v346_v43  ;;  %v326_v55 = vsub.f32 1.0, %v325_v49  ;;  %v312_v56 = vmul.f32 %v4534_v44, %v311_v48  ;;  %vm368_vm11 = vweird.f32 %v4540_v50  ;;  %vm354_vm12 = vmor %vm352_vm3, %vm353_vm6 }
  0xc9   :  { %v349_v58 = vsub.f32 1.0, %v348_v51  ;;  %vm369_vm15 = vmor %vm367_vm10, %vm368_vm11  ;;  %vm244_vm3 = vcmask 261120  }
  0xca   :  { %v327_v61 = vmul.f32 %v4536_v46, %v326_v55  ;;  %v364_v62 = vsub.f32 1.0, %v363_v54  ;;  %v313_v13 = vadd.f32 %v4534_v44, %v312_v56 }
  0xcb   :  { %v350_v63 = vmul.f32 %v4538_v47, %v349_v58 }
  0xcc   :  { %v328_v8 = vadd.f32 %v4536_v46, %v327_v61  ;;  %v365_v12 = vmul.f32 %v4540_v50, %v364_v62  ;;  %v317_v29 = vsel %vm316_vm14, %v4534_v44, %v313_v13 }
  0xcd   :  { %v351_v14 = vadd.f32 %v4538_v47, %v350_v63  ;;  %v322_v36 = vsel %vm319_vm0, %v321_v32, %v317_v29 }
  0xce   :  { %v332_v18 = vsel %vm331_vm9, %v4536_v46, %v328_v8  ;;  %v366_v19 = vadd.f32 %v4540_v50, %v365_v12  ;;  %v379_v38 = vmul.f32 2.0, %v322_v36  ;;  %v377_v53 = vmul.f32 0.0, %v322_v36 }
  0xcf   :  { %v355_v24 = vsel %vm354_vm12, %v4538_v47, %v351_v14  ;;  %v5377_v25 = vsel %vm5369_vm7, %v336_v15, %v332_v18 }
  0xd0   :  { %v5382_v27 = vsel %vm357_vm13, %v359_v16, %v355_v24  ;;  %v380_v28 = vmul.f32 2.0, %v5377_v25  ;;  %v370_v31 = vsel %vm369_vm15, %v4540_v50, %v366_v19  ;;  %v4351_v40 = vadd.f32 -1.0, %v379_v38 }
  0xd1   :  { %v417_v30 = vmul.f32 2.0, %v5382_v27  ;;  %v375_v37 = vsel %vm372_vm1, %v374_v34, %v370_v31  ;;  %v378_v50 = vmul.f32 0.0, %v5377_v25  ;;  %v415_v58 = vmul.f32 0.0, %v5382_v27 }
  0xd2   :  { %v4352_v33 = vadd.f32 -1.0, %v380_v28  ;;  %v418_v39 = vmul.f32 2.0, %v375_v37  ;;  %v416_v61 = vmul.f32 0.0, %v375_v37 }
  0xd3   :  { %v4353_v35 = vadd.f32 -1.0, %v417_v30 }
  0xd4   :  { %387 = vrot.lane.b32.xlu0 %v4352_v33, %s5164_s3  ;;  %v4354_v41 = vadd.f32 -1.0, %v418_v39 }
  0xd5   :  { %423 = vrot.lane.b32.xlu1 %v4353_v35, %s5164_s3 }
  0xdc   :  { %385 = vrot.lane.b32.xlu0 %v4351_v40, %s5164_s3 }
  0xdd   :  { %425 = vrot.lane.b32.xlu1 %v4354_v41, %s5164_s3 }
 0x146   :  { %v388_v42 = vpop.permute.xlu0 %387 }
 0x147   :  { %v424_v43 = vpop.permute.xlu1 %423  ;;  %v392_v44 = vmul.f32 %v388_v42, %v5377_v25 }
 0x148   :  { %v429_v45 = vmul.f32 %v424_v43, %v5382_v27 }
 0x149   :  { %397 = vrot.lane.b32.xlu2 %v392_v44, %s5165_s6 }
 0x14a   :  { %433 = vrot.lane.b32.xlu0 %v429_v45, %s5165_s6 }
 0x14e   :  { %v386_v46 = vpop.permute.xlu0 %385 }
 0x14f   :  { %v426_v47 = vpop.permute.xlu1 %425  ;;  %v391_v48 = vmul.f32 %v386_v46, %v322_v36 }
 0x150   :  { %v430_v49 = vmul.f32 %v426_v47, %v375_v37 }
 0x151   :  { %395 = vrot.lane.b32.xlu2 %v391_v48, %s5165_s6 }
 0x152   :  { %435 = vrot.lane.b32.xlu1 %v430_v49, %s5165_s6 }
 0x1a3   :  { %v398_v51 = vpop.permute.xlu2 %397 }
 0x1a4   :  { %v5397_v52 = vadd.f32 %v398_v51, %v378_v50 }
 0x1a6   :  { %4541 = vtanh.f32 %v5397_v52 }
 0x1ab   :  { %v396_v54 = vpop.permute.xlu2 %395 }
 0x1ac   :  { %v4542_v55 = vpop.eup %4541  ;;  %v5400_v56 = vadd.f32 %v396_v54, %v377_v53 }
 0x1ad   :  { %409 = vrot.lane.b32.xlu2 %v4542_v55, %s5164_s3 }
 0x1ae   :  { %4543 = vtanh.f32 %v5400_v56 }
 0x1b4   :  { %v4544_v57 = vpop.eup %4543 }
 0x1b5   :  { %407 = vrot.lane.b32.xlu0 %v4544_v57, %s5164_s3 }
 0x1bc   :  { %v434_v59 = vpop.permute.xlu0 %433 }
 0x1bd   :  { %v5406_v60 = vadd.f32 %v434_v59, %v415_v58 }
 0x1bf   :  { %4545 = vtanh.f32 %v5406_v60 }
 0x1c4   :  { %v436_v62 = vpop.permute.xlu1 %435 }
 0x1c5   :  { %v4546_v63 = vpop.eup %4545  ;;  %v5409_v4 = vadd.f32 %v436_v62, %v416_v61 }
 0x1c6   :  { %445 = vrot.lane.b32.xlu1 %v4546_v63, %s5164_s3 }
 0x1c7   :  { %4547 = vtanh.f32 %v5409_v4 }
 0x1cd   :  { %v4548_v5 = vpop.eup %4547 }
 0x1ce   :  { %447 = vrot.lane.b32.xlu2 %v4548_v5, %s5164_s3 }
 0x207   :  { %v410_v8 = vpop.permute.xlu2 %409 }
 0x208   :  { %v5415_v12 = vmul.f32 %v410_v8, %v5377_v25 }
 0x20a   :  { %v475_v14 = vrot.slane %v5415_v12, 7 }
 0x227   :  { %v408_v13 = vpop.permute.xlu0 %407 }
 0x228   :  { %v5418_v15 = vmul.f32 %v408_v13, %v322_v36  ;;  %v448_v18 = vpop.permute.xlu2 %447 }
 0x229   :  { %v5423_v19 = vmul.f32 %v448_v18, %v375_v37 }
 0x22a   :  { %v477_v16 = vsel %vm476_vm2, %v475_v14, %v5418_v15 }
 0x22b   :  { %478 = vrot.lane.b32.xlu0 %v477_v16, %s5165_s6  ;;  %v509_v25 = vrot.slane %v5423_v19, 6 }
 0x238   :  { %v446_v23 = vpop.permute.xlu1 %445 }
 0x239   :  { %v5426_v24 = vmul.f32 %v446_v23, %v5382_v27 }
 0x23b   :  { %v508_v26 = vrot.slane %v5426_v24, 7 }
 0x23d   :  { %v510_v28 = vsel %vm476_vm2, %v509_v25, %v508_v26 }
 0x23e   :  { %511 = vrot.lane.b32.xlu1 %v510_v28, %s5165_s6 }
 0x29d   :  { %v479_v29 = vpop.permute.xlu0 %478 }
 0x29e   :  { %4355 = vmatmul.msk.f32.vlgmr.msrb.gmra.mxu2 %vm244_vm3, %v479_v29 }
 0x29f   :  { %1508 = vmatpush.msrb.mxu2 %v5276_v0 }
 0x2a1   :  { %1509 = vmatpush.msrb.mxu2 %v5280_v2 }
 0x2a3   :  { %1510 = vmatpush.msrb.mxu2 %v5286_v6 }
 0x2a5   :  { %1511 = vmatpush.msrb.mxu2 %v5295_v9 }
 0x2b0   :  { %v512_v27 = vpop.permute.xlu1 %511 }
 0x2b1   :  { %4356 = vmatmul.msk.f32.vlgmr.msrb.gmra.mxu3 %vm244_vm3, %v512_v27 }
 0x2b2   :  { %1542 = vmatpush.msrb.mxu3 %v5278_v1 }
 0x2b4   :  { %1543 = vmatpush.msrb.mxu3 %v5284_v3 }
 0x2b6   :  { %1544 = vmatpush.msrb.mxu3 %v5288_v7 }
 0x2b8   :  { %1545 = vmatpush.msrb.mxu3 %v5299_v10 }
 0x321   :  { %v499_v30 = vpop.f32.mrf.mxu2 }
 0x322   :  { %v503_v31 = vrot.slane %v499_v30, 7  ;;  %v507_v32 = vadd.f32 %v499_v30, %v5354_v21 }
 0x324   :  { %v506_v33 = vadd.f32 %v503_v31, %v5350_v17  ;;  %v4358_v34 = vmul.f32 -1.442695, %v507_v32 }
 0x326   :  { %v4357_v35 = vmul.f32 -1.442695, %v506_v33  ;;  %4549 = vpow2.f32 %v4358_v34 }
 0x328   :  { %4551 = vpow2.f32 %v4357_v35 }
 0x32c   :  { %v4550_v36 = vpop.eup %4549 }
 0x32d   :  { %v549_v37 = vadd.f32 1.0, %v4550_v36 }
 0x32e   :  { %v4552_v38 = vpop.eup %4551 }
 0x32f   :  { %v548_v39 = vadd.f32 1.0, %v4552_v38  ;;  %4553 = vrcp.f32 %v549_v37  ;;  %v576_v53 = vand.u32 2147483648, %v549_v37  ;;  %v574_v55 = vand.u32 2147483647, %v549_v37 }
 0x330   :  { %vm570_vm5 = vweird.f32 %v549_v37 }
 0x331   :  { %4555 = vrcp.f32 %v548_v39  ;;  %v559_v58 = vand.u32 2147483647, %v548_v39  ;;  %v561_v59 = vand.u32 2147483648, %v548_v39  ;;  %v577_v63 = vor.u32 1.1754944e-38, %v576_v53 }
 0x332   :  { %vm575_vm8 = vcmp.eq.f32.partialorder %v574_v55, 8.507059e+37  ;;  %vm555_vm9 = vweird.f32 %v548_v39 }
 0x333   :  { %v562_v14 = vor.u32 1.1754944e-38, %v561_v59  ;;  %vm560_vm11 = vcmp.eq.f32.partialorder %v559_v58, 8.507059e+37 }
 0x334   :  { %v532_v40 = vpop.f32.mrf.mxu3 }
 0x335   :  { %v4554_v41 = vpop.eup %4553  ;;  %v536_v42 = vrot.slane %v532_v40, 2  ;;  %v537_v43 = vrot.slane %v532_v40, 3 }
 0x336   :  { %v566_v44 = vmul.f32 %v4554_v41, %v549_v37  ;;  %vm571_vm4 = vweird.f32 %v4554_v41 }
 0x337   :  { %v4556_v45 = vpop.eup %4555  ;;  %v540_v46 = vadd.f32 %v536_v42, %v5352_v20  ;;  %v541_v47 = vadd.f32 %v537_v43, %v5356_v22  ;;  %vm572_vm7 = vmor %vm570_vm5, %vm571_vm4 }
 0x338   :  { %v551_v48 = vmul.f32 %v4556_v45, %v548_v39  ;;  %v567_v49 = vsub.f32 1.0, %v566_v44  ;;  %vm556_vm6 = vweird.f32 %v4556_v45 }
 0x339   :  { %v4359_v50 = vmul.f32 -1.442695, %v540_v46  ;;  %v4360_v51 = vmul.f32 -1.442695, %v541_v47  ;;  %vm557_vm10 = vmor %vm555_vm9, %vm556_vm6 }
 0x33a   :  { %v568_v54 = vmul.f32 %v4554_v41, %v567_v49  ;;  %v552_v57 = vsub.f32 1.0, %v551_v48 }
 0x33b   :  { %4557 = vpow2.f32 %v4359_v50 }
 0x33c   :  { %4559 = vpow2.f32 %v4360_v51  ;;  %v569_v61 = vadd.f32 %v4554_v41, %v568_v54  ;;  %v553_v62 = vmul.f32 %v4556_v45, %v552_v57 }
 0x33e   :  { %v573_v5 = vsel %vm572_vm7, %v4554_v41, %v569_v61  ;;  %v554_v8 = vadd.f32 %v4556_v45, %v553_v62 }
 0x33f   :  { %v5446_v13 = vsel %vm575_vm8, %v577_v63, %v573_v5 }
 0x340   :  { %v627_v16 = vmul.f32 2.0, %v5446_v13  ;;  %v558_v18 = vsel %vm557_vm10, %v4556_v45, %v554_v8 }
 0x341   :  { %v4558_v23 = vpop.eup %4557  ;;  %v5449_v25 = vsel %vm560_vm11, %v562_v14, %v558_v18 }
 0x342   :  { %v4560_v26 = vpop.eup %4559  ;;  %v586_v28 = vadd.f32 1.0, %v4558_v23  ;;  %v4362_v29 = vadd.f32 -1.0, %v627_v16  ;;  %v626_v27 = vmul.f32 2.0, %v5449_v25  ;;  %v620_v16 = vrot.slane %v5400_v56, 7 }
 0x343   :  { %v587_v30 = vadd.f32 1.0, %v4560_v26 }
 0x344   :  { %4561 = vrcp.f32 %v586_v28  ;;  %634 = vrot.lane.b32.xlu0 %v4362_v29, %s5164_s3  ;;  %v4361_v31 = vadd.f32 -1.0, %v626_v27  ;;  %v599_v37 = vand.u32 2147483648, %v586_v28  ;;  %v597_v40 = vand.u32 2147483647, %v586_v28 }
 0x345   :  { %4563 = vrcp.f32 %v587_v30  ;;  %v614_v41 = vand.u32 2147483648, %v587_v30  ;;  %v612_v43 = vand.u32 2147483647, %v587_v30  ;;  %vm593_vm14 = vweird.f32 %v586_v28 }
 0x346   :  { %632 = vrot.lane.b32.xlu2 %v4361_v31, %s5164_s3  ;;  %v600_v45 = vor.u32 1.1754944e-38, %v599_v37  ;;  %vm608_vm0 = vweird.f32 %v587_v30  ;;  %vm598_vm1 = vcmp.eq.f32.partialorder %v597_v40, 8.507059e+37  ;;  %v624_v18 = vmul.f32 %v620_v16, %v5449_v25 }
 0x347   :  { %v615_v48 = vor.u32 1.1754944e-38, %v614_v41  ;;  %vm613_vm5 = vcmp.eq.f32.partialorder %v612_v43, 8.507059e+37  ;;  %v664_v29 = vrot.slane %v5406_v60, 1  ;;  %v665_v27 = vrot.slane %v5409_v4, 1 }
 0x348   :  { %v621_v31 = vrot.slane %v5397_v52, 7 }
 0x34a   :  { %v4562_v32 = vpop.eup %4561 }
 0x34b   :  { %v4564_v33 = vpop.eup %4563  ;;  %v589_v34 = vmul.f32 %v4562_v32, %v586_v28  ;;  %vm594_vm12 = vweird.f32 %v4562_v32 }
 0x34c   :  { %v604_v35 = vmul.f32 %v4564_v33, %v587_v30  ;;  %vm609_vm13 = vweird.f32 %v4564_v33  ;;  %vm595_vm15 = vmor %vm593_vm14, %vm594_vm12 }
 0x34d   :  { %v590_v36 = vsub.f32 1.0, %v589_v34  ;;  %vm610_vm4 = vmor %vm608_vm0, %vm609_vm13 }
 0x34e   :  { %v605_v38 = vsub.f32 1.0, %v604_v35 }
 0x34f   :  { %v591_v39 = vmul.f32 %v4562_v32, %v590_v36  ;;  %v625_v36 = vmul.f32 %v621_v31, %v5446_v13 }
 0x350   :  { %v606_v42 = vmul.f32 %v4564_v33, %v605_v38 }
 0x351   :  { %v592_v44 = vadd.f32 %v4562_v32, %v591_v39 }
 0x352   :  { %v607_v46 = vadd.f32 %v4564_v33, %v606_v42 }
 0x353   :  { %v596_v47 = vsel %vm595_vm15, %v4562_v32, %v592_v44 }
 0x354   :  { %v601_v49 = vsel %vm598_vm1, %v600_v45, %v596_v47  ;;  %v611_v50 = vsel %vm610_vm4, %v4564_v33, %v607_v46 }
 0x355   :  { %v670_v51 = vmul.f32 2.0, %v601_v49  ;;  %v616_v53 = vsel %vm613_vm5, %v615_v48, %v611_v50  ;;  %v668_v30 = vmul.f32 %v664_v29, %v601_v49 }
 0x356   :  { %v671_v54 = vmul.f32 2.0, %v616_v53  ;;  %v669_v32 = vmul.f32 %v665_v27, %v616_v53 }
 0x357   :  { %v4363_v55 = vadd.f32 -1.0, %v670_v51 }
 0x358   :  { %v4364_v57 = vadd.f32 -1.0, %v671_v54 }
 0x359   :  { %676 = vrot.lane.b32.xlu1 %v4363_v55, %s5164_s3 }
 0x35a   :  { %678 = vrot.lane.b32.xlu2 %v4364_v57, %s5164_s3 }
 0x3a0   :  { %v633_v58 = vpop.permute.xlu2 %632 }
 0x3a1   :  { %v638_v59 = vmul.f32 %v633_v58, %v5449_v25 }
 0x3a3   :  { %642 = vrot.lane.b32.xlu0 %v638_v59, %s5165_s6 }
 0x3b4   :  { %v679_v61 = vpop.permute.xlu2 %678 }
 0x3b5   :  { %v683_v62 = vmul.f32 %v679_v61, %v616_v53 }
 0x3b6   :  { %v635_v63 = vpop.permute.xlu0 %634 }
 0x3b7   :  { %688 = vrot.lane.b32.xlu0 %v683_v62, %s5165_s6  ;;  %v639_v5 = vmul.f32 %v635_v63, %v5446_v13 }
 0x3b9   :  { %644 = vrot.lane.b32.xlu1 %v639_v5, %s5165_s6 }
 0x3cb   :  { %v677_v8 = vpop.permute.xlu1 %676 }
 0x3cc   :  { %v682_v14 = vmul.f32 %v677_v8, %v601_v49 }
 0x3ce   :  { %686 = vrot.lane.b32.xlu2 %v682_v14, %s5165_s6 }
 0x415   :  { %v643_v23 = vpop.permute.xlu0 %642 }
 0x416   :  { %v5464_v26 = vadd.f32 %v643_v23, %v624_v18 }
 0x418   :  { %4565 = vtanh.f32 %v5464_v26 }
 0x41e   :  { %v4566_v28 = vpop.eup %4565 }
 0x41f   :  { %654 = vrot.lane.b32.xlu1 %v4566_v28, %s5164_s3 }
 0x428   :  { %v687_v33 = vpop.permute.xlu2 %686 }
 0x429   :  { %v689_v56 = vpop.permute.xlu0 %688  ;;  %v5471_v34 = vadd.f32 %v687_v33, %v668_v30 }
 0x42a   :  { %v5473_v35 = vadd.f32 %v689_v56, %v669_v32 }
 0x42b   :  { %4567 = vtanh.f32 %v5471_v34  ;;  %v645_v37 = vpop.permute.xlu1 %644 }
 0x42c   :  { %4569 = vtanh.f32 %v5473_v35  ;;  %v5478_v60 = vadd.f32 %v645_v37, %v625_v36 }
 0x42e   :  { %4571 = vtanh.f32 %v5478_v60 }
 0x431   :  { %v4568_v4 = vpop.eup %4567 }
 0x432   :  { %v4570_v52 = vpop.eup %4569  ;;  %698 = vrot.lane.b32.xlu0 %v4568_v4, %s5164_s3 }
 0x433   :  { %700 = vrot.lane.b32.xlu1 %v4570_v52, %s5164_s3 }
 0x434   :  { %v4572_v38 = vpop.eup %4571 }
 0x435   :  { %656 = vrot.lane.b32.xlu2 %v4572_v38, %s5164_s3 }
 0x48f   :  { %v657_v39 = vpop.permute.xlu2 %656 }
 0x490   :  { %v5488_v42 = vmul.f32 %v657_v39, %v5446_v13 }
 0x491   :  { %v655_v40 = vpop.permute.xlu1 %654 }
 0x492   :  { %v5485_v41 = vmul.f32 %v655_v40, %v5449_v25 }
 0x494   :  { %v728_v43 = vrot.slane %v5485_v41, 1 }
 0x496   :  { %v729_v44 = vsel %vm476_vm2, %v5488_v42, %v728_v43 }
 0x497   :  { %730 = vrot.lane.b32.xlu2 %v729_v44, %s5165_s6 }
 0x4a4   :  { %v699_v45 = vpop.permute.xlu0 %698 }
 0x4a5   :  { %v5494_v46 = vmul.f32 %v699_v45, %v601_v49  ;;  %v701_v47 = vpop.permute.xlu1 %700 }
 0x4a6   :  { %v5496_v48 = vmul.f32 %v701_v47, %v616_v53 }
 0x4a7   :  { %v761_v50 = vrot.slane %v5494_v46, 6 }
 0x4a8   :  { %v762_v25 = vrot.slane %v5496_v48, 5 }
 0x4aa   :  { %v763_v13 = vsel %vm476_vm2, %v762_v25, %v761_v50 }
 0x4ab   :  { %764 = vrot.lane.b32.xlu0 %v763_v13, %s5165_s6 }
 0x4f1   :  { %v731_v51 = vpop.permute.xlu2 %730 }
 0x4f2   :  { %4365 = vmatmul.msk.f32.vlgmr.msrb.gmra.mxu0 %vm244_vm3, %v731_v51 }
 0x4f3   :  { %1762 = vmatpush.msrb.mxu0 %v5276_v0 }
 0x4f5   :  { %1763 = vmatpush.msrb.mxu0 %v5280_v2 }
 0x4f7   :  { %1764 = vmatpush.msrb.mxu0 %v5286_v6 }
 0x4f9   :  { %1765 = vmatpush.msrb.mxu0 %v5295_v9 }
 0x51d   :  { %v765_v49 = vpop.permute.xlu0 %764 }
 0x51e   :  { %4366 = vmatmul.msk.f32.vlgmr.msrb.gmra.mxu1 %vm244_vm3, %v765_v49 }
 0x51f   :  { %1796 = vmatpush.msrb.mxu1 %v5278_v1 }
 0x521   :  { %1797 = vmatpush.msrb.mxu1 %v5284_v3 }
 0x523   :  { %1798 = vmatpush.msrb.mxu1 %v5288_v7 }
 0x525   :  { %1799 = vmatpush.msrb.mxu1 %v5299_v10 }
 0x56f   :  { %v751_v53 = vpop.f32.mrf.mxu0 }
 0x570   :  { %v755_v54 = vrot.slane %v751_v53, 6  ;;  %v756_v0 = vrot.slane %v751_v53, 7 }
 0x572   :  { %v759_v2 = vadd.f32 %v755_v54, %v5350_v17  ;;  %v760_v6 = vadd.f32 %v756_v0, %v5354_v21 }
 0x574   :  { %v4367_v55 = vmul.f32 -1.442695, %v759_v2  ;;  %v4368_v9 = vmul.f32 -1.442695, %v760_v6 }
 0x576   :  { %4573 = vpow2.f32 %v4367_v55 }
 0x577   :  { %4575 = vpow2.f32 %v4368_v9 }
 0x57c   :  { %v4574_v57 = vpop.eup %4573 }
 0x57d   :  { %v4576_v58 = vpop.eup %4575  ;;  %v801_v1 = vadd.f32 1.0, %v4574_v57 }
 0x57e   :  { %v802_v59 = vadd.f32 1.0, %v4576_v58 }
 0x57f   :  { %4577 = vrcp.f32 %v801_v1  ;;  %v814_v5 = vand.u32 2147483648, %v801_v1  ;;  %v812_v16 = vand.u32 2147483647, %v801_v1  ;;  %vm808_vm8 = vweird.f32 %v801_v1 }
 0x580   :  { %4579 = vrcp.f32 %v802_v59  ;;  %v829_v8 = vand.u32 2147483648, %v802_v59  ;;  %v827_v23 = vand.u32 2147483647, %v802_v59  ;;  %vm823_vm9 = vweird.f32 %v802_v59 }
 0x581   :  { %v815_v27 = vor.u32 1.1754944e-38, %v814_v5  ;;  %vm813_vm12 = vcmp.eq.f32.partialorder %v812_v16, 8.507059e+37 }
 0x582   :  { %v830_v30 = vor.u32 1.1754944e-38, %v829_v8  ;;  %vm828_vm13 = vcmp.eq.f32.partialorder %v827_v23, 8.507059e+37 }
 0x585   :  { %v4578_v3 = vpop.eup %4577 }
 0x586   :  { %v4580_v7 = vpop.eup %4579  ;;  %v804_v10 = vmul.f32 %v4578_v3, %v801_v1  ;;  %vm809_vm6 = vweird.f32 %v4578_v3 }
 0x587   :  { %v819_v61 = vmul.f32 %v4580_v7, %v802_v59  ;;  %vm824_vm7 = vweird.f32 %v4580_v7  ;;  %vm810_vm10 = vmor %vm808_vm8, %vm809_vm6 }
 0x588   :  { %v805_v62 = vsub.f32 1.0, %v804_v10  ;;  %vm825_vm11 = vmor %vm823_vm9, %vm824_vm7 }
 0x589   :  { %v820_v63 = vsub.f32 1.0, %v819_v61 }
 0x58a   :  { %v806_v14 = vmul.f32 %v4578_v3, %v805_v62 }
 0x58b   :  { %v821_v18 = vmul.f32 %v4580_v7, %v820_v63 }
 0x58c   :  { %v807_v28 = vadd.f32 %v4578_v3, %v806_v14 }
 0x58d   :  { %v822_v29 = vadd.f32 %v4580_v7, %v821_v18 }
 0x58e   :  { %v811_v31 = vsel %vm810_vm10, %v4578_v3, %v807_v28 }
 0x58f   :  { %v826_v32 = vsel %vm825_vm11, %v4580_v7, %v822_v29  ;;  %v5514_v33 = vsel %vm813_vm12, %v815_v27, %v811_v31 }
 0x590   :  { %v5516_v56 = vsel %vm828_vm13, %v830_v30, %v826_v32  ;;  %v879_v36 = vmul.f32 2.0, %v5514_v33 }
 0x591   :  { %v880_v37 = vmul.f32 2.0, %v5516_v56 }
 0x592   :  { %v4371_v4 = vadd.f32 -1.0, %v879_v36 }
 0x593   :  { %v4372_v52 = vadd.f32 -1.0, %v880_v37 }
 0x594   :  { %885 = vrot.lane.b32.xlu1 %v4371_v4, %s5164_s3  ;;  %v873_v4 = vrot.slane %v5464_v26, 7  ;;  %v918_v26 = vrot.slane %v5473_v35, 1 }
 0x595   :  { %887 = vrot.lane.b32.xlu2 %v4372_v52, %s5164_s3  ;;  %v874_v52 = vrot.slane %v5478_v60, 7 }
 0x59b   :  { %v785_v38 = vpop.f32.mrf.mxu1 }
 0x59c   :  { %v789_v39 = vrot.slane %v785_v38, 3  ;;  %v790_v40 = vrot.slane %v785_v38, 4  ;;  %v877_v38 = vmul.f32 %v873_v4, %v5514_v33 }
 0x59e   :  { %v793_v43 = vadd.f32 %v789_v39, %v5352_v20  ;;  %v794_v44 = vadd.f32 %v790_v40, %v5356_v22  ;;  %v878_v39 = vmul.f32 %v874_v52, %v5516_v56 }
 0x5a0   :  { %v4369_v45 = vmul.f32 -1.442695, %v793_v43  ;;  %v4370_v47 = vmul.f32 -1.442695, %v794_v44 }
 0x5a2   :  { %4581 = vpow2.f32 %v4369_v45 }
 0x5a3   :  { %4583 = vpow2.f32 %v4370_v47 }
 0x5a8   :  { %v4582_v50 = vpop.eup %4581 }
 0x5a9   :  { %v4584_v25 = vpop.eup %4583  ;;  %v839_v13 = vadd.f32 1.0, %v4582_v50 }
 0x5aa   :  { %v840_v51 = vadd.f32 1.0, %v4584_v25 }
 0x5ab   :  { %4585 = vrcp.f32 %v839_v13  ;;  %v852_v55 = vand.u32 2147483648, %v839_v13  ;;  %v850_v58 = vand.u32 2147483647, %v839_v13  ;;  %vm846_vm0 = vweird.f32 %v839_v13 }
 0x5ac   :  { %4587 = vrcp.f32 %v840_v51  ;;  %v867_v9 = vand.u32 2147483648, %v840_v51  ;;  %v865_v59 = vand.u32 2147483647, %v840_v51  ;;  %vm861_vm1 = vweird.f32 %v840_v51 }
 0x5ad   :  { %v853_v10 = vor.u32 1.1754944e-38, %v852_v55  ;;  %vm851_vm6 = vcmp.eq.f32.partialorder %v850_v58, 8.507059e+37 }
 0x5ae   :  { %v868_v61 = vor.u32 1.1754944e-38, %v867_v9  ;;  %vm866_vm7 = vcmp.eq.f32.partialorder %v865_v59, 8.507059e+37 }
 0x5b1   :  { %v4586_v49 = vpop.eup %4585 }
 0x5b2   :  { %v4588_v53 = vpop.eup %4587  ;;  %v842_v54 = vmul.f32 %v4586_v49, %v839_v13  ;;  %vm847_vm14 = vweird.f32 %v4586_v49 }
 0x5b3   :  { %v857_v0 = vmul.f32 %v4588_v53, %v840_v51  ;;  %vm862_vm15 = vweird.f32 %v4588_v53  ;;  %vm848_vm4 = vmor %vm846_vm0, %vm847_vm14 }
 0x5b4   :  { %v843_v2 = vsub.f32 1.0, %v842_v54  ;;  %vm863_vm5 = vmor %vm861_vm1, %vm862_vm15 }
 0x5b5   :  { %v858_v6 = vsub.f32 1.0, %v857_v0 }
 0x5b6   :  { %v844_v57 = vmul.f32 %v4586_v49, %v843_v2 }
 0x5b7   :  { %v859_v1 = vmul.f32 %v4588_v53, %v858_v6 }
 0x5b8   :  { %v845_v3 = vadd.f32 %v4586_v49, %v844_v57 }
 0x5b9   :  { %v860_v7 = vadd.f32 %v4588_v53, %v859_v1 }
 0x5ba   :  { %v849_v62 = vsel %vm848_vm4, %v4586_v49, %v845_v3  ;;  %v917_v49 = vrot.slane %v5471_v34, 1 }
 0x5bb   :  { %v864_v63 = vsel %vm863_vm5, %v4588_v53, %v860_v7  ;;  %v854_v5 = vsel %vm851_vm6, %v853_v10, %v849_v62  ;;  %v4909_v62 = vld [vmem:[#allocation7 + $0x18] sm:$0xff] }
 0x5bc   :  { %v869_v8 = vsel %vm866_vm7, %v868_v61, %v864_v63  ;;  %v923_v14 = vmul.f32 2.0, %v854_v5  ;;  %v921_v53 = vmul.f32 %v917_v49, %v854_v5  ;;  %v4910_v63 = vld [vmem:[#allocation7 + $0x10] sm:$0xff] }
 0x5bd   :  { %v924_v16 = vmul.f32 2.0, %v869_v8  ;;  %v922_v60 = vmul.f32 %v918_v26, %v869_v8 }
 0x5be   :  { %v4373_v18 = vadd.f32 -1.0, %v923_v14  ;;  %v4911_v14 = vld [vmem:[#allocation7 + $0x8] sm:$0xff] }
 0x5bf   :  { %v4374_v23 = vadd.f32 -1.0, %v924_v16  ;;  %v4913_v16 = vld [vmem:[#allocation10 + $0x18] sm:$0xff] }
 0x5c0   :  { %929 = vrot.lane.b32.xlu0 %v4373_v18, %s5164_s3  ;;  %v4914_v18 = vld [vmem:[#allocation10 + $0x10] sm:$0xff] }
 0x5c1   :  { %931 = vrot.lane.b32.xlu1 %v4374_v23, %s5164_s3  ;;  %v4915_v23 = vld [vmem:[#allocation10 + $0x8] sm:$0xff] }
 0x5ef   :  { %v888_v28 = vpop.permute.xlu2 %887 }
 0x5f0   :  { %v892_v29 = vmul.f32 %v888_v28, %v5516_v56  ;;  %v4916_v28 = vld [vmem:[#allocation10] sm:$0xff] }
 0x5f2   :  { %897 = vrot.lane.b32.xlu0 %v892_v29, %s5165_s6 }
 0x606   :  { %v886_v27 = vpop.permute.xlu1 %885 }
 0x607   :  { %v891_v30 = vmul.f32 %v886_v27, %v5514_v33 }
 0x609   :  { %895 = vrot.lane.b32.xlu2 %v891_v30, %s5165_s6 }
 0x632   :  { %v930_v31 = vpop.permute.xlu0 %929 }
 0x633   :  { %v935_v32 = vmul.f32 %v930_v31, %v854_v5  ;;  %v932_v36 = vpop.permute.xlu1 %931 }
 0x634   :  { %v936_v37 = vmul.f32 %v932_v36, %v869_v8 }
 0x635   :  { %939 = vrot.lane.b32.xlu1 %v935_v32, %s5165_s6 }
 0x636   :  { %941 = vrot.lane.b32.xlu2 %v936_v37, %s5165_s6 }
 0x663   :  { %v896_v40 = vpop.permute.xlu2 %895 }
 0x664   :  { %v898_v43 = vpop.permute.xlu0 %897  ;;  %v5536_v44 = vadd.f32 %v896_v40, %v877_v38 }
 0x665   :  { %v5538_v45 = vadd.f32 %v898_v43, %v878_v39 }
 0x666   :  { %4589 = vtanh.f32 %v5536_v44 }
 0x667   :  { %4591 = vtanh.f32 %v5538_v45 }
 0x66c   :  { %v4590_v47 = vpop.eup %4589 }
 0x66d   :  { %v4592_v50 = vpop.eup %4591  ;;  %907 = vrot.lane.b32.xlu0 %v4590_v47, %s5164_s3 }
 0x66e   :  { %909 = vrot.lane.b32.xlu1 %v4592_v50, %s5164_s3 }
 0x690   :  { %v942_v25 = vpop.permute.xlu2 %941 }
 0x691   :  { %v5545_v13 = vadd.f32 %v942_v25, %v922_v60 }
 0x693   :  { %4593 = vtanh.f32 %v5545_v13 }
 0x699   :  { %v4594_v51 = vpop.eup %4593 }
 0x69a   :  { %953 = vrot.lane.b32.xlu0 %v4594_v51, %s5164_s3 }
 0x6a7   :  { %v940_v54 = vpop.permute.xlu1 %939 }
 0x6a8   :  { %v5550_v0 = vadd.f32 %v940_v54, %v921_v53 }
 0x6aa   :  { %4595 = vtanh.f32 %v5550_v0 }
 0x6b0   :  { %v4596_v2 = vpop.eup %4595 }
 0x6b1   :  { %951 = vrot.lane.b32.xlu2 %v4596_v2, %s5164_s3 }
 0x6df   :  { %v908_v35 = vpop.permute.xlu0 %907 }
 0x6e0   :  { %v5555_v6 = vmul.f32 %v908_v35, %v5514_v33  ;;  %v910_v55 = vpop.permute.xlu1 %909 }
 0x6e1   :  { %v5558_v9 = vmul.f32 %v910_v55, %v5516_v56 }
 0x6e2   :  { %v981_v57 = vrot.slane %v5555_v6, 2 }
 0x6e3   :  { %v982_v34 = vrot.slane %v5558_v9, 1 }
 0x6e5   :  { %v983_v58 = vsel %vm476_vm2, %v982_v34, %v981_v57 }
 0x6e6   :  { %984 = vrot.lane.b32.xlu1 %v983_v58, %s5165_s6 }
 0x70b   :  { %v952_v1 = vpop.permute.xlu2 %951 }
 0x70c   :  { %v954_v59 = vpop.permute.xlu0 %953  ;;  %v5564_v3 = vmul.f32 %v952_v1, %v854_v5  ;;  %v4912_v5 = vld [vmem:[#allocation7] sm:$0xff] }
 0x70d   :  { %v5566_v7 = vmul.f32 %v954_v59, %v869_v8 }
 0x70e   :  { %v1015_v33 = vrot.slane %v5564_v3, 5 }
 0x70f   :  { %v1016_v10 = vrot.slane %v5566_v7, 4 }
 0x711   :  { %v1017_v56 = vsel %vm476_vm2, %v1016_v10, %v1015_v33 }
 0x712   :  { %1018 = vrot.lane.b32.xlu2 %v1017_v56, %s5165_s6 }
 0x758   :  { %v985_v61 = vpop.permute.xlu1 %984 }
 0x759   :  { %4375 = vmatmul.msk.f32.vlgmr.msra.gmra.mxu2 %vm244_vm3, %v985_v61 }
 0x75a   :  { %2015 = vmatpush.msra.mxu2 %v4909_v62 }
 0x75c   :  { %2016 = vmatpush.msra.mxu2 %v4910_v63 }
 0x75e   :  { %2017 = vmatpush.msra.mxu2 %v4911_v14 }
 0x760   :  { %2018 = vmatpush.msra.mxu2 %v4912_v5 }
 0x76c   :  { %v1019_v8 = vpop.permute.xlu2 %1018 }
 0x76d   :  { %4376 = vmatmul.msk.f32.vlgmr.msra.gmra.mxu3 %vm244_vm3, %v1019_v8 }
 0x76e   :  { %2048 = vmatpush.msra.mxu3 %v4913_v16 }
 0x770   :  { %2049 = vmatpush.msra.mxu3 %v4914_v18 }
 0x772   :  { %2050 = vmatpush.msra.mxu3 %v4915_v23 }
 0x774   :  { %2051 = vmatpush.msra.mxu3 %v4916_v28 }
 0x7dc   :  { %v1005_v29 = vpop.f32.mrf.mxu2 }
 0x7dd   :  { %v1009_v27 = vrot.slane %v1005_v29, 5  ;;  %v1010_v30 = vrot.slane %v1005_v29, 6 }
 0x7df   :  { %v1013_v31 = vadd.f32 %v1009_v27, %v5350_v17  ;;  %v1014_v32 = vadd.f32 %v1010_v30, %v5354_v21 }
 0x7e1   :  { %v4377_v36 = vmul.f32 -1.442695, %v1013_v31  ;;  %v4378_v37 = vmul.f32 -1.442695, %v1014_v32 }
 0x7e3   :  { %4597 = vpow2.f32 %v4377_v36 }
 0x7e4   :  { %4599 = vpow2.f32 %v4378_v37 }
 0x7e9   :  { %v4598_v4 = vpop.eup %4597 }
 0x7ea   :  { %v4600_v52 = vpop.eup %4599  ;;  %v1055_v38 = vadd.f32 1.0, %v4598_v4 }
 0x7eb   :  { %v1056_v39 = vadd.f32 1.0, %v4600_v52 }
 0x7ec   :  { %4601 = vrcp.f32 %v1055_v38  ;;  %v1066_v55 = vand.u32 2147483647, %v1055_v38  ;;  %v1068_v57 = vand.u32 2147483648, %v1055_v38  ;;  %vm1062_vm10 = vweird.f32 %v1055_v38 }
 0x7ed   :  { %4603 = vrcp.f32 %v1056_v39  ;;  %v1083_v34 = vand.u32 2147483648, %v1056_v39  ;;  %v1081_v59 = vand.u32 2147483647, %v1056_v39  ;;  %vm1077_vm11 = vweird.f32 %v1056_v39 }
 0x7ee   :  { %v1069_v56 = vor.u32 1.1754944e-38, %v1068_v57  ;;  %vm1067_vm14 = vcmp.eq.f32.partialorder %v1066_v55, 8.507059e+37 }
 0x7ef   :  { %v1084_v61 = vor.u32 1.1754944e-38, %v1083_v34  ;;  %vm1082_vm15 = vcmp.eq.f32.partialorder %v1081_v59, 8.507059e+37 }
 0x7f0   :  { %v1039_v40 = vpop.f32.mrf.mxu3 }
 0x7f1   :  { %v1043_v43 = vrot.slane %v1039_v40, 4  ;;  %v1044_v47 = vrot.slane %v1039_v40, 5 }
 0x7f2   :  { %v4602_v50 = vpop.eup %4601 }
 0x7f3   :  { %v4604_v26 = vpop.eup %4603  ;;  %v1058_v60 = vmul.f32 %v4602_v50, %v1055_v38  ;;  %v1047_v25 = vadd.f32 %v1043_v43, %v5352_v20  ;;  %v1048_v51 = vadd.f32 %v1044_v47, %v5356_v22  ;;  %vm1063_vm8 = vweird.f32 %v4602_v50 }
 0x7f4   :  { %v1073_v49 = vmul.f32 %v4604_v26, %v1056_v39  ;;  %vm1078_vm9 = vweird.f32 %v4604_v26  ;;  %vm1064_vm12 = vmor %vm1062_vm10, %vm1063_vm8 }
 0x7f5   :  { %v4379_v53 = vmul.f32 -1.442695, %v1047_v25  ;;  %v4380_v54 = vmul.f32 -1.442695, %v1048_v51  ;;  %v1059_v2 = vsub.f32 1.0, %v1058_v60  ;;  %vm1079_vm13 = vmor %vm1077_vm11, %vm1078_vm9 }
 0x7f6   :  { %v1074_v35 = vsub.f32 1.0, %v1073_v49 }
 0x7f7   :  { %4605 = vpow2.f32 %v4379_v53  ;;  %v1060_v58 = vmul.f32 %v4602_v50, %v1059_v2 }
 0x7f8   :  { %4607 = vpow2.f32 %v4380_v54  ;;  %v1075_v1 = vmul.f32 %v4604_v26, %v1074_v35 }
 0x7f9   :  { %v1061_v33 = vadd.f32 %v4602_v50, %v1060_v58 }
 0x7fa   :  { %v1076_v10 = vadd.f32 %v4604_v26, %v1075_v1 }
 0x7fb   :  { %v1065_v62 = vsel %vm1064_vm12, %v4602_v50, %v1061_v33 }
 0x7fc   :  { %v1080_v63 = vsel %vm1079_vm13, %v4604_v26, %v1076_v10  ;;  %v5578_v14 = vsel %vm1067_vm14, %v1069_v56, %v1065_v62 }
 0x7fd   :  { %v4606_v5 = vpop.eup %4605  ;;  %v5580_v8 = vsel %vm1082_vm15, %v1084_v61, %v1080_v63  ;;  %v1133_v16 = vmul.f32 2.0, %v5578_v14  ;;  %v1128_v63 = vrot.slane %v5538_v45, 7 }
 0x7fe   :  { %v4608_v18 = vpop.eup %4607  ;;  %v1093_v23 = vadd.f32 1.0, %v4606_v5  ;;  %v1134_v28 = vmul.f32 2.0, %v5580_v8 }
 0x7ff   :  { %v1094_v29 = vadd.f32 1.0, %v4608_v18  ;;  %v4381_v27 = vadd.f32 -1.0, %v1133_v16  ;;  %v1132_v5 = vmul.f32 %v1128_v63, %v5580_v8 }
 0x800   :  { %4609 = vrcp.f32 %v1093_v23  ;;  %v4382_v30 = vadd.f32 -1.0, %v1134_v28  ;;  %v1106_v52 = vand.u32 2147483648, %v1093_v23  ;;  %v1104_v40 = vand.u32 2147483647, %v1093_v23 }
 0x801   :  { %4611 = vrcp.f32 %v1094_v29  ;;  %1139 = vrot.lane.b32.xlu0 %v4381_v27, %s5164_s3  ;;  %v1121_v43 = vand.u32 2147483648, %v1094_v29  ;;  %v1119_v50 = vand.u32 2147483647, %v1094_v29  ;;  %vm1100_vm4 = vweird.f32 %v1093_v23 }
 0x802   :  { %1141 = vrot.lane.b32.xlu1 %v4382_v30, %s5164_s3  ;;  %v1107_v60 = vor.u32 1.1754944e-38, %v1106_v52  ;;  %vm1115_vm6 = vweird.f32 %v1094_v29  ;;  %vm1105_vm7 = vcmp.eq.f32.partialorder %v1104_v40, 8.507059e+37  ;;  %v1171_v28 = vrot.slane %v5550_v0, 1 }
 0x803   :  { %v1122_v49 = vor.u32 1.1754944e-38, %v1121_v43  ;;  %vm1120_vm9 = vcmp.eq.f32.partialorder %v1119_v50, 8.507059e+37  ;;  %v1127_v30 = vrot.slane %v5536_v44, 7  ;;  %v1172_v0 = vrot.slane %v5545_v13, 1 }
 0x805   :  { %v1131_v45 = vmul.f32 %v1127_v30, %v5578_v14 }
 0x806   :  { %v4610_v31 = vpop.eup %4609 }
 0x807   :  { %v4612_v32 = vpop.eup %4611  ;;  %v1096_v36 = vmul.f32 %v4610_v31, %v1093_v23  ;;  %vm1101_vm0 = vweird.f32 %v4610_v31 }
 0x808   :  { %v1111_v37 = vmul.f32 %v4612_v32, %v1094_v29  ;;  %vm1116_vm1 = vweird.f32 %v4612_v32  ;;  %vm1102_vm5 = vmor %vm1100_vm4, %vm1101_vm0 }
 0x809   :  { %v1097_v4 = vsub.f32 1.0, %v1096_v36  ;;  %vm1117_vm8 = vmor %vm1115_vm6, %vm1116_vm1 }
 0x80a   :  { %v1112_v38 = vsub.f32 1.0, %v1111_v37 }
 0x80b   :  { %v1098_v39 = vmul.f32 %v4610_v31, %v1097_v4 }
 0x80c   :  { %v1113_v47 = vmul.f32 %v4612_v32, %v1112_v38 }
 0x80d   :  { %v1099_v26 = vadd.f32 %v4610_v31, %v1098_v39 }
 0x80e   :  { %v1114_v25 = vadd.f32 %v4612_v32, %v1113_v47 }
 0x80f   :  { %v1103_v51 = vsel %vm1102_vm5, %v4610_v31, %v1099_v26 }
 0x810   :  { %v1108_v53 = vsel %vm1105_vm7, %v1107_v60, %v1103_v51  ;;  %v1118_v54 = vsel %vm1117_vm8, %v4612_v32, %v1114_v25 }
 0x811   :  { %v1177_v2 = vmul.f32 2.0, %v1108_v53  ;;  %v1123_v35 = vsel %vm1120_vm9, %v1122_v49, %v1118_v54  ;;  %v1175_v29 = vmul.f32 %v1171_v28, %v1108_v53 }
 0x812   :  { %v1178_v55 = vmul.f32 2.0, %v1123_v35  ;;  %v1176_v44 = vmul.f32 %v1172_v0, %v1123_v35 }
 0x813   :  { %v4383_v57 = vadd.f32 -1.0, %v1177_v2 }
 0x814   :  { %v4384_v34 = vadd.f32 -1.0, %v1178_v55 }
 0x815   :  { %1183 = vrot.lane.b32.xlu2 %v4383_v57, %s5164_s3 }
 0x816   :  { %1185 = vrot.lane.b32.xlu0 %v4384_v34, %s5164_s3 }
 0x86f   :  { %v1184_v58 = vpop.permute.xlu2 %1183 }
 0x870   :  { %v1189_v1 = vmul.f32 %v1184_v58, %v1108_v53 }
 0x872   :  { %1193 = vrot.lane.b32.xlu0 %v1189_v1, %s5165_s6 }
 0x873   :  { %v1140_v59 = vpop.permute.xlu0 %1139 }
 0x874   :  { %v1142_v33 = vpop.permute.xlu1 %1141  ;;  %v1145_v10 = vmul.f32 %v1140_v59, %v5578_v14 }
 0x875   :  { %v1146_v56 = vmul.f32 %v1142_v33, %v5580_v8 }
 0x876   :  { %1149 = vrot.lane.b32.xlu1 %v1145_v10, %s5165_s6 }
 0x877   :  { %1151 = vrot.lane.b32.xlu2 %v1146_v56, %s5165_s6 }
 0x888   :  { %v1186_v61 = vpop.permute.xlu0 %1185 }
 0x889   :  { %v1190_v62 = vmul.f32 %v1186_v61, %v1123_v35 }
 0x88b   :  { %1195 = vrot.lane.b32.xlu1 %v1190_v62, %s5165_s6 }
 0x8d1   :  { %v1152_v16 = vpop.permute.xlu2 %1151 }
 0x8d2   :  { %v5596_v18 = vadd.f32 %v1152_v16, %v1132_v5 }
 0x8d4   :  { %4613 = vtanh.f32 %v5596_v18 }
 0x8da   :  { %v4614_v23 = vpop.eup %4613 }
 0x8db   :  { %1163 = vrot.lane.b32.xlu0 %v4614_v23, %s5164_s3 }
 0x8e4   :  { %v1194_v27 = vpop.permute.xlu0 %1193 }
 0x8e5   :  { %v5602_v31 = vadd.f32 %v1194_v27, %v1175_v29 }
 0x8e7   :  { %4615 = vtanh.f32 %v5602_v31 }
 0x8e8   :  { %v1150_v32 = vpop.permute.xlu1 %1149 }
 0x8e9   :  { %v5606_v36 = vadd.f32 %v1150_v32, %v1131_v45 }
 0x8eb   :  { %4617 = vtanh.f32 %v5606_v36 }
 0x8ed   :  { %v4616_v37 = vpop.eup %4615 }
 0x8ee   :  { %1205 = vrot.lane.b32.xlu1 %v4616_v37, %s5164_s3 }
 0x8f1   :  { %v4618_v4 = vpop.eup %4617 }
 0x8f2   :  { %1161 = vrot.lane.b32.xlu2 %v4618_v4, %s5164_s3 }
 0x8fd   :  { %v1196_v52 = vpop.permute.xlu1 %1195 }
 0x8fe   :  { %v5612_v38 = vadd.f32 %v1196_v52, %v1176_v44 }
 0x900   :  { %4619 = vtanh.f32 %v5612_v38 }
 0x906   :  { %v4620_v39 = vpop.eup %4619 }
 0x907   :  { %1207 = vrot.lane.b32.xlu2 %v4620_v39, %s5164_s3 }
 0x94c   :  { %v1162_v40 = vpop.permute.xlu2 %1161 }
 0x94d   :  { %v1164_v43 = vpop.permute.xlu0 %1163  ;;  %v5617_v47 = vmul.f32 %v1162_v40, %v5578_v14 }
 0x94e   :  { %v5620_v50 = vmul.f32 %v1164_v43, %v5580_v8 }
 0x94f   :  { %v1235_v26 = vrot.slane %v5617_v47, 3 }
 0x950   :  { %v1236_v13 = vrot.slane %v5620_v50, 2 }
 0x952   :  { %v1237_v60 = vsel %vm476_vm2, %v1236_v13, %v1235_v26 }
 0x953   :  { %1238 = vrot.lane.b32.xlu0 %v1237_v60, %s5165_s6 }
 0x960   :  { %v1206_v25 = vpop.permute.xlu1 %1205 }
 0x961   :  { %v5626_v51 = vmul.f32 %v1206_v25, %v1108_v53  ;;  %v1208_v49 = vpop.permute.xlu2 %1207 }
 0x962   :  { %v5628_v54 = vmul.f32 %v1208_v49, %v1123_v35 }
 0x963   :  { %v1269_v14 = vrot.slane %v5626_v51, 4 }
 0x964   :  { %v1270_v2 = vrot.slane %v5628_v54, 3 }
 0x966   :  { %v1271_v8 = vsel %vm476_vm2, %v1270_v2, %v1269_v14 }
 0x967   :  { %1272 = vrot.lane.b32.xlu1 %v1271_v8, %s5165_s6 }
 0x9c5   :  { %v1239_v55 = vpop.permute.xlu0 %1238 }
 0x9c6   :  { %4385 = vmatmul.msk.f32.vlgmr.msra.gmra.mxu0 %vm244_vm3, %v1239_v55 }
 0x9d9   :  { %v1273_v57 = vpop.permute.xlu1 %1272 }
 0x9da   :  { %4386 = vmatmul.msk.f32.vlgmr.msra.gmra.mxu1 %vm244_vm3, %v1273_v57 }
 0xa43   :  { %v1259_v34 = vpop.f32.mrf.mxu0 }
 0xa44   :  { %v1263_v53 = vrot.slane %v1259_v34, 4  ;;  %v1264_v58 = vrot.slane %v1259_v34, 5 }
 0xa46   :  { %v1267_v35 = vadd.f32 %v1263_v53, %v5350_v17  ;;  %v1268_v1 = vadd.f32 %v1264_v58, %v5354_v21 }
 0xa48   :  { %v4387_v59 = vmul.f32 -1.442695, %v1267_v35  ;;  %v4388_v33 = vmul.f32 -1.442695, %v1268_v1 }
 0xa4a   :  { %4621 = vpow2.f32 %v4387_v59 }
 0xa4b   :  { %4623 = vpow2.f32 %v4388_v33 }
 0xa50   :  { %v4622_v10 = vpop.eup %4621 }
 0xa51   :  { %v4624_v56 = vpop.eup %4623  ;;  %v1309_v61 = vadd.f32 1.0, %v4622_v10 }
 0xa52   :  { %v1310_v62 = vadd.f32 1.0, %v4624_v56 }
 0xa53   :  { %4625 = vrcp.f32 %v1309_v61  ;;  %v1320_v44 = vand.u32 2147483647, %v1309_v61  ;;  %v1322_v52 = vand.u32 2147483648, %v1309_v61  ;;  %vm1316_vm12 = vweird.f32 %v1309_v61 }
 0xa54   :  { %4627 = vrcp.f32 %v1310_v62  ;;  %v1337_v39 = vand.u32 2147483648, %v1310_v62  ;;  %v1335_v26 = vand.u32 2147483647, %v1310_v62  ;;  %vm1331_vm13 = vweird.f32 %v1310_v62 }
 0xa55   :  { %v1323_v25 = vor.u32 1.1754944e-38, %v1322_v52  ;;  %vm1321_vm0 = vcmp.eq.f32.partialorder %v1320_v44, 8.507059e+37 }
 0xa56   :  { %v1338_v49 = vor.u32 1.1754944e-38, %v1337_v39  ;;  %vm1336_vm1 = vcmp.eq.f32.partialorder %v1335_v26, 8.507059e+37 }
 0xa57   :  { %v1293_v63 = vpop.f32.mrf.mxu1 }
 0xa58   :  { %v1297_v5 = vrot.slane %v1293_v63, 5  ;;  %v1298_v16 = vrot.slane %v1293_v63, 6 }
 0xa59   :  { %v4626_v23 = vpop.eup %4625 }
 0xa5a   :  { %v4628_v28 = vpop.eup %4627  ;;  %v1312_v29 = vmul.f32 %v4626_v23, %v1309_v61  ;;  %v1301_v27 = vadd.f32 %v1297_v5, %v5352_v20  ;;  %v1302_v30 = vadd.f32 %v1298_v16, %v5356_v22  ;;  %vm1317_vm10 = vweird.f32 %v4626_v23 }
 0xa5b   :  { %v1327_v45 = vmul.f32 %v4628_v28, %v1310_v62  ;;  %vm1332_vm11 = vweird.f32 %v4628_v28  ;;  %vm1318_vm14 = vmor %vm1316_vm12, %vm1317_vm10 }
 0xa5c   :  { %v4389_v32 = vmul.f32 -1.442695, %v1301_v27  ;;  %v4390_v37 = vmul.f32 -1.442695, %v1302_v30  ;;  %v1313_v4 = vsub.f32 1.0, %v1312_v29  ;;  %vm1333_vm15 = vmor %vm1331_vm13, %vm1332_vm11 }
 0xa5d   :  { %v1328_v0 = vsub.f32 1.0, %v1327_v45 }
 0xa5e   :  { %4629 = vpow2.f32 %v4389_v32  ;;  %v1314_v40 = vmul.f32 %v4626_v23, %v1313_v4 }
 0xa5f   :  { %4631 = vpow2.f32 %v4390_v37  ;;  %v1329_v43 = vmul.f32 %v4628_v28, %v1328_v0 }
 0xa60   :  { %v1315_v13 = vadd.f32 %v4626_v23, %v1314_v40 }
 0xa61   :  { %v1330_v60 = vadd.f32 %v4628_v28, %v1329_v43 }
 0xa62   :  { %v1319_v14 = vsel %vm1318_vm14, %v4626_v23, %v1315_v13 }
 0xa63   :  { %v1334_v2 = vsel %vm1333_vm15, %v4628_v28, %v1330_v60  ;;  %v5640_v8 = vsel %vm1321_vm0, %v1323_v25, %v1319_v14 }
 0xa64   :  { %v4630_v55 = vpop.eup %4629  ;;  %v5642_v57 = vsel %vm1336_vm1, %v1338_v49, %v1334_v2  ;;  %v1387_v34 = vmul.f32 2.0, %v5640_v8 }
 0xa65   :  { %v4632_v53 = vpop.eup %4631  ;;  %v1347_v58 = vadd.f32 1.0, %v4630_v55  ;;  %v1388_v35 = vmul.f32 2.0, %v5642_v57 }
 0xa66   :  { %v1348_v1 = vadd.f32 1.0, %v4632_v53  ;;  %v4391_v59 = vadd.f32 -1.0, %v1387_v34 }
 0xa67   :  { %4633 = vrcp.f32 %v1347_v58  ;;  %v4392_v33 = vadd.f32 -1.0, %v1388_v35  ;;  %v1360_v16 = vand.u32 2147483648, %v1347_v58  ;;  %v1358_v29 = vand.u32 2147483647, %v1347_v58 }
 0xa68   :  { %4635 = vrcp.f32 %v1348_v1  ;;  %1393 = vrot.lane.b32.xlu2 %v4391_v59, %s5164_s3  ;;  %v1375_v23 = vand.u32 2147483648, %v1348_v1  ;;  %v1373_v30 = vand.u32 2147483647, %v1348_v1  ;;  %vm1354_vm6 = vweird.f32 %v1347_v58 }
 0xa69   :  { %1395 = vrot.lane.b32.xlu0 %v4392_v33, %s5164_s3  ;;  %vm1369_vm7 = vweird.f32 %v1348_v1  ;;  %v1361_v37 = vor.u32 1.1754944e-38, %v1360_v16  ;;  %vm1359_vm10 = vcmp.eq.f32.partialorder %v1358_v29, 8.507059e+37 }
 0xa6a   :  { %v1376_v4 = vor.u32 1.1754944e-38, %v1375_v23  ;;  %vm1374_vm11 = vcmp.eq.f32.partialorder %v1373_v30, 8.507059e+37 }
 0xa6d   :  { %v4634_v10 = vpop.eup %4633 }
 0xa6e   :  { %v4636_v56 = vpop.eup %4635  ;;  %v1350_v61 = vmul.f32 %v4634_v10, %v1347_v58  ;;  %vm1355_vm4 = vweird.f32 %v4634_v10  ;;  %v1381_v58 = vrot.slane %v5606_v36, 7  ;;  %v1382_v36 = vrot.slane %v5596_v18, 7 }
 0xa6f   :  { %v1365_v62 = vmul.f32 %v4636_v56, %v1348_v1  ;;  %vm1370_vm5 = vweird.f32 %v4636_v56  ;;  %vm1356_vm8 = vmor %vm1354_vm6, %vm1355_vm4 }
 0xa70   :  { %v1351_v63 = vsub.f32 1.0, %v1350_v61  ;;  %vm1371_vm9 = vmor %vm1369_vm7, %vm1370_vm5  ;;  %v1385_v35 = vmul.f32 %v1381_v58, %v5640_v8 }
 0xa71   :  { %v1366_v5 = vsub.f32 1.0, %v1365_v62 }
 0xa72   :  { %v1352_v28 = vmul.f32 %v4634_v10, %v1351_v63 }
 0xa73   :  { %v1367_v27 = vmul.f32 %v4636_v56, %v1366_v5 }
 0xa74   :  { %v1353_v45 = vadd.f32 %v4634_v10, %v1352_v28  ;;  %v1386_v28 = vmul.f32 %v1382_v36, %v5642_v57 }
 0xa75   :  { %v1368_v32 = vadd.f32 %v4636_v56, %v1367_v27 }
 0xa76   :  { %v1357_v0 = vsel %vm1356_vm8, %v4634_v10, %v1353_v45  ;;  %v1425_v10 = vrot.slane %v5602_v31, 1 }
 0xa77   :  { %v1372_v44 = vsel %vm1371_vm9, %v4636_v56, %v1368_v32  ;;  %v1362_v52 = vsel %vm1359_vm10, %v1361_v37, %v1357_v0  ;;  %v1426_v56 = vrot.slane %v5612_v38, 1 }
 0xa78   :  { %v1377_v39 = vsel %vm1374_vm11, %v1376_v4, %v1372_v44  ;;  %v1431_v40 = vmul.f32 2.0, %v1362_v52  ;;  %v1429_v61 = vmul.f32 %v1425_v10, %v1362_v52 }
 0xa79   :  { %v1432_v43 = vmul.f32 2.0, %v1377_v39  ;;  %v1430_v62 = vmul.f32 %v1426_v56, %v1377_v39 }
 0xa7a   :  { %v4393_v26 = vadd.f32 -1.0, %v1431_v40 }
 0xa7b   :  { %v4394_v13 = vadd.f32 -1.0, %v1432_v43 }
 0xa7c   :  { %1437 = vrot.lane.b32.xlu1 %v4393_v26, %s5164_s3 }
 0xa7d   :  { %1439 = vrot.lane.b32.xlu2 %v4394_v13, %s5164_s3 }
 0xac2   :  { %v1394_v60 = vpop.permute.xlu2 %1393 }
 0xac3   :  { %v1399_v25 = vmul.f32 %v1394_v60, %v5640_v8 }
 0xac5   :  { %1403 = vrot.lane.b32.xlu0 %v1399_v25, %s5165_s6 }
 0xad7   :  { %v1440_v49 = vpop.permute.xlu2 %1439 }
 0xad8   :  { %v1444_v14 = vmul.f32 %v1440_v49, %v1377_v39 }
 0xada   :  { %1449 = vrot.lane.b32.xlu0 %v1444_v14, %s5165_s6 }
 0xadb   :  { %v1396_v2 = vpop.permute.xlu0 %1395 }
 0xadc   :  { %v1400_v55 = vmul.f32 %v1396_v2, %v5642_v57 }
 0xade   :  { %1405 = vrot.lane.b32.xlu1 %v1400_v55, %s5165_s6 }
 0xaee   :  { %v1438_v34 = vpop.permute.xlu1 %1437 }
 0xaef   :  { %v1443_v53 = vmul.f32 %v1438_v34, %v1362_v52 }
 0xaf1   :  { %1447 = vrot.lane.b32.xlu2 %v1443_v53, %s5165_s6 }
 0xb37   :  { %v1404_v1 = vpop.permute.xlu0 %1403 }
 0xb38   :  { %v5658_v59 = vadd.f32 %v1404_v1, %v1385_v35 }
 0xb3a   :  { %4637 = vtanh.f32 %v5658_v59 }
 0xb40   :  { %v4638_v33 = vpop.eup %4637 }
 0xb41   :  { %1415 = vrot.lane.b32.xlu1 %v4638_v33, %s5164_s3 }
 0xb4b   :  { %v1448_v63 = vpop.permute.xlu2 %1447 }
 0xb4c   :  { %v1450_v5 = vpop.permute.xlu0 %1449  ;;  %v5664_v16 = vadd.f32 %v1448_v63, %v1429_v61 }
 0xb4d   :  { %v5667_v23 = vadd.f32 %v1450_v5, %v1430_v62 }
 0xb4e   :  { %4639 = vtanh.f32 %v5664_v16 }
 0xb4f   :  { %4641 = vtanh.f32 %v5667_v23 }
 0xb50   :  { %v1406_v29 = vpop.permute.xlu1 %1405 }
 0xb51   :  { %v5672_v31 = vadd.f32 %v1406_v29, %v1386_v28 }
 0xb53   :  { %4643 = vtanh.f32 %v5672_v31 }
 0xb54   :  { %v4640_v38 = vpop.eup %4639 }
 0xb55   :  { %v4642_v27 = vpop.eup %4641  ;;  %1459 = vrot.lane.b32.xlu0 %v4640_v38, %s5164_s3 }
 0xb56   :  { %1461 = vrot.lane.b32.xlu1 %v4642_v27, %s5164_s3 }
 0xb59   :  { %v4644_v18 = vpop.eup %4643 }
 0xb5a   :  { %1417 = vrot.lane.b32.xlu2 %v4644_v18, %s5164_s3 }
 0xbb3   :  { %v1416_v30 = vpop.permute.xlu1 %1415 }
 0xbb4   :  { %v5679_v45 = vmul.f32 %v1416_v30, %v5640_v8  ;;  %v1418_v32 = vpop.permute.xlu2 %1417 }
 0xbb5   :  { %v5682_v37 = vmul.f32 %v1418_v32, %v5642_v57 }
 0xbb6   :  { %v1489_v4 = vrot.slane %v5679_v45, 4 }
 0xbb7   :  { %v1490_v0 = vrot.slane %v5682_v37, 3 }
 0xbb9   :  { %v1491_v44 = vsel %vm476_vm2, %v1490_v0, %v1489_v4 }
 0xbba   :  { %1492 = vrot.lane.b32.xlu2 %v1491_v44, %s5165_s6 }
 0xbc7   :  { %v1460_v40 = vpop.permute.xlu0 %1459 }
 0xbc8   :  { %v1462_v43 = vpop.permute.xlu1 %1461  ;;  %v5688_v26 = vmul.f32 %v1460_v40, %v1362_v52 }
 0xbc9   :  { %v5690_v13 = vmul.f32 %v1462_v43, %v1377_v39 }
 0xbca   :  { %v1523_v8 = vrot.slane %v5688_v26, 3 }
 0xbcb   :  { %v1524_v60 = vrot.slane %v5690_v13, 2 }
 0xbcd   :  { %v1525_v57 = vsel %vm476_vm2, %v1524_v60, %v1523_v8 }
 0xbce   :  { %1526 = vrot.lane.b32.xlu0 %v1525_v57, %s5165_s6 }
 0xc14   :  { %v1493_v25 = vpop.permute.xlu2 %1492 }
 0xc15   :  { %4395 = vmatmul.msk.f32.vlgmr.msrb.gmra.mxu2 %vm244_vm3, %v1493_v25 }
 0xc40   :  { %v1527_v49 = vpop.permute.xlu0 %1526 }
 0xc41   :  { %4396 = vmatmul.msk.f32.vlgmr.msrb.gmra.mxu3 %vm244_vm3, %v1527_v49 }
 0xc98   :  { %v1513_v14 = vpop.f32.mrf.mxu2 }
 0xc99   :  { %v1517_v2 = vrot.slane %v1513_v14, 3  ;;  %v1518_v52 = vrot.slane %v1513_v14, 4 }
 0xc9b   :  { %v1521_v39 = vadd.f32 %v1517_v2, %v5350_v17  ;;  %v1522_v55 = vadd.f32 %v1518_v52, %v5354_v21 }
 0xc9d   :  { %v4397_v34 = vmul.f32 -1.442695, %v1521_v39  ;;  %v4398_v53 = vmul.f32 -1.442695, %v1522_v55 }
 0xc9f   :  { %4645 = vpow2.f32 %v4397_v34 }
 0xca0   :  { %4647 = vpow2.f32 %v4398_v53 }
 0xca5   :  { %v4646_v58 = vpop.eup %4645 }
 0xca6   :  { %v4648_v35 = vpop.eup %4647  ;;  %v1563_v1 = vadd.f32 1.0, %v4646_v58 }
 0xca7   :  { %v1564_v33 = vadd.f32 1.0, %v4648_v35 }
 0xca8   :  { %4649 = vrcp.f32 %v1563_v1  ;;  %v1576_v36 = vand.u32 2147483648, %v1563_v1  ;;  %v1574_v38 = vand.u32 2147483647, %v1563_v1  ;;  %vm1570_vm14 = vweird.f32 %v1563_v1 }
 0xca9   :  { %4651 = vrcp.f32 %v1564_v33  ;;  %v1591_v28 = vand.u32 2147483648, %v1564_v33  ;;  %v1589_v18 = vand.u32 2147483647, %v1564_v33  ;;  %vm1585_vm15 = vweird.f32 %v1564_v33 }
 0xcaa   :  { %v1577_v4 = vor.u32 1.1754944e-38, %v1576_v36  ;;  %vm1575_vm4 = vcmp.eq.f32.partialorder %v1574_v38, 8.507059e+37 }
 0xcab   :  { %v1592_v0 = vor.u32 1.1754944e-38, %v1591_v28  ;;  %vm1590_vm5 = vcmp.eq.f32.partialorder %v1589_v18, 8.507059e+37 }
 0xcae   :  { %v4650_v10 = vpop.eup %4649 }
 0xcaf   :  { %v4652_v56 = vpop.eup %4651  ;;  %v1566_v61 = vmul.f32 %v4650_v10, %v1563_v1  ;;  %vm1571_vm12 = vweird.f32 %v4650_v10 }
 0xcb0   :  { %v1581_v62 = vmul.f32 %v4652_v56, %v1564_v33  ;;  %vm1586_vm13 = vweird.f32 %v4652_v56  ;;  %vm1572_vm0 = vmor %vm1570_vm14, %vm1571_vm12 }
 0xcb1   :  { %v1567_v63 = vsub.f32 1.0, %v1566_v61  ;;  %vm1587_vm1 = vmor %vm1585_vm15, %vm1586_vm13 }
 0xcb2   :  { %v1582_v5 = vsub.f32 1.0, %v1581_v62 }
 0xcb3   :  { %v1568_v29 = vmul.f32 %v4650_v10, %v1567_v63 }
 0xcb4   :  { %v1583_v27 = vmul.f32 %v4652_v56, %v1582_v5 }
 0xcb5   :  { %v1569_v30 = vadd.f32 %v4650_v10, %v1568_v29 }
 0xcb6   :  { %v1584_v32 = vadd.f32 %v4652_v56, %v1583_v27 }
 0xcb7   :  { %v1573_v44 = vsel %vm1572_vm0, %v4650_v10, %v1569_v30 }
 0xcb8   :  { %v1588_v40 = vsel %vm1587_vm1, %v4652_v56, %v1584_v32  ;;  %v5700_v43 = vsel %vm1575_vm4, %v1577_v4, %v1573_v44 }
 0xcb9   :  { %v5702_v8 = vsel %vm1590_vm5, %v1592_v0, %v1588_v40  ;;  %v1641_v60 = vmul.f32 2.0, %v5700_v43 }
 0xcba   :  { %v1642_v57 = vmul.f32 2.0, %v5702_v8 }
 0xcbb   :  { %v4401_v25 = vadd.f32 -1.0, %v1641_v60 }
 0xcbc   :  { %v4402_v49 = vadd.f32 -1.0, %v1642_v57 }
 0xcbd   :  { %1647 = vrot.lane.b32.xlu1 %v4401_v25, %s5164_s3 }
 0xcbe   :  { %1649 = vrot.lane.b32.xlu2 %v4402_v49, %s5164_s3 }
 0xcc4   :  { %v1547_v14 = vpop.f32.mrf.mxu3 }
 0xcc5   :  { %v1551_v2 = vrot.slane %v1547_v14, 6  ;;  %v1552_v52 = vrot.slane %v1547_v14, 7 }
 0xcc7   :  { %v1555_v39 = vadd.f32 %v1551_v2, %v5352_v20  ;;  %v1556_v55 = vadd.f32 %v1552_v52, %v5356_v22 }
 0xcc9   :  { %v4399_v34 = vmul.f32 -1.442695, %v1555_v39  ;;  %v4400_v53 = vmul.f32 -1.442695, %v1556_v55 }
 0xccb   :  { %4653 = vpow2.f32 %v4399_v34 }
 0xccc   :  { %4655 = vpow2.f32 %v4400_v53 }
 0xcd1   :  { %v4654_v58 = vpop.eup %4653 }
 0xcd2   :  { %v4656_v35 = vpop.eup %4655  ;;  %v1601_v1 = vadd.f32 1.0, %v4654_v58 }
 0xcd3   :  { %v1602_v33 = vadd.f32 1.0, %v4656_v35 }
 0xcd4   :  { %4657 = vrcp.f32 %v1601_v1  ;;  %v1614_v5 = vand.u32 2147483648, %v1601_v1  ;;  %v1612_v29 = vand.u32 2147483647, %v1601_v1  ;;  %vm1608_vm8 = vweird.f32 %v1601_v1 }
 0xcd5   :  { %4659 = vrcp.f32 %v1602_v33  ;;  %v1629_v38 = vand.u32 2147483648, %v1602_v33  ;;  %v1627_v18 = vand.u32 2147483647, %v1602_v33  ;;  %vm1623_vm10 = vweird.f32 %v1602_v33 }
 0xcd6   :  { %v1615_v32 = vor.u32 1.1754944e-38, %v1614_v5  ;;  %vm1613_vm11 = vcmp.eq.f32.partialorder %v1612_v29, 8.507059e+37 }
 0xcd7   :  { %v1630_v44 = vor.u32 1.1754944e-38, %v1629_v38  ;;  %vm1628_vm13 = vcmp.eq.f32.partialorder %v1627_v18, 8.507059e+37 }
 0xcda   :  { %v4658_v10 = vpop.eup %4657 }
 0xcdb   :  { %v4660_v56 = vpop.eup %4659  ;;  %v1604_v61 = vmul.f32 %v4658_v10, %v1601_v1  ;;  %vm1609_vm6 = vweird.f32 %v4658_v10 }
 0xcdc   :  { %v1619_v62 = vmul.f32 %v4660_v56, %v1602_v33  ;;  %vm1624_vm7 = vweird.f32 %v4660_v56  ;;  %vm1610_vm9 = vmor %vm1608_vm8, %vm1609_vm6  ;;  %v1635_v33 = vrot.slane %v5658_v59, 7  ;;  %v1680_v59 = vrot.slane %v5667_v23, 1 }
 0xcdd   :  { %v1605_v63 = vsub.f32 1.0, %v1604_v61  ;;  %vm1625_vm12 = vmor %vm1623_vm10, %vm1624_vm7 }
 0xcde   :  { %v1620_v36 = vsub.f32 1.0, %v1619_v62 }
 0xcdf   :  { %v1606_v28 = vmul.f32 %v4658_v10, %v1605_v63 }
 0xce0   :  { %v1621_v27 = vmul.f32 %v4660_v56, %v1620_v36 }
 0xce1   :  { %v1607_v30 = vadd.f32 %v4658_v10, %v1606_v28 }
 0xce2   :  { %v1622_v4 = vadd.f32 %v4660_v56, %v1621_v27 }
 0xce3   :  { %v1611_v0 = vsel %vm1610_vm9, %v4658_v10, %v1607_v30  ;;  %v1636_v10 = vrot.slane %v5672_v31, 7  ;;  %v1679_v30 = vrot.slane %v5664_v16, 1 }
 0xce4   :  { %v1616_v40 = vsel %vm1613_vm11, %v1615_v32, %v1611_v0  ;;  %v1626_v60 = vsel %vm1625_vm12, %v4660_v56, %v1622_v4  ;;  %v1639_v56 = vmul.f32 %v1635_v33, %v5700_v43 }
 0xce5   :  { %v1685_v57 = vmul.f32 2.0, %v1616_v40  ;;  %v1631_v25 = vsel %vm1628_vm13, %v1630_v44, %v1626_v60  ;;  %v1640_v61 = vmul.f32 %v1636_v10, %v5702_v8  ;;  %v1683_v32 = vmul.f32 %v1679_v30, %v1616_v40 }
 0xce6   :  { %v1686_v49 = vmul.f32 2.0, %v1631_v25  ;;  %v1684_v31 = vmul.f32 %v1680_v59, %v1631_v25 }
 0xce7   :  { %v4403_v14 = vadd.f32 -1.0, %v1685_v57 }
 0xce8   :  { %v4404_v2 = vadd.f32 -1.0, %v1686_v49 }
 0xce9   :  { %1691 = vrot.lane.b32.xlu0 %v4403_v14, %s5164_s3 }
 0xcea   :  { %1693 = vrot.lane.b32.xlu1 %v4404_v2, %s5164_s3 }
 0xd18   :  { %v1650_v52 = vpop.permute.xlu2 %1649 }
 0xd19   :  { %v1654_v39 = vmul.f32 %v1650_v52, %v5702_v8 }
 0xd1b   :  { %1659 = vrot.lane.b32.xlu0 %v1654_v39, %s5165_s6 }
 0xd2f   :  { %v1648_v55 = vpop.permute.xlu1 %1647 }
 0xd30   :  { %v1653_v34 = vmul.f32 %v1648_v55, %v5700_v43 }
 0xd32   :  { %1657 = vrot.lane.b32.xlu2 %v1653_v34, %s5165_s6 }
 0xd5b   :  { %v1692_v53 = vpop.permute.xlu0 %1691 }
 0xd5c   :  { %v1697_v58 = vmul.f32 %v1692_v53, %v1616_v40  ;;  %v1694_v35 = vpop.permute.xlu1 %1693 }
 0xd5d   :  { %v1698_v1 = vmul.f32 %v1694_v35, %v1631_v25 }
 0xd5e   :  { %1701 = vrot.lane.b32.xlu1 %v1697_v58, %s5165_s6 }
 0xd5f   :  { %1703 = vrot.lane.b32.xlu2 %v1698_v1, %s5165_s6 }
 0xd8c   :  { %v1658_v62 = vpop.permute.xlu2 %1657 }
 0xd8d   :  { %v1660_v63 = vpop.permute.xlu0 %1659  ;;  %v5722_v5 = vadd.f32 %v1658_v62, %v1639_v56 }
 0xd8e   :  { %v5724_v36 = vadd.f32 %v1660_v63, %v1640_v61 }
 0xd8f   :  { %4661 = vtanh.f32 %v5722_v5 }
 0xd90   :  { %4663 = vtanh.f32 %v5724_v36 }
 0xd95   :  { %v4662_v28 = vpop.eup %4661 }
 0xd96   :  { %v4664_v29 = vpop.eup %4663  ;;  %1669 = vrot.lane.b32.xlu0 %v4662_v28, %s5164_s3 }
 0xd97   :  { %1671 = vrot.lane.b32.xlu1 %v4664_v29, %s5164_s3 }
 0xdb9   :  { %v1704_v38 = vpop.permute.xlu2 %1703 }
 0xdba   :  { %v5731_v27 = vadd.f32 %v1704_v38, %v1684_v31 }
 0xdbc   :  { %4665 = vtanh.f32 %v5731_v27 }
 0xdc2   :  { %v4666_v18 = vpop.eup %4665 }
 0xdc3   :  { %1715 = vrot.lane.b32.xlu0 %v4666_v18, %s5164_s3 }
 0xdd0   :  { %v1702_v4 = vpop.permute.xlu1 %1701 }
 0xdd1   :  { %v5736_v0 = vadd.f32 %v1702_v4, %v1683_v32 }
 0xdd3   :  { %4667 = vtanh.f32 %v5736_v0 }
 0xdd9   :  { %v4668_v44 = vpop.eup %4667 }
 0xdda   :  { %1713 = vrot.lane.b32.xlu2 %v4668_v44, %s5164_s3 }
 0xe08   :  { %v1670_v23 = vpop.permute.xlu0 %1669 }
 0xe09   :  { %v1672_v60 = vpop.permute.xlu1 %1671  ;;  %v5741_v57 = vmul.f32 %v1670_v23, %v5700_v43 }
 0xe0a   :  { %v5744_v49 = vmul.f32 %v1672_v60, %v5702_v8 }
 0xe0b   :  { %v1743_v14 = vrot.slane %v5741_v57, 5 }
 0xe0c   :  { %v1744_v16 = vrot.slane %v5744_v49, 4 }
 0xe0e   :  { %v1745_v2 = vsel %vm476_vm2, %v1744_v16, %v1743_v14 }
 0xe0f   :  { %1746 = vrot.lane.b32.xlu1 %v1745_v2, %s5165_s6 }
 0xe34   :  { %v1714_v52 = vpop.permute.xlu2 %1713 }
 0xe35   :  { %v5750_v39 = vmul.f32 %v1714_v52, %v1616_v40  ;;  %v1716_v55 = vpop.permute.xlu0 %1715 }
 0xe36   :  { %v5752_v34 = vmul.f32 %v1716_v55, %v1631_v25 }
 0xe37   :  { %v1777_v43 = vrot.slane %v5750_v39, 2 }
 0xe38   :  { %v1778_v53 = vrot.slane %v5752_v34, 1 }
 0xe3a   :  { %v1779_v8 = vsel %vm476_vm2, %v1778_v53, %v1777_v43 }
 0xe3b   :  { %1780 = vrot.lane.b32.xlu2 %v1779_v8, %s5165_s6 }
 0xe81   :  { %v1747_v58 = vpop.permute.xlu1 %1746 }
 0xe82   :  { %4405 = vmatmul.msk.f32.vlgmr.msrb.gmra.mxu0 %vm244_vm3, %v1747_v58 }
 0xe95   :  { %v1781_v35 = vpop.permute.xlu2 %1780 }
 0xe96   :  { %4406 = vmatmul.msk.f32.vlgmr.msrb.gmra.mxu1 %vm244_vm3, %v1781_v35 }
 0xeff   :  { %v1767_v1 = vpop.f32.mrf.mxu0 }
 0xf00   :  { %v1771_v40 = vrot.slane %v1767_v1, 2  ;;  %v1772_v33 = vrot.slane %v1767_v1, 3 }
 0xf02   :  { %v1775_v25 = vadd.f32 %v1771_v40, %v5350_v17  ;;  %v1776_v10 = vadd.f32 %v1772_v33, %v5354_v21 }
 0xf04   :  { %v4407_v56 = vmul.f32 -1.442695, %v1775_v25  ;;  %v4408_v61 = vmul.f32 -1.442695, %v1776_v10 }
 0xf06   :  { %4669 = vpow2.f32 %v4407_v56 }
 0xf07   :  { %4671 = vpow2.f32 %v4408_v61 }
 0xf0c   :  { %v4670_v62 = vpop.eup %4669 }
 0xf0d   :  { %v4672_v63 = vpop.eup %4671  ;;  %v1816_v28 = vadd.f32 1.0, %v4670_v62 }
 0xf0e   :  { %v1817_v29 = vadd.f32 1.0, %v4672_v63 }
 0xf0f   :  { %4673 = vrcp.f32 %v1816_v28  ;;  %v1827_v2 = vand.u32 2147483647, %v1816_v28  ;;  %v1829_v52 = vand.u32 2147483648, %v1816_v28  ;;  %vm1823_vm0 = vweird.f32 %v1816_v28 }
 0xf10   :  { %4675 = vrcp.f32 %v1817_v29  ;;  %v1844_v55 = vand.u32 2147483648, %v1817_v29  ;;  %v1842_v8 = vand.u32 2147483647, %v1817_v29  ;;  %vm1838_vm1 = vweird.f32 %v1817_v29 }
 0xf11   :  { %v1830_v1 = vor.u32 1.1754944e-38, %v1829_v52  ;;  %vm1828_vm6 = vcmp.eq.f32.partialorder %v1827_v2, 8.507059e+37 }
 0xf12   :  { %v1845_v33 = vor.u32 1.1754944e-38, %v1844_v55  ;;  %vm1843_vm7 = vcmp.eq.f32.partialorder %v1842_v8, 8.507059e+37 }
 0xf13   :  { %v1801_v59 = vpop.f32.mrf.mxu1 }
 0xf14   :  { %v1805_v31 = vrot.slane %v1801_v59, 7  ;;  %v1809_v38 = vadd.f32 %v1801_v59, %v5356_v22 }
 0xf15   :  { %v4674_v18 = vpop.eup %4673 }
 0xf16   :  { %v4676_v30 = vpop.eup %4675  ;;  %v1819_v32 = vmul.f32 %v4674_v18, %v1816_v28  ;;  %v1808_v4 = vadd.f32 %v1805_v31, %v5352_v20  ;;  %v4410_v44 = vmul.f32 -1.442695, %v1809_v38  ;;  %vm1824_vm14 = vweird.f32 %v4674_v18 }
 0xf17   :  { %v1834_v23 = vmul.f32 %v4676_v30, %v1817_v29  ;;  %vm1839_vm15 = vweird.f32 %v4676_v30  ;;  %vm1825_vm4 = vmor %vm1823_vm0, %vm1824_vm14 }
 0xf18   :  { %v4409_v60 = vmul.f32 -1.442695, %v1808_v4  ;;  %4677 = vpow2.f32 %v4410_v44  ;;  %v1820_v14 = vsub.f32 1.0, %v1819_v32  ;;  %vm1840_vm5 = vmor %vm1838_vm1, %vm1839_vm15 }
 0xf19   :  { %v1835_v16 = vsub.f32 1.0, %v1834_v23 }
 0xf1a   :  { %4679 = vpow2.f32 %v4409_v60  ;;  %v1821_v43 = vmul.f32 %v4674_v18, %v1820_v14 }
 0xf1b   :  { %v1836_v53 = vmul.f32 %v4676_v30, %v1835_v16 }
 0xf1c   :  { %v1822_v58 = vadd.f32 %v4674_v18, %v1821_v43 }
 0xf1d   :  { %v1837_v35 = vadd.f32 %v4676_v30, %v1836_v53 }
 0xf1e   :  { %v4678_v40 = vpop.eup %4677  ;;  %v1826_v25 = vsel %vm1825_vm4, %v4674_v18, %v1822_v58 }
 0xf1f   :  { %v1855_v10 = vadd.f32 1.0, %v4678_v40  ;;  %v1841_v56 = vsel %vm1840_vm5, %v4676_v30, %v1837_v35  ;;  %v5764_v61 = vsel %vm1828_vm6, %v1830_v1, %v1826_v25 }
 0xf20   :  { %v4680_v62 = vpop.eup %4679  ;;  %v5766_v63 = vsel %vm1843_vm7, %v1845_v33, %v1841_v56  ;;  %v1894_v59 = vmul.f32 2.0, %v5764_v61 }
 0xf21   :  { %v1854_v28 = vadd.f32 1.0, %v4680_v62  ;;  %4681 = vrcp.f32 %v1855_v10  ;;  %v1895_v29 = vmul.f32 2.0, %v5766_v63  ;;  %v1882_v23 = vand.u32 2147483648, %v1855_v10 }
 0xf22   :  { %v4411_v31 = vadd.f32 -1.0, %v1894_v59  ;;  %v1880_v14 = vand.u32 2147483647, %v1855_v10  ;;  %vm1876_vm9 = vweird.f32 %v1855_v10 }
 0xf23   :  { %4683 = vrcp.f32 %v1854_v28  ;;  %v4412_v38 = vadd.f32 -1.0, %v1895_v29  ;;  %v1867_v2 = vand.u32 2147483648, %v1854_v28  ;;  %v1865_v43 = vand.u32 2147483647, %v1854_v28 }
 0xf24   :  { %1900 = vrot.lane.b32.xlu0 %v4411_v31, %s5164_s3  ;;  %v1883_v53 = vor.u32 1.1754944e-38, %v1882_v23  ;;  %vm1881_vm12 = vcmp.eq.f32.partialorder %v1880_v14, 8.507059e+37  ;;  %vm1861_vm13 = vweird.f32 %v1854_v28 }
 0xf25   :  { %1902 = vrot.lane.b32.xlu1 %v4412_v38, %s5164_s3  ;;  %v1868_v1 = vor.u32 1.1754944e-38, %v1867_v2  ;;  %vm1866_vm15 = vcmp.eq.f32.partialorder %v1865_v43, 8.507059e+37 }
 0xf27   :  { %v4682_v18 = vpop.eup %4681 }
 0xf28   :  { %v1872_v30 = vmul.f32 %v4682_v18, %v1855_v10  ;;  %vm1877_vm8 = vweird.f32 %v4682_v18 }
 0xf29   :  { %v4684_v32 = vpop.eup %4683  ;;  %vm1878_vm11 = vmor %vm1876_vm9, %vm1877_vm8 }
 0xf2a   :  { %v1857_v4 = vmul.f32 %v4684_v32, %v1854_v28  ;;  %v1873_v44 = vsub.f32 1.0, %v1872_v30  ;;  %vm1862_vm10 = vweird.f32 %v4684_v32 }
 0xf2b   :  { %vm1863_vm14 = vmor %vm1861_vm13, %vm1862_vm10 }
 0xf2c   :  { %v1874_v60 = vmul.f32 %v4682_v18, %v1873_v44  ;;  %v1858_v16 = vsub.f32 1.0, %v1857_v4  ;;  %v1889_v4 = vrot.slane %v5724_v36, 7 }
 0xf2e   :  { %v1875_v52 = vadd.f32 %v4682_v18, %v1874_v60  ;;  %v1859_v55 = vmul.f32 %v4684_v32, %v1858_v16  ;;  %v1893_v44 = vmul.f32 %v1889_v4, %v5766_v63  ;;  %v1932_v16 = vrot.slane %v5736_v0, 1 }
 0xf2f   :  { %v1933_v0 = vrot.slane %v5731_v27, 1 }
 0xf30   :  { %v1879_v8 = vsel %vm1878_vm11, %v4682_v18, %v1875_v52  ;;  %v1860_v58 = vadd.f32 %v4684_v32, %v1859_v55  ;;  %v1888_v55 = vrot.slane %v5722_v5, 7 }
 0xf31   :  { %v5772_v35 = vsel %vm1881_vm12, %v1883_v53, %v1879_v8 }
 0xf32   :  { %v1939_v40 = vmul.f32 2.0, %v5772_v35  ;;  %v1864_v33 = vsel %vm1863_vm14, %v4684_v32, %v1860_v58  ;;  %v1892_v36 = vmul.f32 %v1888_v55, %v5764_v61  ;;  %v1937_v5 = vmul.f32 %v1933_v0, %v5772_v35 }
 0xf33   :  { %v1869_v25 = vsel %vm1866_vm15, %v1868_v1, %v1864_v33 }
 0xf34   :  { %v4414_v10 = vadd.f32 -1.0, %v1939_v40  ;;  %v1938_v56 = vmul.f32 2.0, %v1869_v25  ;;  %v1936_v2 = vmul.f32 %v1932_v16, %v1869_v25 }
 0xf36   :  { %1946 = vrot.lane.b32.xlu0 %v4414_v10, %s5164_s3  ;;  %v4413_v62 = vadd.f32 -1.0, %v1938_v56 }
 0xf38   :  { %1944 = vrot.lane.b32.xlu2 %v4413_v62, %s5164_s3 }
 0xf92   :  { %v1945_v59 = vpop.permute.xlu2 %1944 }
 0xf93   :  { %v1950_v29 = vmul.f32 %v1945_v59, %v1869_v25 }
 0xf95   :  { %1954 = vrot.lane.b32.xlu0 %v1950_v29, %s5165_s6 }
 0xf96   :  { %v1901_v28 = vpop.permute.xlu0 %1900 }
 0xf97   :  { %v1903_v31 = vpop.permute.xlu1 %1902  ;;  %v1906_v38 = vmul.f32 %v1901_v28, %v5764_v61 }
 0xf98   :  { %v1907_v18 = vmul.f32 %v1903_v31, %v5766_v63 }
 0xf99   :  { %1910 = vrot.lane.b32.xlu1 %v1906_v38, %s5165_s6 }
 0xf9a   :  { %1912 = vrot.lane.b32.xlu2 %v1907_v18, %s5165_s6 }
 0xfa8   :  { %v1947_v30 = vpop.permute.xlu0 %1946 }
 0xfa9   :  { %v1951_v32 = vmul.f32 %v1947_v30, %v5772_v35 }
 0xfab   :  { %1956 = vrot.lane.b32.xlu1 %v1951_v32, %s5165_s6 }
 0xff4   :  { %v1913_v23 = vpop.permute.xlu2 %1912 }
 0xff5   :  { %v5786_v60 = vadd.f32 %v1913_v23, %v1893_v44 }
 0xff7   :  { %4685 = vtanh.f32 %v5786_v60 }
 0xffd   :  { %v4686_v14 = vpop.eup %4685 }
 0xffe   :  { %1924 = vrot.lane.b32.xlu0 %v4686_v14, %s5164_s3 }
0x1007   :  { %v1955_v52 = vpop.permute.xlu0 %1954 }
0x1008   :  { %v5792_v43 = vadd.f32 %v1955_v52, %v1936_v2 }
0x100a   :  { %4687 = vtanh.f32 %v5792_v43 }
0x100b   :  { %v1911_v53 = vpop.permute.xlu1 %1910 }
0x100c   :  { %v5796_v8 = vadd.f32 %v1911_v53, %v1892_v36 }
0x100e   :  { %4689 = vtanh.f32 %v5796_v8 }
0x1010   :  { %v4688_v58 = vpop.eup %4687 }
0x1011   :  { %1966 = vrot.lane.b32.xlu1 %v4688_v58, %s5164_s3 }
0x1014   :  { %v4690_v1 = vpop.eup %4689 }
0x1015   :  { %1922 = vrot.lane.b32.xlu2 %v4690_v1, %s5164_s3 }
0x101d   :  { %v1957_v40 = vpop.permute.xlu1 %1956 }
0x101e   :  { %v5803_v33 = vadd.f32 %v1957_v40, %v1937_v5 }
0x1020   :  { %4691 = vtanh.f32 %v5803_v33 }
0x1026   :  { %v4692_v10 = vpop.eup %4691 }
0x1027   :  { %1968 = vrot.lane.b32.xlu2 %v4692_v10, %s5164_s3 }
0x106f   :  { %v1923_v56 = vpop.permute.xlu2 %1922 }
0x1070   :  { %v5808_v62 = vmul.f32 %v1923_v56, %v5764_v61  ;;  %v1925_v59 = vpop.permute.xlu0 %1924 }
0x1071   :  { %v5811_v29 = vmul.f32 %v1925_v59, %v5766_v63 }
0x1072   :  { %v1996_v27 = vrot.slane %v5808_v62, 6 }
0x1073   :  { %v1997_v28 = vrot.slane %v5811_v29, 5 }
0x1075   :  { %v1998_v31 = vsel %vm476_vm2, %v1997_v28, %v1996_v27 }
0x1076   :  { %1999 = vrot.lane.b32.xlu0 %v1998_v31, %s5165_s6 }
0x1081   :  { %v1969_v38 = vpop.permute.xlu2 %1968 }
0x1082   :  { %v5820_v32 = vmul.f32 %v1969_v38, %v5772_v35 }
0x1083   :  { %v1967_v18 = vpop.permute.xlu1 %1966 }
0x1084   :  { %v5817_v30 = vmul.f32 %v1967_v18, %v1869_v25 }
0x1086   :  { %v2030_v61 = vrot.slane %v5817_v30, 1 }
0x1088   :  { %v2031_v63 = vsel %vm476_vm2, %v5820_v32, %v2030_v61 }
0x1089   :  { %2032 = vrot.lane.b32.xlu1 %v2031_v63, %s5165_s6 }
0x10e8   :  { %v2000_v4 = vpop.permute.xlu0 %1999 }
0x10e9   :  { %4415 = vmatmul.msk.f32.vlgmr.msra.gmra.mxu2 %vm244_vm3, %v2000_v4 }
0x10fb   :  { %v2033_v44 = vpop.permute.xlu1 %2032 }
0x10fc   :  { %4416 = vmatmul.msk.f32.vlgmr.msra.gmra.mxu3 %vm244_vm3, %v2033_v44 }
0x116c   :  { %v2020_v23 = vpop.f32.mrf.mxu2 }
0x116d   :  { %v2024_v14 = vrot.slane %v2020_v23, 1  ;;  %v2025_v25 = vrot.slane %v2020_v23, 2 }
0x116f   :  { %v2028_v16 = vadd.f32 %v2024_v14, %v5350_v17  ;;  %v2029_v35 = vadd.f32 %v2025_v25, %v5354_v21 }
0x1171   :  { %v4417_v2 = vmul.f32 -1.442695, %v2028_v16  ;;  %v4418_v52 = vmul.f32 -1.442695, %v2029_v35 }
0x1173   :  { %4693 = vpow2.f32 %v4417_v2 }
0x1174   :  { %4695 = vpow2.f32 %v4418_v52 }
0x1179   :  { %v4694_v55 = vpop.eup %4693 }
0x117a   :  { %v4696_v36 = vpop.eup %4695  ;;  %v2068_v53 = vadd.f32 1.0, %v4694_v55 }
0x117b   :  { %v2069_v58 = vadd.f32 1.0, %v4696_v36 }
0x117c   :  { %4697 = vrcp.f32 %v2068_v53  ;;  %v2081_v38 = vand.u32 2147483648, %v2068_v53  ;;  %v2079_v63 = vand.u32 2147483647, %v2068_v53  ;;  %vm2075_vm4 = vweird.f32 %v2068_v53 }
0x117d   :  { %4699 = vrcp.f32 %v2069_v58  ;;  %v2096_v18 = vand.u32 2147483648, %v2069_v58  ;;  %vm2090_vm5 = vweird.f32 %v2069_v58 }
0x117e   :  { %v2082_v14 = vor.u32 1.1754944e-38, %v2081_v38  ;;  %vm2080_vm8 = vcmp.eq.f32.partialorder %v2079_v63, 8.507059e+37 }
0x117f   :  { %v2053_v1 = vpop.f32.mrf.mxu3  ;;  %v2097_v16 = vor.u32 1.1754944e-38, %v2096_v18 }
0x1180   :  { %v2057_v0 = vrot.slane %v2053_v1, 1  ;;  %v2060_v5 = vadd.f32 %v2053_v1, %v5352_v20  ;;  %v2094_v20 = vand.u32 2147483647, %v2069_v58 }
0x1182   :  { %v4698_v40 = vpop.eup %4697  ;;  %v2061_v10 = vadd.f32 %v2057_v0, %v5356_v22  ;;  %v4419_v17 = vmul.f32 -1.442695, %v2060_v5  ;;  %vm2095_vm9 = vcmp.eq.f32.partialorder %v2094_v20, 8.507059e+37 }
0x1183   :  { %v4700_v56 = vpop.eup %4699  ;;  %v2071_v21 = vmul.f32 %v4698_v40, %v2068_v53  ;;  %vm2076_vm0 = vweird.f32 %v4698_v40 }
0x1184   :  { %v2086_v59 = vmul.f32 %v4700_v56, %v2069_v58  ;;  %4701 = vpow2.f32 %v4419_v17  ;;  %v4420_v27 = vmul.f32 -1.442695, %v2061_v10  ;;  %vm2091_vm1 = vweird.f32 %v4700_v56  ;;  %vm2077_vm6 = vmor %vm2075_vm4, %vm2076_vm0 }
0x1185   :  { %v2072_v28 = vsub.f32 1.0, %v2071_v21  ;;  %vm2092_vm7 = vmor %vm2090_vm5, %vm2091_vm1  ;;  %vm461_vm4 = vcmask 253952   ;;  %vm6703_vm5 = vcmask 522502  }
0x1186   :  { %4703 = vpow2.f32 %v4420_v27  ;;  %v2087_v31 = vsub.f32 1.0, %v2086_v59 }
0x1187   :  { %v2073_v61 = vmul.f32 %v4698_v40, %v2072_v28 }
0x1188   :  { %v2088_v4 = vmul.f32 %v4700_v56, %v2087_v31 }
0x1189   :  { %v2074_v44 = vadd.f32 %v4698_v40, %v2073_v61 }
0x118a   :  { %v4702_v22 = vpop.eup %4701  ;;  %v2089_v23 = vadd.f32 %v4700_v56, %v2088_v4 }
0x118b   :  { %v2106_v25 = vadd.f32 1.0, %v4702_v22  ;;  %v2078_v35 = vsel %vm2077_vm6, %v4698_v40, %v2074_v44  ;;  %vm6700_vm6 = vcmask 257027  }
0x118c   :  { %v4704_v2 = vpop.eup %4703  ;;  %v2093_v52 = vsel %vm2092_vm7, %v4700_v56, %v2089_v23  ;;  %v5832_v55 = vsel %vm2080_vm8, %v2082_v14, %v2078_v35  ;;  %vm472_vm7 = vcmask 523527   ;;  %vm6698_vm8 = vcmask 519427  }
0x118d   :  { %v2107_v36 = vadd.f32 1.0, %v4704_v2  ;;  %4705 = vrcp.f32 %v2106_v25  ;;  %v5834_v1 = vsel %vm2095_vm9, %v2097_v16, %v2093_v52  ;;  %v2146_v53 = vmul.f32 2.0, %v5832_v55 }
0x118e   :  { %v2147_v58 = vmul.f32 2.0, %v5834_v1  ;;  %v2119_v59 = vand.u32 2147483648, %v2106_v25  ;;  %v2117_v28 = vand.u32 2147483647, %v2106_v25  ;;  %vm2113_vm11 = vweird.f32 %v2106_v25 }
0x118f   :  { %4707 = vrcp.f32 %v2107_v36  ;;  %v4421_v0 = vadd.f32 -1.0, %v2146_v53  ;;  %v2134_v38 = vand.u32 2147483648, %v2107_v36  ;;  %v2132_v63 = vand.u32 2147483647, %v2107_v36 }
0x1190   :  { %v4422_v5 = vadd.f32 -1.0, %v2147_v58  ;;  %v2120_v4 = vor.u32 1.1754944e-38, %v2119_v59  ;;  %vm2118_vm14 = vcmp.eq.f32.partialorder %v2117_v28, 8.507059e+37  ;;  %vm2128_vm15 = vweird.f32 %v2107_v36 }
0x1191   :  { %2152 = vrot.lane.b32.xlu2 %v4421_v0, %s5164_s3  ;;  %v2135_v23 = vor.u32 1.1754944e-38, %v2134_v38  ;;  %vm2133_vm1 = vcmp.eq.f32.partialorder %v2132_v63, 8.507059e+37  ;;  %vm6701_vm9 = vcmask 256002  }
0x1192   :  { %2154 = vrot.lane.b32.xlu1 %v4422_v5, %s5164_s3 }
0x1193   :  { %v4706_v40 = vpop.eup %4705 }
0x1194   :  { %v2109_v10 = vmul.f32 %v4706_v40, %v2106_v25  ;;  %vm2114_vm10 = vweird.f32 %v4706_v40 }
0x1195   :  { %v4708_v17 = vpop.eup %4707  ;;  %vm2115_vm13 = vmor %vm2113_vm11, %vm2114_vm10  ;;  %vm6699_vm10 = vcmask 520452   ;;  %vm6704_vm11 = vcmask 254977  }
0x1196   :  { %v2110_v56 = vsub.f32 1.0, %v2109_v10  ;;  %v2124_v21 = vmul.f32 %v4708_v17, %v2107_v36  ;;  %vm2129_vm12 = vweird.f32 %v4708_v17 }
0x1197   :  { %vm2130_vm0 = vmor %vm2128_vm15, %vm2129_vm12  ;;  %vm6702_vm12 = vcmask 521477   ;;  %vm6697_vm15 = vcmask 258052  }
0x1198   :  { %v2111_v27 = vmul.f32 %v4706_v40, %v2110_v56  ;;  %v2125_v31 = vsub.f32 1.0, %v2124_v21 }
0x119a   :  { %v2112_v18 = vadd.f32 %v4706_v40, %v2111_v27  ;;  %v2126_v61 = vmul.f32 %v4708_v17, %v2125_v31 }
0x119c   :  { %v2116_v20 = vsel %vm2115_vm13, %v4706_v40, %v2112_v18  ;;  %v2127_v44 = vadd.f32 %v4708_v17, %v2126_v61  ;;  %vm6693_vm13 = vcmask 259077  }
0x119d   :  { %v5840_v22 = vsel %vm2118_vm14, %v2120_v4, %v2116_v20  ;;  %vm6696_vm14 = vcmask 517377  }
0x119e   :  { %v2190_v14 = vmul.f32 2.0, %v5840_v22  ;;  %v2131_v16 = vsel %vm2130_vm0, %v4708_v17, %v2127_v44  ;;  %vm6692_vm0 = vcmask 518402  }
0x119f   :  { %v5843_v25 = vsel %vm2133_vm1, %v2135_v23, %v2131_v16  ;;  %vm6691_vm1 = vcmask 260102  }
0x11a0   :  { %v4423_v35 = vadd.f32 -1.0, %v2190_v14  ;;  %v2191_v2 = vmul.f32 2.0, %v5843_v25 }
0x11a2   :  { %2196 = vrot.lane.b32.xlu0 %v4423_v35, %s5164_s3  ;;  %v4424_v52 = vadd.f32 -1.0, %v2191_v2 }
0x11a4   :  { %2198 = vrot.lane.b32.xlu2 %v4424_v52, %s5164_s3 }
0x11eb   :  { %v2153_v53 = vpop.permute.xlu2 %2152 }
0x11ec   :  { %v2158_v36 = vmul.f32 %v2153_v53, %v5832_v55  ;;  %v2257_v53 = vld [vmem:[#allocation12 + $0x38] sm:$0xff] }
0x11ed   :  { %2277 = vmatpush.msra.mxu0 %v2257_v53 }
0x11ee   :  { %2162 = vrot.lane.b32.xlu0 %v2158_v36, %s5165_s6  ;;  %v2299_v36 = vld [vmem:[#allocation16 + $0x38] sm:$0xff] }
0x11ef   :  { %2312 = vmatpush.msra.mxu1 %v2299_v36 }
0x11fe   :  { %v2199_v58 = vpop.permute.xlu2 %2198 }
0x11ff   :  { %v2203_v0 = vmul.f32 %v2199_v58, %v5843_v25  ;;  %v2256_v58 = vld [vmem:[#allocation12 + $0x30] sm:$0xff] }
0x1200   :  { %2278 = vmatpush.msra.mxu0 %v2256_v58 }
0x1201   :  { %2208 = vrot.lane.b32.xlu0 %v2203_v0, %s5165_s6  ;;  %v2298_v0 = vld [vmem:[#allocation16 + $0x30] sm:$0xff] }
0x1202   :  { %2313 = vmatpush.msra.mxu1 %v2298_v0 }
0x1204   :  { %v2155_v5 = vpop.permute.xlu1 %2154 }
0x1205   :  { %v2159_v40 = vmul.f32 %v2155_v5, %v5834_v1  ;;  %v5962_v5 = vld [vmem:[%s6688_s11 + $0x18] sm:$0xff] }
0x1206   :  { %2373 = vmatpush.msrb.mxu3 %v5962_v5 }
0x1207   :  { %2164 = vrot.lane.b32.xlu2 %v2159_v40, %s5165_s6  ;;  %v2255_v40 = vld [vmem:[#allocation12 + $0x28] sm:$0xff] }
0x1208   :  { %2279 = vmatpush.msra.mxu0 %v2255_v40 }
0x1209   :  { %466 = vrot.lane.b32.xlu0 %v5426_v24, %s5164_s3  ;;  %v2141_v24 = vrot.slane %v5786_v60, 7 }
0x120f   :  { %455 = vrot.lane.b32.xlu2 %v5418_v15, %s5165_s6  ;;  %v2140_v15 = vrot.slane %v5796_v8, 7 }
0x1211   :  { %961 = vrot.lane.b32.xlu0 %v5555_v6, %s5165_s6 }
0x1214   :  { %v2197_v10 = vpop.permute.xlu0 %2196 }
0x1215   :  { %v2202_v17 = vmul.f32 %v2197_v10, %v5840_v22  ;;  %v2297_v10 = vld [vmem:[#allocation16 + $0x28] sm:$0xff] }
0x1216   :  { %2314 = vmatpush.msra.mxu1 %v2297_v10 }
0x1217   :  { %719 = vrot.lane.b32.xlu2 %v5494_v46, %s5164_s3  ;;  %2206 = vrot.lane.b32.xlu1 %v2202_v17, %s5165_s6  ;;  %v2145_v46 = vmul.f32 %v2141_v24, %v5834_v1  ;;  %v5965_v17 = vld [vmem:[#allocation13 + $0x18] sm:$0xff]  ;;  %v5972_v24 = vld [vmem:[#allocation13 + $0x10] sm:$0xff] }
0x1218   :  { %2347 = vmatpush.msrb.mxu2 %v5965_v17 }
0x1219   :  { %1226 = vrot.lane.b32.xlu0 %v5626_v51, %s5164_s3 }
0x121a   :  { %2348 = vmatpush.msrb.mxu2 %v5972_v24 }
0x121f   :  { %1215 = vrot.lane.b32.xlu2 %v5617_v47, %s5165_s6  ;;  %708 = vrot.lane.b32.xlu1 %v5485_v41, %s5165_s6  ;;  %v2144_v41 = vmul.f32 %v2140_v15, %v5832_v55  ;;  %v5970_v15 = vld [vmem:[%s6688_s11 + $0x10] sm:$0xff] }
0x1220   :  { %2374 = vmatpush.msrb.mxu3 %v5970_v15 }
0x1221   :  { %1723 = vrot.lane.b32.xlu0 %v5741_v57, %s5165_s6 }
0x1227   :  { %1480 = vrot.lane.b32.xlu2 %v5688_v26, %s5164_s3  ;;  %972 = vrot.lane.b32.xlu1 %v5564_v3, %s5164_s3 }
0x1229   :  { %1987 = vrot.lane.b32.xlu0 %v5817_v30, %s5164_s3 }
0x122f   :  { %1469 = vrot.lane.b32.xlu1 %v5679_v45, %s5165_s6 }
0x1237   :  { %1734 = vrot.lane.b32.xlu1 %v5750_v39, %s5164_s3  ;;  %v2185_v39 = vrot.slane %v5803_v33, 1 }
0x1239   :  { %v2189_v8 = vmul.f32 %v2185_v39, %v5843_v25  ;;  %v5992_v39 = vld [vmem:[#allocation13] sm:$0xff] }
0x1260   :  { %v2163_v6 = vpop.permute.xlu0 %2162 }
0x1261   :  { %v2165_v47 = vpop.permute.xlu2 %2164  ;;  %v2168_v3 = vadd.f32 %v2163_v6, %v2144_v41  ;;  %v2254_v41 = vld [vmem:[#allocation12 + $0x20] sm:$0xff]  ;;  %v5979_v6 = vld [vmem:[%s6688_s11 + $0x8] sm:$0xff] }
0x1262   :  { %v2169_v51 = vadd.f32 %v2165_v47, %v2145_v46  ;;  %v2296_v46 = vld [vmem:[#allocation16 + $0x20] sm:$0xff]  ;;  %2375 = vmatpush.msrb.mxu3 %v5979_v6  ;;  %2280 = vmatpush.msra.mxu0 %v2254_v41  ;;  %v2253_v47 = vld [vmem:[#allocation12 + $0x18] sm:$0xff] }
0x1263   :  { %4709 = vtanh.f32 %v2168_v3  ;;  %2315 = vmatpush.msra.mxu1 %v2296_v46  ;;  %v2295_v3 = vld [vmem:[#allocation16 + $0x18] sm:$0xff] }
0x1264   :  { %4711 = vtanh.f32 %v2169_v51  ;;  %v5983_v51 = vld [vmem:[#allocation13 + $0x8] sm:$0xff]  ;;  %2281 = vmatpush.msra.mxu0 %v2253_v47 }
0x1265   :  { %2316 = vmatpush.msra.mxu1 %v2295_v3  ;;  %2349 = vmatpush.msrb.mxu2 %v5983_v51 }
0x1267   :  { %2350 = vmatpush.msrb.mxu2 %v5992_v39 }
0x1268   :  { %2351 = vmatmul.f32.vlgmr.msrb.gmra.mxu2 %v5163_v11 }
0x1269   :  { %v4710_v26 = vpop.eup %4709  ;;  %v456_v45 = vpop.permute.xlu2 %455  ;;  %2578 = vmatpush.msra.mxu2 %v5965_v17 }
0x126a   :  { %v4712_v57 = vpop.eup %4711  ;;  %462 = vst.msk [vmem:[#allocation2] sm:$0x1] %vm461_vm4, %v456_v45  ;;  %2174 = vrot.lane.b32.xlu1 %v4710_v26, %s5164_s3  ;;  %v5988_v26 = vld [vmem:[%s6688_s11] sm:$0xff]  ;;  %v2252_v45 = vld [vmem:[#allocation12 + $0x10] sm:$0xff] }
0x126b   :  { %2176 = vrot.lane.b32.xlu0 %v4712_v57, %s5164_s3  ;;  %v2294_v57 = vld [vmem:[#allocation16 + $0x10] sm:$0xff]  ;;  %2376 = vmatpush.msrb.mxu3 %v5988_v26 }
0x126c   :  { %2377 = vmatmul.f32.vlgmr.msrb.gmra.mxu3 %v5163_v11  ;;  %2282 = vmatpush.msra.mxu0 %v2252_v45 }
0x126d   :  { %2317 = vmatpush.msra.mxu1 %v2294_v57  ;;  %2611 = vmatpush.msra.mxu3 %v5962_v5 }
0x126e   :  { %2579 = vmatpush.msra.mxu2 %v5972_v24 }
0x126f   :  { %2612 = vmatpush.msra.mxu3 %v5970_v15 }
0x1270   :  { %2580 = vmatpush.msra.mxu2 %v5983_v51 }
0x1271   :  { %v720_v60 = vpop.permute.xlu2 %719  ;;  %2613 = vmatpush.msra.mxu3 %v5979_v6 }
0x1272   :  { %726 = vst.msk [vmem:[#allocation2] sm:$0x40] %vm6703_vm5, %v720_v60  ;;  %v2251_v60 = vld [vmem:[#allocation12 + $0x8] sm:$0xff]  ;;  %2581 = vmatpush.msra.mxu2 %v5992_v39 }
0x1273   :  { %457 = vrot.lane.b32.xlu0 %v5415_v12, %s5165_s6  ;;  %v2209_v30 = vpop.permute.xlu0 %2208  ;;  %2283 = vmatpush.msra.mxu0 %v2251_v60 }
0x1274   :  { %v2213_v56 = vadd.f32 %v2209_v30, %v2189_v8  ;;  %v2293_v8 = vld [vmem:[#allocation16 + $0x8] sm:$0xff]  ;;  %v2250_v30 = vld [vmem:[#allocation12] sm:$0xff]  ;;  %2614 = vmatpush.msra.mxu3 %v5988_v26  ;;  %2828 = vmatpush.msrb.mxu2 %v5965_v17 }
0x1275   :  { %2318 = vmatpush.msra.mxu1 %v2293_v8  ;;  %2284 = vmatpush.msra.mxu0 %v2250_v30 }
0x1276   :  { %4713 = vtanh.f32 %v2213_v56  ;;  %v2292_v56 = vld [vmem:[#allocation16] sm:$0xff]  ;;  %2862 = vmatpush.msrb.mxu3 %v5962_v5  ;;  %2829 = vmatpush.msrb.mxu2 %v5972_v24 }
0x1277   :  { %2319 = vmatpush.msra.mxu1 %v2292_v56  ;;  %3080 = vmatpush.msrb.mxu0 %v5965_v17 }
0x1278   :  { %2863 = vmatpush.msrb.mxu3 %v5970_v15  ;;  %2830 = vmatpush.msrb.mxu2 %v5983_v51 }
0x1279   :  { %v1216_v21 = vpop.permute.xlu2 %1215  ;;  %3114 = vmatpush.msrb.mxu1 %v5962_v5  ;;  %3081 = vmatpush.msrb.mxu0 %v5972_v24 }
0x127a   :  { %1222 = vst.msk [vmem:[#allocation2] sm:$0x8] %vm6700_vm6, %v1216_v21  ;;  %2864 = vmatpush.msrb.mxu3 %v5979_v6  ;;  %2831 = vmatpush.msrb.mxu2 %v5992_v39 }
0x127b   :  { %721 = vrot.lane.b32.xlu0 %v5496_v48, %s5164_s3  ;;  %v467_v33 = vpop.permute.xlu0 %466  ;;  %v2184_v48 = vrot.slane %v5792_v43, 1  ;;  %3115 = vmatpush.msrb.mxu1 %v5970_v15 }
0x127c   :  { %v4714_v59 = vpop.eup %4713  ;;  %473 = vst.msk [vmem:[#allocation2] sm:$0x80] %vm472_vm7, %v467_v33  ;;  %3082 = vmatpush.msrb.mxu0 %v5983_v51  ;;  %2865 = vmatpush.msrb.mxu3 %v5988_v26 }
0x127d   :  { %2220 = vrot.lane.b32.xlu1 %v4714_v59, %s5164_s3  ;;  %v2188_v28 = vmul.f32 %v2184_v48, %v5840_v22  ;;  %3116 = vmatpush.msrb.mxu1 %v5979_v6 }
0x127e   :  { %3083 = vmatpush.msrb.mxu0 %v5992_v39 }
0x127f   :  { %3117 = vmatpush.msrb.mxu1 %v5988_v26 }
0x1281   :  { %v1481_v27 = vpop.permute.xlu2 %1480 }
0x1282   :  { %1487 = vst.msk [vmem:[#allocation2] sm:$0x8] %vm6698_vm8, %v1481_v27 }
0x1283   :  { %1217 = vrot.lane.b32.xlu0 %v5620_v50, %s5165_s6  ;;  %v962_v12 = vpop.permute.xlu0 %961 }
0x1284   :  { %968 = vst.msk [vmem:[#allocation2] sm:$0x4] %vm6701_vm9, %v962_v12 }
0x1285   :  { %468 = vrot.lane.b32.xlu1 %v5423_v19, %s5164_s3 }
0x1289   :  { %v2207_v31 = vpop.permute.xlu1 %2206 }
0x128a   :  { %v2212_v38 = vadd.f32 %v2207_v31, %v2188_v28  ;;  %v4524_v31 = vld [vmem:[%s6689_s12] ss:$0 sm:$0xff] }
0x128b   :  { %1482 = vrot.lane.b32.xlu0 %v5690_v13, %s5164_s3  ;;  %v1227_v18 = vpop.permute.xlu0 %1226 }
0x128c   :  { %4715 = vtanh.f32 %v2212_v38  ;;  %1233 = vst.msk [vmem:[#allocation2] sm:$0x10] %vm6699_vm10, %v1227_v18  ;;  %v4523_v38 = vld [vmem:[#allocation15] ss:$0 sm:$0xff] }
0x128d   :  { %963 = vrot.lane.b32.xlu1 %v5558_v9, %s5165_s6 }
0x1291   :  { %v709_v50 = vpop.permute.xlu1 %708 }
0x1292   :  { %v4716_v19 = vpop.eup %4715  ;;  %715 = vst.msk [vmem:[#allocation2] sm:$0x2] %vm6704_vm11, %v709_v50 }
0x1293   :  { %1978 = vrot.lane.b32.xlu0 %v5811_v29, %s5165_s6  ;;  %2218 = vrot.lane.b32.xlu2 %v4716_v19, %s5164_s3  ;;  %v1724_v43 = vpop.permute.xlu0 %1723 }
0x1295   :  { %1228 = vrot.lane.b32.xlu1 %v5628_v54, %s5164_s3 }
0x1299   :  { %v973_v13 = vpop.permute.xlu1 %972 }
0x129a   :  { %979 = vst.msk [vmem:[#allocation2] sm:$0x20] %vm6702_vm12, %v973_v13 }
0x129b   :  { %1730 = vst.msk [vmem:[#allocation2] sm:$0x20] %vm6693_vm13, %v1724_v43  ;;  %1976 = vrot.lane.b32.xlu2 %v5808_v62, %s5165_s6  ;;  %v1988_v9 = vpop.permute.xlu0 %1987 }
0x129c   :  { %1994 = vst.msk [vmem:[#allocation2] sm:$0x2] %vm6696_vm14, %v1988_v9 }
0x129d   :  { %1725 = vrot.lane.b32.xlu1 %v5744_v49, %s5165_s6 }
0x12a1   :  { %v1470_v29 = vpop.permute.xlu1 %1469 }
0x12a2   :  { %1476 = vst.msk [vmem:[#allocation2] sm:$0x10] %vm6697_vm15, %v1470_v29 }
0x12a3   :  { %710 = vrot.lane.b32.xlu2 %v5488_v42, %s5165_s6 }
0x12a9   :  { %v1735_v54 = vpop.permute.xlu1 %1734 }
0x12aa   :  { %1741 = vst.msk [vmem:[#allocation2] sm:$0x4] %vm6692_vm0, %v1735_v54 }
0x12ab   :  { %974 = vrot.lane.b32.xlu2 %v5566_v7, %s5164_s3 }
0x12b3   :  { %1471 = vrot.lane.b32.xlu2 %v5682_v37, %s5165_s6 }
0x12bb   :  { %1736 = vrot.lane.b32.xlu2 %v5752_v34, %s5164_s3 }
0x12dc   :  { %v2175_v49 = vpop.permute.xlu1 %2174 }
0x12dd   :  { %v2180_v62 = vmul.f32 %v2175_v49, %v5832_v55  ;;  %v2177_v61 = vpop.permute.xlu0 %2176 }
0x12de   :  { %v2181_v44 = vmul.f32 %v2177_v61, %v5834_v1 }
0x12df   :  { %2228 = vrot.lane.b32.xlu1 %v2180_v62, %s5165_s6 }
0x12e5   :  { %v458_v42 = vpop.permute.xlu0 %457 }
0x12e6   :  { %463 = vst.msk [vmem:[#allocation2 + $0x8] sm:$0x1] %vm461_vm4, %v458_v42 }
0x12e7   :  { %1989 = vrot.lane.b32.xlu1 %v5820_v32, %s5164_s3 }
0x12eb   :  { %v2352_v29 = vpop.f32.mrf.mxu2 }
0x12ed   :  { %v2219_v63 = vpop.permute.xlu2 %2218  ;;  %v722_v7 = vpop.permute.xlu0 %721 }
0x12ee   :  { %v2224_v4 = vmul.f32 %v2219_v63, %v5840_v22  ;;  %727 = vst.msk [vmem:[#allocation2 + $0x8] sm:$0x40] %vm6703_vm5, %v722_v7  ;;  %v2356_v7 = vrot.slane %v2352_v29, 1 }
0x12ef   :  { %v2221_v37 = vpop.permute.xlu1 %2220  ;;  %v2378_v28 = vpop.f32.mrf.mxu3 }
0x12f0   :  { %v2225_v34 = vmul.f32 %v2221_v37, %v5843_v25  ;;  %2239 = vrot.lane.b32.xlu2 %v2224_v4, %s5164_s3  ;;  %v2382_v18 = vrot.slane %v2378_v28, 1  ;;  %v2383_v63 = vrot.slane %v2378_v28, 2 }
0x12f2   :  { %2241 = vrot.lane.b32.xlu0 %v2225_v34, %s5164_s3 }
0x12f5   :  { %v1977_v55 = vpop.permute.xlu2 %1976  ;;  %v1218_v20 = vpop.permute.xlu0 %1217 }
0x12f6   :  { %1983 = vst.msk [vmem:[#allocation2] sm:$0x40] %vm6691_vm1, %v1977_v55 }
0x12f7   :  { %1223 = vst.msk [vmem:[#allocation2 + $0x8] sm:$0x8] %vm6700_vm6, %v1218_v20  ;;  %v469_v32 = vpop.permute.xlu1 %468 }
0x12f8   :  { %474 = vst.msk [vmem:[#allocation2 + $0x8] sm:$0x80] %vm472_vm7, %v469_v32  ;;  %2230 = vrot.lane.b32.xlu2 %v2181_v44, %s5165_s6 }
0x12fd   :  { %v711_v22 = vpop.permute.xlu2 %710  ;;  %v1483_v23 = vpop.permute.xlu0 %1482 }
0x12fe   :  { %716 = vst.msk [vmem:[#allocation2 + $0x8] sm:$0x2] %vm6704_vm11, %v711_v22 }
0x12ff   :  { %1488 = vst.msk [vmem:[#allocation2 + $0x8] sm:$0x8] %vm6698_vm8, %v1483_v23  ;;  %v964_v14 = vpop.permute.xlu1 %963 }
0x1300   :  { %969 = vst.msk [vmem:[#allocation2 + $0x8] sm:$0x4] %vm6701_vm9, %v964_v14 }
0x1305   :  { %v975_v16 = vpop.permute.xlu2 %974  ;;  %v1979_v1 = vpop.permute.xlu0 %1978 }
0x1306   :  { %980 = vst.msk [vmem:[#allocation2 + $0x8] sm:$0x20] %vm6702_vm12, %v975_v16 }
0x1307   :  { %1984 = vst.msk [vmem:[#allocation2 + $0x8] sm:$0x40] %vm6691_vm1, %v1979_v1  ;;  %v1229_v25 = vpop.permute.xlu1 %1228  ;;  %vm6694_vm1 = vcmask 516352  }
0x1308   :  { %1234 = vst.msk [vmem:[#allocation2 + $0x8] sm:$0x10] %vm6699_vm10, %v1229_v25 }
0x130d   :  { %v1472_v35 = vpop.permute.xlu2 %1471 }
0x130e   :  { %1477 = vst.msk [vmem:[#allocation2 + $0x8] sm:$0x10] %vm6697_vm15, %v1472_v35 }
0x130f   :  { %v1726_v2 = vpop.permute.xlu1 %1725 }
0x1310   :  { %1731 = vst.msk [vmem:[#allocation2 + $0x8] sm:$0x20] %vm6693_vm13, %v1726_v2  ;;  %vm2262_vm13 = vcmask 523264  }
0x1315   :  { %v1737_v52 = vpop.permute.xlu2 %1736 }
0x1316   :  { %1742 = vst.msk [vmem:[#allocation2 + $0x8] sm:$0x4] %vm6692_vm0, %v1737_v52  ;;  %vm6695_vm0 = vcmask 261127  }
0x134a   :  { %v2240_v11 = vpop.permute.xlu2 %2239 }
0x134b   :  { %2246 = vst.msk [vmem:[#allocation2] sm:$0x1] %vm6694_vm1, %v2240_v11 }
0x1351   :  { %v2229_v21 = vpop.permute.xlu1 %2228 }
0x1352   :  { %2235 = vst.msk [vmem:[#allocation2] sm:$0x80] %vm6695_vm0, %v2229_v21  ;;  %v2231_v33 = vpop.permute.xlu2 %2230 }
0x1353   :  { %2236 = vst.msk [vmem:[#allocation2 + $0x8] sm:$0x80] %vm6695_vm0, %v2231_v33 }
0x1359   :  { %v1990_v59 = vpop.permute.xlu1 %1989  ;;  %v2248_v27 = vld [vmem:[#allocation2] sm:$0xff] }
0x135a   :  { %1995 = vst.msk [vmem:[#allocation2 + $0x8] sm:$0x2] %vm6696_vm14, %v1990_v59  ;;  %4425 = vmatmul.msk.f32.vlgmr.msra.gmra.mxu0 %vm2262_vm13, %v2248_v27  ;;  %4427 = vmatmul.msk.f32.vlgmr.msra.gmra.mxu1 %vm2262_vm13, %v2248_v27 }
0x135b   :  { %3584 = vmatpush.msra.mxu0 %v5965_v17  ;;  %3618 = vmatpush.msra.mxu1 %v5962_v5 }
0x135d   :  { %3585 = vmatpush.msra.mxu0 %v5972_v24  ;;  %3619 = vmatpush.msra.mxu1 %v5970_v15 }
0x135f   :  { %3586 = vmatpush.msra.mxu0 %v5983_v51  ;;  %3620 = vmatpush.msra.mxu1 %v5979_v6 }
0x1361   :  { %3587 = vmatpush.msra.mxu0 %v5992_v39  ;;  %3621 = vmatpush.msra.mxu1 %v5988_v26 }
0x1364   :  { %v2242_v12 = vpop.permute.xlu0 %2241 }
0x1365   :  { %2247 = vst.msk [vmem:[#allocation2 + $0x8] sm:$0x1] %vm6694_vm1, %v2242_v12 }
0x136c   :  { %v2249_v48 = vld [vmem:[#allocation2 + $0x8] sm:$0xff] }
0x136d   :  { %4426 = vmatmul.msk.f32.gmra.mxu0 %vm2262_vm13, %v2249_v48  ;;  %4428 = vmatmul.msk.f32.gmra.mxu1 %vm2262_vm13, %v2249_v48 }
0x13d7   :  { %v2286_v50 = vpop.f32.mrf.mxu0  ;;  %v2321_v19 = vpop.f32.mrf.mxu1 }
0x13d8   :  { %v6041_v43 = vadd.f32 %v4524_v31, %v2321_v19  ;;  %v6043_v13 = vadd.f32 %v4523_v38, %v2286_v50 }
0x13da   :  { %v2386_v9 = vadd.f32 %v2382_v18, %v6041_v43  ;;  %v2359_v49 = vadd.f32 %v2352_v29, %v6043_v13 }
0x13dc   :  { %v4431_v54 = vmul.f32 -1.442695, %v2386_v9  ;;  %v4429_v62 = vmul.f32 -1.442695, %v2359_v49 }
0x13de   :  { %4717 = vpow2.f32 %v4431_v54 }
0x13df   :  { %4719 = vpow2.f32 %v4429_v62 }
0x13e4   :  { %v4718_v61 = vpop.eup %4717 }
0x13e5   :  { %v2432_v42 = vadd.f32 1.0, %v4718_v61  ;;  %v4720_v20 = vpop.eup %4719 }
0x13e6   :  { %v6053_v14 = vadd.f32 1.0, %v4720_v20 }
0x13e7   :  { %4721 = vrcp.f32 %v2432_v42  ;;  %v2445_v35 = vand.u32 2147483648, %v2432_v42  ;;  %v2443_v52 = vand.u32 2147483647, %v2432_v42  ;;  %vm2439_vm1 = vweird.f32 %v2432_v42 }
0x13e8   :  { %v2407_v49 = vand.u32 2147483648, %v6053_v14 }
0x13e9   :  { %v2446_v36 = vor.u32 1.1754944e-38, %v2445_v35  ;;  %vm2444_vm14 = vcmp.eq.f32.partialorder %v2443_v52, 8.507059e+37 }
0x13ea   :  { %v2289_v4 = vpop.f32.mrf.mxu0  ;;  %v2324_v37 = vpop.f32.mrf.mxu1 }
0x13eb   :  { %v6047_v34 = vadd.f32 %v4523_v38, %v2289_v4  ;;  %v6049_v55 = vadd.f32 %v4524_v31, %v2324_v37 }
0x13ed   :  { %v4722_v44 = vpop.eup %4721  ;;  %v2387_v32 = vadd.f32 %v2383_v63, %v6049_v55  ;;  %v2360_v22 = vadd.f32 %v2356_v7, %v6047_v34 }
0x13ee   :  { %v2435_v23 = vmul.f32 %v4722_v44, %v2432_v42  ;;  %vm2440_vm13 = vweird.f32 %v4722_v44  ;;  %v2405_v42 = vand.u32 2147483647, %v6053_v14 }
0x13ef   :  { %v4432_v16 = vmul.f32 -1.442695, %v2387_v32  ;;  %v4430_v1 = vmul.f32 -1.442695, %v2360_v22  ;;  %vm2441_vm0 = vmor %vm2439_vm1, %vm2440_vm13  ;;  %vm2401_vm13 = vweird.f32 %v6053_v14 }
0x13f0   :  { %v2436_v25 = vsub.f32 1.0, %v2435_v23 }
0x13f1   :  { %4723 = vpow2.f32 %v4432_v16 }
0x13f2   :  { %v2437_v2 = vmul.f32 %v4722_v44, %v2436_v25  ;;  %4725 = vpow2.f32 %v4430_v1 }
0x13f3   :  { %4727 = vrcp.f32 %v6053_v14 }
0x13f4   :  { %v2438_v53 = vadd.f32 %v4722_v44, %v2437_v2 }
0x13f6   :  { %v2442_v58 = vsel %vm2441_vm0, %v4722_v44, %v2438_v53  ;;  %v2408_v44 = vor.u32 1.1754944e-38, %v2407_v49 }
0x13f7   :  { %v4724_v0 = vpop.eup %4723  ;;  %v6056_v40 = vsel %vm2444_vm14, %v2446_v36, %v2442_v58 }
0x13f8   :  { %v4726_v10 = vpop.eup %4725  ;;  %v2504_v41 = vmul.f32 2.0, %v6056_v40  ;;  %v2433_v46 = vadd.f32 1.0, %v4724_v0  ;;  %v2502_v58 = vmul.f32 0.0, %v6056_v40 }
0x13f9   :  { %v4728_v47 = vpop.eup %4727  ;;  %v2395_v3 = vadd.f32 1.0, %v4726_v10 }
0x13fa   :  { %v4435_v45 = vadd.f32 -1.0, %v2504_v41  ;;  %4729 = vrcp.f32 %v2433_v46  ;;  %v2397_v57 = vmul.f32 %v4728_v47, %v6053_v14  ;;  %v2460_v33 = vand.u32 2147483648, %v2433_v46 }
0x13fb   :  { %4731 = vrcp.f32 %v2395_v3  ;;  %v2458_v48 = vand.u32 2147483647, %v2433_v46  ;;  %v2422_v28 = vand.u32 2147483648, %v2395_v3  ;;  %v2420_v38 = vand.u32 2147483647, %v2395_v3 }
0x13fc   :  { %2510 = vrot.lane.b32.xlu2 %v4435_v45, %s5164_s3  ;;  %v2398_v8 = vsub.f32 1.0, %v2397_v57  ;;  %vm2454_vm1 = vweird.f32 %v2433_v46  ;;  %vm2402_vm15 = vweird.f32 %v4728_v47  ;;  %v2461_v50 = vor.u32 1.1754944e-38, %v2460_v33 }
0x13fd   :  { %vm2416_vm10 = vweird.f32 %v2395_v3  ;;  %vm2459_vm6 = vcmp.eq.f32.partialorder %v2458_v48, 8.507059e+37  ;;  %v2423_v54 = vor.u32 1.1754944e-38, %v2422_v28  ;;  %vm2421_vm12 = vcmp.eq.f32.partialorder %v2420_v38, 8.507059e+37 }
0x13fe   :  { %v2399_v27 = vmul.f32 %v4728_v47, %v2398_v8 }
0x1400   :  { %v4730_v60 = vpop.eup %4729  ;;  %v2400_v9 = vadd.f32 %v4728_v47, %v2399_v27 }
0x1401   :  { %v4732_v30 = vpop.eup %4731  ;;  %v2450_v56 = vmul.f32 %v4730_v60, %v2433_v46  ;;  %vm2455_vm14 = vweird.f32 %v4730_v60 }
0x1402   :  { %v2412_v11 = vmul.f32 %v4732_v30, %v2395_v3  ;;  %vm2417_vm0 = vweird.f32 %v4732_v30  ;;  %vm2456_vm8 = vmor %vm2454_vm1, %vm2455_vm14 }
0x1403   :  { %v2451_v21 = vsub.f32 1.0, %v2450_v56  ;;  %vm2418_vm9 = vmor %vm2416_vm10, %vm2417_vm0 }
0x1404   :  { %v2413_v59 = vsub.f32 1.0, %v2412_v11  ;;  %vm2403_vm14 = vmor %vm2401_vm13, %vm2402_vm15 }
0x1405   :  { %v2452_v12 = vmul.f32 %v4730_v60, %v2451_v21  ;;  %v2404_v37 = vsel %vm2403_vm14, %v4728_v47, %v2400_v9 }
0x1406   :  { %v2414_v31 = vmul.f32 %v4732_v30, %v2413_v59 }
0x1407   :  { %v2453_v18 = vadd.f32 %v4730_v60, %v2452_v12 }
0x1408   :  { %v2415_v19 = vadd.f32 %v4732_v30, %v2414_v31 }
0x1409   :  { %v2457_v29 = vsel %vm2456_vm8, %v4730_v60, %v2453_v18  ;;  %vm2406_vm8 = vcmp.eq.f32.partialorder %v2405_v42, 8.507059e+37 }
0x140a   :  { %v2462_v62 = vsel %vm2459_vm6, %v2461_v50, %v2457_v29  ;;  %v2419_v61 = vsel %vm2418_vm9, %v4732_v30, %v2415_v19  ;;  %v2409_v22 = vsel %vm2406_vm8, %v2408_v44, %v2404_v37 }
0x140b   :  { %v2505_v63 = vmul.f32 2.0, %v2462_v62  ;;  %v2424_v7 = vsel %vm2421_vm12, %v2423_v54, %v2419_v61  ;;  %v2466_v23 = vmul.f32 2.0, %v2409_v22  ;;  %v2464_v45 = vmul.f32 0.0, %v2409_v22 }
0x140c   :  { %v2467_v4 = vmul.f32 2.0, %v2424_v7  ;;  %v2465_v46 = vmul.f32 0.0, %v2424_v7  ;;  %v2503_v56 = vmul.f32 0.0, %v2462_v62 }
0x140d   :  { %v4436_v20 = vadd.f32 -1.0, %v2505_v63  ;;  %v4433_v16 = vadd.f32 -1.0, %v2466_v23 }
0x140e   :  { %v4434_v32 = vadd.f32 -1.0, %v2467_v4 }
0x140f   :  { %2512 = vrot.lane.b32.xlu0 %v4436_v20, %s5164_s3 }
0x1410   :  { %2474 = vrot.lane.b32.xlu1 %v4434_v32, %s5164_s3 }
0x1418   :  { %2472 = vrot.lane.b32.xlu1 %v4433_v16, %s5164_s3 }
0x1456   :  { %v2511_v1 = vpop.permute.xlu2 %2510 }
0x1457   :  { %v2516_v25 = vmul.f32 %v2511_v1, %v6056_v40 }
0x1459   :  { %2520 = vrot.lane.b32.xlu0 %v2516_v25, %s5165_s6 }
0x1481   :  { %v2513_v14 = vpop.permute.xlu0 %2512 }
0x1482   :  { %v2517_v35 = vmul.f32 %v2513_v14, %v2462_v62  ;;  %v2475_v2 = vpop.permute.xlu1 %2474 }
0x1483   :  { %v2479_v52 = vmul.f32 %v2475_v2, %v2424_v7 }
0x1484   :  { %2522 = vrot.lane.b32.xlu1 %v2517_v35, %s5165_s6 }
0x1485   :  { %2484 = vrot.lane.b32.xlu2 %v2479_v52, %s5165_s6 }
0x148a   :  { %v2473_v53 = vpop.permute.xlu1 %2472 }
0x148b   :  { %v2478_v36 = vmul.f32 %v2473_v53, %v2409_v22 }
0x148d   :  { %2482 = vrot.lane.b32.xlu2 %v2478_v36, %s5165_s6 }
0x14cb   :  { %v2521_v0 = vpop.permute.xlu0 %2520 }
0x14cc   :  { %v6076_v10 = vadd.f32 %v2521_v0, %v2502_v58 }
0x14ce   :  { %4733 = vtanh.f32 %v6076_v10 }
0x14d4   :  { %v4734_v41 = vpop.eup %4733 }
0x14d5   :  { %2532 = vrot.lane.b32.xlu1 %v4734_v41, %s5164_s3 }
0x14df   :  { %v2485_v47 = vpop.permute.xlu2 %2484 }
0x14e0   :  { %v6080_v3 = vadd.f32 %v2485_v47, %v2465_v46 }
0x14e2   :  { %4735 = vtanh.f32 %v6080_v3 }
0x14e7   :  { %v2483_v57 = vpop.permute.xlu2 %2482 }
0x14e8   :  { %v4736_v60 = vpop.eup %4735  ;;  %v6083_v8 = vadd.f32 %v2483_v57, %v2464_v45 }
0x14e9   :  { %2496 = vrot.lane.b32.xlu0 %v4736_v60, %s5164_s3 }
0x14ea   :  { %4737 = vtanh.f32 %v6083_v8 }
0x14f0   :  { %v4738_v30 = vpop.eup %4737 }
0x14f1   :  { %2494 = vrot.lane.b32.xlu0 %v4738_v30, %s5164_s3 }
0x14f6   :  { %v2523_v11 = vpop.permute.xlu1 %2522 }
0x14f7   :  { %v6088_v21 = vadd.f32 %v2523_v11, %v2503_v56 }
0x14f9   :  { %4739 = vtanh.f32 %v6088_v21 }
0x14ff   :  { %v4740_v33 = vpop.eup %4739 }
0x1500   :  { %2534 = vrot.lane.b32.xlu2 %v4740_v33, %s5164_s3 }
0x1547   :  { %v2533_v59 = vpop.permute.xlu1 %2532 }
0x1548   :  { %v6093_v27 = vmul.f32 %v2533_v59, %v6056_v40 }
0x154a   :  { %v2592_v31 = vrot.slane %v6093_v27, 7 }
0x155a   :  { %v2535_v12 = vpop.permute.xlu2 %2534 }
0x155b   :  { %v6095_v48 = vmul.f32 %v2535_v12, %v2462_v62  ;;  %v2497_v28 = vpop.permute.xlu0 %2496 }
0x155c   :  { %v6100_v50 = vmul.f32 %v2497_v28, %v2424_v7 }
0x155d   :  { %v2593_v38 = vrot.slane %v6095_v48, 6 }
0x155e   :  { %v2560_v9 = vrot.slane %v6100_v50, 7 }
0x155f   :  { %v2594_v18 = vsel %vm476_vm2, %v2593_v38, %v2592_v31 }
0x1560   :  { %2595 = vrot.lane.b32.xlu2 %v2594_v18, %s5165_s6 }
0x1563   :  { %v2495_v19 = vpop.permute.xlu0 %2494 }
0x1564   :  { %v6104_v29 = vmul.f32 %v2495_v19, %v2409_v22 }
0x1566   :  { %v2561_v40 = vsel %vm476_vm2, %v2560_v9, %v6104_v29 }
0x1567   :  { %2562 = vrot.lane.b32.xlu1 %v2561_v40, %s5165_s6 }
0x15ba   :  { %v2596_v54 = vpop.permute.xlu2 %2595 }
0x15bb   :  { %4438 = vmatmul.msk.f32.vlgmr.msra.gmra.mxu3 %vm244_vm3, %v2596_v54 }
0x15bc   :  { %3366 = vmatpush.msra.mxu3 %v5962_v5 }
0x15be   :  { %3367 = vmatpush.msra.mxu3 %v5970_v15 }
0x15c0   :  { %3368 = vmatpush.msra.mxu3 %v5979_v6 }
0x15c2   :  { %3369 = vmatpush.msra.mxu3 %v5988_v26 }
0x15d9   :  { %v2563_v49 = vpop.permute.xlu1 %2562 }
0x15da   :  { %4437 = vmatmul.msk.f32.vlgmr.msra.gmra.mxu2 %vm244_vm3, %v2563_v49 }
0x15db   :  { %3332 = vmatpush.msra.mxu2 %v5965_v17 }
0x15dd   :  { %3333 = vmatpush.msra.mxu2 %v5972_v24 }
0x15df   :  { %3334 = vmatpush.msra.mxu2 %v5983_v51 }
0x15e1   :  { %3335 = vmatpush.msra.mxu2 %v5992_v39 }
0x163e   :  { %v2616_v62 = vpop.f32.mrf.mxu3 }
0x163f   :  { %v2620_v61 = vrot.slane %v2616_v62, 2  ;;  %v2621_v42 = vrot.slane %v2616_v62, 3 }
0x1641   :  { %v2624_v63 = vadd.f32 %v2620_v61, %v6041_v43  ;;  %v2625_v7 = vadd.f32 %v2621_v42, %v6049_v55 }
0x1643   :  { %v4441_v4 = vmul.f32 -1.442695, %v2624_v63  ;;  %v4442_v37 = vmul.f32 -1.442695, %v2625_v7 }
0x1645   :  { %4741 = vpow2.f32 %v4441_v4 }
0x1646   :  { %4743 = vpow2.f32 %v4442_v37 }
0x164b   :  { %v4742_v20 = vpop.eup %4741 }
0x164c   :  { %v4744_v44 = vpop.eup %4743  ;;  %v2670_v32 = vadd.f32 1.0, %v4742_v20 }
0x164d   :  { %v2671_v22 = vadd.f32 1.0, %v4744_v44 }
0x164e   :  { %4745 = vrcp.f32 %v2670_v32  ;;  %v2681_v2 = vand.u32 2147483647, %v2670_v32  ;;  %v2683_v52 = vand.u32 2147483648, %v2670_v32  ;;  %vm2677_vm10 = vweird.f32 %v2670_v32 }
0x164f   :  { %4747 = vrcp.f32 %v2671_v22  ;;  %v2696_v53 = vand.u32 2147483647, %v2671_v22  ;;  %v2698_v36 = vand.u32 2147483648, %v2671_v22  ;;  %vm2692_vm12 = vweird.f32 %v2671_v22 }
0x1650   :  { %v2684_v47 = vor.u32 1.1754944e-38, %v2683_v52  ;;  %vm2682_vm13 = vcmp.eq.f32.partialorder %v2681_v2, 8.507059e+37 }
0x1651   :  { %vm2697_vm1 = vcmp.eq.f32.partialorder %v2696_v53, 8.507059e+37  ;;  %v2699_v57 = vor.u32 1.1754944e-38, %v2698_v36 }
0x1654   :  { %v4746_v23 = vpop.eup %4745 }
0x1655   :  { %v4748_v16 = vpop.eup %4747  ;;  %v2673_v1 = vmul.f32 %v4746_v23, %v2670_v32  ;;  %vm2678_vm6 = vweird.f32 %v4746_v23 }
0x1656   :  { %v2688_v25 = vmul.f32 %v4748_v16, %v2671_v22  ;;  %vm2693_vm9 = vweird.f32 %v4748_v16  ;;  %vm2679_vm15 = vmor %vm2677_vm10, %vm2678_vm6 }
0x1657   :  { %v2674_v14 = vsub.f32 1.0, %v2673_v1  ;;  %vm2694_vm0 = vmor %vm2692_vm12, %vm2693_vm9 }
0x1658   :  { %v2689_v35 = vsub.f32 1.0, %v2688_v25 }
0x1659   :  { %v2675_v58 = vmul.f32 %v4746_v23, %v2674_v14 }
0x165a   :  { %v2690_v0 = vmul.f32 %v4748_v16, %v2689_v35 }
0x165b   :  { %v2676_v41 = vadd.f32 %v4746_v23, %v2675_v58 }
0x165c   :  { %v2691_v46 = vadd.f32 %v4748_v16, %v2690_v0 }
0x165d   :  { %v2583_v45 = vpop.f32.mrf.mxu2  ;;  %v2680_v60 = vsel %vm2679_vm15, %v4746_v23, %v2676_v41 }
0x165e   :  { %v2587_v30 = vrot.slane %v2583_v45, 7  ;;  %v2591_v56 = vadd.f32 %v2583_v45, %v6047_v34  ;;  %v2695_v11 = vsel %vm2694_vm0, %v4748_v16, %v2691_v46  ;;  %v6122_v33 = vsel %vm2682_vm13, %v2684_v47, %v2680_v60 }
0x165f   :  { %v6124_v59 = vsel %vm2697_vm1, %v2699_v57, %v2695_v11  ;;  %v2754_v12 = vmul.f32 2.0, %v6122_v33 }
0x1660   :  { %v2590_v28 = vadd.f32 %v2587_v30, %v6043_v13  ;;  %v4440_v31 = vmul.f32 -1.442695, %v2591_v56  ;;  %v2755_v38 = vmul.f32 2.0, %v6124_v59 }
0x1661   :  { %v4445_v18 = vadd.f32 -1.0, %v2754_v12 }
0x1662   :  { %v4439_v19 = vmul.f32 -1.442695, %v2590_v28  ;;  %4749 = vpow2.f32 %v4440_v31  ;;  %v4446_v9 = vadd.f32 -1.0, %v2755_v38  ;;  %v2748_v28 = vrot.slane %v6076_v10, 1 }
0x1663   :  { %2760 = vrot.lane.b32.xlu1 %v4445_v18, %s5164_s3  ;;  %v2749_v31 = vrot.slane %v6088_v21, 1  ;;  %v2704_v10 = vrot.slane %v6083_v8, 7 }
0x1664   :  { %4751 = vpow2.f32 %v4439_v19  ;;  %2762 = vrot.lane.b32.xlu2 %v4446_v9, %s5164_s3  ;;  %v2752_v38 = vmul.f32 %v2748_v28, %v6122_v33 }
0x1665   :  { %v2753_v18 = vmul.f32 %v2749_v31, %v6124_v59 }
0x1668   :  { %v4750_v40 = vpop.eup %4749 }
0x1669   :  { %v2633_v54 = vadd.f32 1.0, %v4750_v40 }
0x166a   :  { %v4752_v49 = vpop.eup %4751 }
0x166b   :  { %v2632_v62 = vadd.f32 1.0, %v4752_v49  ;;  %4753 = vrcp.f32 %v2633_v54  ;;  %v2660_v25 = vand.u32 2147483648, %v2633_v54  ;;  %vm2654_vm10 = vweird.f32 %v2633_v54 }
0x166c   :  { %v2658_v35 = vand.u32 2147483647, %v2633_v54 }
0x166d   :  { %4755 = vrcp.f32 %v2632_v62  ;;  %v2645_v44 = vand.u32 2147483648, %v2632_v62  ;;  %v2643_v22 = vand.u32 2147483647, %v2632_v62  ;;  %vm2639_vm8 = vweird.f32 %v2632_v62 }
0x166e   :  { %v2661_v36 = vor.u32 1.1754944e-38, %v2660_v25  ;;  %vm2659_vm0 = vcmp.eq.f32.partialorder %v2658_v35, 8.507059e+37 }
0x166f   :  { %v2646_v1 = vor.u32 1.1754944e-38, %v2645_v44  ;;  %vm2644_vm12 = vcmp.eq.f32.partialorder %v2643_v22, 8.507059e+37 }
0x1671   :  { %v4754_v61 = vpop.eup %4753 }
0x1672   :  { %v2650_v42 = vmul.f32 %v4754_v61, %v2633_v54  ;;  %vm2655_vm6 = vweird.f32 %v4754_v61 }
0x1673   :  { %v4756_v63 = vpop.eup %4755  ;;  %vm2656_vm15 = vmor %vm2654_vm10, %vm2655_vm6 }
0x1674   :  { %v2635_v7 = vmul.f32 %v4756_v63, %v2632_v62  ;;  %v2651_v4 = vsub.f32 1.0, %v2650_v42  ;;  %vm2640_vm14 = vweird.f32 %v4756_v63 }
0x1675   :  { %vm2641_vm9 = vmor %vm2639_vm8, %vm2640_vm14 }
0x1676   :  { %v2636_v37 = vsub.f32 1.0, %v2635_v7  ;;  %v2652_v20 = vmul.f32 %v4754_v61, %v2651_v4 }
0x1678   :  { %v2637_v32 = vmul.f32 %v4756_v63, %v2636_v37  ;;  %v2653_v16 = vadd.f32 %v4754_v61, %v2652_v20 }
0x167a   :  { %v2638_v23 = vadd.f32 %v4756_v63, %v2637_v32  ;;  %v2657_v53 = vsel %vm2656_vm15, %v4754_v61, %v2653_v16 }
0x167b   :  { %v2662_v0 = vsel %vm2659_vm0, %v2661_v36, %v2657_v53 }
0x167c   :  { %v2642_v14 = vsel %vm2641_vm9, %v4756_v63, %v2638_v23  ;;  %v2711_v41 = vmul.f32 2.0, %v2662_v0  ;;  %v2705_v63 = vrot.slane %v6080_v3, 7 }
0x167d   :  { %v2647_v2 = vsel %vm2644_vm12, %v2646_v1, %v2642_v14 }
0x167e   :  { %v2710_v52 = vmul.f32 2.0, %v2647_v2  ;;  %v4444_v46 = vadd.f32 -1.0, %v2711_v41  ;;  %v2708_v21 = vmul.f32 %v2704_v10, %v2647_v2  ;;  %v2709_v7 = vmul.f32 %v2705_v63, %v2662_v0 }
0x1680   :  { %v4443_v58 = vadd.f32 -1.0, %v2710_v52 }
0x1682   :  { %2716 = vrot.lane.b32.xlu0 %v4443_v58, %s5164_s3 }
0x168a   :  { %2718 = vrot.lane.b32.xlu0 %v4444_v46, %s5164_s3 }
0x16be   :  { %v2763_v47 = vpop.permute.xlu2 %2762 }
0x16bf   :  { %v2767_v45 = vmul.f32 %v2763_v47, %v6124_v59 }
0x16c1   :  { %2772 = vrot.lane.b32.xlu0 %v2767_v45, %s5165_s6 }
0x16d5   :  { %v2761_v57 = vpop.permute.xlu1 %2760 }
0x16d6   :  { %v2766_v60 = vmul.f32 %v2761_v57, %v6122_v33 }
0x16d8   :  { %2770 = vrot.lane.b32.xlu2 %v2766_v60, %s5165_s6 }
0x16f4   :  { %v2717_v30 = vpop.permute.xlu0 %2716 }
0x16f5   :  { %v2722_v56 = vmul.f32 %v2717_v30, %v2647_v2 }
0x16f7   :  { %2726 = vrot.lane.b32.xlu1 %v2722_v56, %s5165_s6 }
0x16fc   :  { %v2719_v11 = vpop.permute.xlu0 %2718 }
0x16fd   :  { %v2723_v12 = vmul.f32 %v2719_v11, %v2662_v0 }
0x16ff   :  { %2728 = vrot.lane.b32.xlu1 %v2723_v12, %s5165_s6 }
0x1732   :  { %v2771_v19 = vpop.permute.xlu2 %2770 }
0x1733   :  { %v2773_v9 = vpop.permute.xlu0 %2772  ;;  %v6143_v40 = vadd.f32 %v2771_v19, %v2752_v38 }
0x1734   :  { %v6145_v54 = vadd.f32 %v2773_v9, %v2753_v18 }
0x1735   :  { %4757 = vtanh.f32 %v6143_v40 }
0x1736   :  { %4759 = vtanh.f32 %v6145_v54 }
0x173b   :  { %v4758_v49 = vpop.eup %4757 }
0x173c   :  { %v4760_v62 = vpop.eup %4759  ;;  %2782 = vrot.lane.b32.xlu0 %v4758_v49, %s5164_s3 }
0x173d   :  { %2784 = vrot.lane.b32.xlu1 %v4760_v62, %s5164_s3 }
0x1769   :  { %v2727_v61 = vpop.permute.xlu1 %2726 }
0x176a   :  { %v6152_v42 = vadd.f32 %v2727_v61, %v2708_v21 }
0x176c   :  { %4761 = vtanh.f32 %v6152_v42 }
0x1771   :  { %v2729_v4 = vpop.permute.xlu1 %2728 }
0x1772   :  { %v4762_v37 = vpop.eup %4761  ;;  %v6156_v20 = vadd.f32 %v2729_v4, %v2709_v7 }
0x1773   :  { %2738 = vrot.lane.b32.xlu2 %v4762_v37, %s5164_s3 }
0x1774   :  { %4763 = vtanh.f32 %v6156_v20 }
0x177a   :  { %v4764_v44 = vpop.eup %4763 }
0x177b   :  { %2740 = vrot.lane.b32.xlu2 %v4764_v44, %s5164_s3 }
0x17ae   :  { %v2783_v8 = vpop.permute.xlu0 %2782 }
0x17af   :  { %v6162_v32 = vmul.f32 %v2783_v8, %v6122_v33  ;;  %v2785_v22 = vpop.permute.xlu1 %2784 }
0x17b0   :  { %v6165_v23 = vmul.f32 %v2785_v22, %v6124_v59 }
0x17b1   :  { %v2843_v3 = vrot.slane %v6162_v32, 6 }
0x17b2   :  { %v2844_v16 = vrot.slane %v6165_v23, 5 }
0x17b4   :  { %v2845_v1 = vsel %vm476_vm2, %v2844_v16, %v2843_v3 }
0x17b5   :  { %2846 = vrot.lane.b32.xlu1 %v2845_v1, %s5165_s6 }
0x17cd   :  { %v2739_v25 = vpop.permute.xlu2 %2738 }
0x17ce   :  { %v6171_v14 = vmul.f32 %v2739_v25, %v2647_v2 }
0x17d0   :  { %v2810_v52 = vrot.slane %v6171_v14, 1 }
0x17d5   :  { %v2741_v35 = vpop.permute.xlu2 %2740 }
0x17d6   :  { %v6174_v33 = vmul.f32 %v2741_v35, %v2662_v0 }
0x17d8   :  { %v2811_v59 = vsel %vm476_vm2, %v6174_v33, %v2810_v52 }
0x17d9   :  { %2812 = vrot.lane.b32.xlu0 %v2811_v59, %s5165_s6 }
0x1827   :  { %v2847_v53 = vpop.permute.xlu1 %2846 }
0x1828   :  { %4448 = vmatmul.msk.f32.vlgmr.msrb.gmra.mxu3 %vm244_vm3, %v2847_v53 }
0x1829   :  { %3870 = vmatpush.msrb.mxu3 %v5962_v5 }
0x182b   :  { %3871 = vmatpush.msrb.mxu3 %v5970_v15 }
0x182d   :  { %3872 = vmatpush.msrb.mxu3 %v5979_v6 }
0x182f   :  { %3873 = vmatpush.msrb.mxu3 %v5988_v26 }
0x184b   :  { %v2813_v2 = vpop.permute.xlu0 %2812 }
0x184c   :  { %4447 = vmatmul.msk.f32.vlgmr.msrb.gmra.mxu2 %vm244_vm3, %v2813_v2 }
0x184d   :  { %3836 = vmatpush.msrb.mxu2 %v5965_v17 }
0x184f   :  { %3837 = vmatpush.msrb.mxu2 %v5972_v24 }
0x1851   :  { %3838 = vmatpush.msrb.mxu2 %v5983_v51 }
0x1853   :  { %3839 = vmatpush.msrb.mxu2 %v5992_v39 }
0x18ab   :  { %v2867_v36 = vpop.f32.mrf.mxu3 }
0x18ac   :  { %v2871_v58 = vrot.slane %v2867_v36, 3  ;;  %v2872_v26 = vrot.slane %v2867_v36, 4 }
0x18ae   :  { %v2875_v5 = vadd.f32 %v2871_v58, %v6041_v43  ;;  %v2876_v41 = vadd.f32 %v2872_v26, %v6049_v55 }
0x18b0   :  { %v4451_v15 = vmul.f32 -1.442695, %v2875_v5  ;;  %v4452_v47 = vmul.f32 -1.442695, %v2876_v41 }
0x18b2   :  { %4765 = vpow2.f32 %v4451_v15 }
0x18b8   :  { %v4766_v6 = vpop.eup %4765 }
0x18b9   :  { %v2921_v0 = vadd.f32 1.0, %v4766_v6 }
0x18bb   :  { %4767 = vrcp.f32 %v2921_v0  ;;  %v2934_v45 = vand.u32 2147483648, %v2921_v0  ;;  %v2932_v39 = vand.u32 2147483647, %v2921_v0  ;;  %vm2928_vm13 = vweird.f32 %v2921_v0 }
0x18bc   :  { %4769 = vpow2.f32 %v4452_v47 }
0x18bd   :  { %v2935_v60 = vor.u32 1.1754944e-38, %v2934_v45  ;;  %vm2933_vm8 = vcmp.eq.f32.partialorder %v2932_v39, 8.507059e+37 }
0x18c1   :  { %v4768_v46 = vpop.eup %4767 }
0x18c2   :  { %v2924_v17 = vmul.f32 %v4768_v46, %v2921_v0  ;;  %vm2929_vm1 = vweird.f32 %v4768_v46  ;;  %v4770_v12 = vpop.eup %4769 }
0x18c3   :  { %vm2930_vm14 = vmor %vm2928_vm13, %vm2929_vm1  ;;  %v2922_v19 = vadd.f32 1.0, %v4770_v12 }
0x18c4   :  { %v2925_v24 = vsub.f32 1.0, %v2924_v17 }
0x18c5   :  { %4771 = vrcp.f32 %v2922_v19  ;;  %vm2943_vm10 = vweird.f32 %v2922_v19  ;;  %v2949_v26 = vand.u32 2147483648, %v2922_v19  ;;  %v2947_v17 = vand.u32 2147483647, %v2922_v19 }
0x18c6   :  { %v2926_v51 = vmul.f32 %v4768_v46, %v2925_v24 }
0x18c7   :  { %vm2948_vm11 = vcmp.eq.f32.partialorder %v2947_v17, 8.507059e+37 }
0x18c8   :  { %v2927_v57 = vadd.f32 %v4768_v46, %v2926_v51 }
0x18ca   :  { %v2931_v30 = vsel %vm2930_vm14, %v4768_v46, %v2927_v57 }
0x18cb   :  { %v6191_v56 = vsel %vm2933_vm8, %v2935_v60, %v2931_v30  ;;  %v4772_v21 = vpop.eup %4771  ;;  %v2950_v60 = vor.u32 1.1754944e-38, %v2949_v26 }
0x18cc   :  { %v3005_v11 = vmul.f32 2.0, %v6191_v56  ;;  %v2939_v37 = vmul.f32 %v4772_v21, %v2922_v19  ;;  %vm2944_vm15 = vweird.f32 %v4772_v21 }
0x18cd   :  { %vm2945_vm5 = vmor %vm2943_vm10, %vm2944_vm15 }
0x18ce   :  { %v4455_v28 = vadd.f32 -1.0, %v3005_v11  ;;  %v2940_v44 = vsub.f32 1.0, %v2939_v37 }
0x18cf   :  { %v2833_v31 = vpop.f32.mrf.mxu2 }
0x18d0   :  { %v2837_v38 = vrot.slane %v2833_v31, 6  ;;  %v2838_v18 = vrot.slane %v2833_v31, 7  ;;  %3011 = vrot.lane.b32.xlu1 %v4455_v28, %s5164_s3  ;;  %v2941_v25 = vmul.f32 %v4772_v21, %v2940_v44  ;;  %v2955_v44 = vrot.slane %v6152_v42, 7 }
0x18d1   :  { %v2956_v42 = vrot.slane %v6156_v20, 7 }
0x18d2   :  { %v2841_v9 = vadd.f32 %v2837_v38, %v6043_v13  ;;  %v2842_v49 = vadd.f32 %v2838_v18, %v6047_v34  ;;  %v2942_v15 = vadd.f32 %v4772_v21, %v2941_v25 }
0x18d4   :  { %v4449_v62 = vmul.f32 -1.442695, %v2841_v9  ;;  %v4450_v10 = vmul.f32 -1.442695, %v2842_v49  ;;  %v2946_v39 = vsel %vm2945_vm5, %v4772_v21, %v2942_v15 }
0x18d5   :  { %v2951_v12 = vsel %vm2948_vm11, %v2950_v60, %v2946_v39  ;;  %v4917_v39 = vld [vmem:[#allocation13 + $0x18] sm:$0xff]  ;;  %v4920_v60 = vld [vmem:[#allocation13] sm:$0xff] }
0x18d6   :  { %4773 = vpow2.f32 %v4449_v62  ;;  %v3006_v28 = vmul.f32 2.0, %v2951_v12 }
0x18d7   :  { %4775 = vpow2.f32 %v4450_v10 }
0x18d8   :  { %v4456_v31 = vadd.f32 -1.0, %v3006_v28  ;;  %v4923_v28 = vld [vmem:[%s6688_s11 + $0x8] sm:$0xff] }
0x18dc   :  { %v4774_v61 = vpop.eup %4773 }
0x18dd   :  { %v4776_v63 = vpop.eup %4775  ;;  %v2883_v7 = vadd.f32 1.0, %v4774_v61  ;;  %v2999_v61 = vrot.slane %v6143_v40, 1  ;;  %v3000_v40 = vrot.slane %v6145_v54, 1 }
0x18de   :  { %v2884_v4 = vadd.f32 1.0, %v4776_v63 }
0x18df   :  { %4777 = vrcp.f32 %v2883_v7  ;;  %v2896_v52 = vand.u32 2147483648, %v2883_v7  ;;  %v2894_v2 = vand.u32 2147483647, %v2883_v7  ;;  %vm2890_vm12 = vweird.f32 %v2883_v7 }
0x18e0   :  { %4779 = vrcp.f32 %v2884_v4  ;;  %v2911_v59 = vand.u32 2147483648, %v2884_v4  ;;  %v2909_v58 = vand.u32 2147483647, %v2884_v4  ;;  %vm2905_vm0 = vweird.f32 %v2884_v4 }
0x18e1   :  { %v2897_v0 = vor.u32 1.1754944e-38, %v2896_v52  ;;  %vm2895_vm14 = vcmp.eq.f32.partialorder %v2894_v2, 8.507059e+37  ;;  %v3003_v63 = vmul.f32 %v2999_v61, %v6191_v56 }
0x18e2   :  { %v2912_v41 = vor.u32 1.1754944e-38, %v2911_v59  ;;  %vm2910_vm8 = vcmp.eq.f32.partialorder %v2909_v58, 8.507059e+37 }
0x18e5   :  { %v4778_v8 = vpop.eup %4777 }
0x18e6   :  { %v4780_v22 = vpop.eup %4779  ;;  %v2886_v3 = vmul.f32 %v4778_v8, %v2883_v7  ;;  %vm2891_vm6 = vweird.f32 %v4778_v8 }
0x18e7   :  { %v2901_v16 = vmul.f32 %v4780_v22, %v2884_v4  ;;  %vm2906_vm9 = vweird.f32 %v4780_v22  ;;  %vm2892_vm1 = vmor %vm2890_vm12, %vm2891_vm6 }
0x18e8   :  { %v2887_v1 = vsub.f32 1.0, %v2886_v3  ;;  %vm2907_vm13 = vmor %vm2905_vm0, %vm2906_vm9 }
0x18e9   :  { %v2902_v35 = vsub.f32 1.0, %v2901_v16  ;;  %v3004_v16 = vmul.f32 %v3000_v40, %v2951_v12 }
0x18ea   :  { %v2888_v53 = vmul.f32 %v4778_v8, %v2887_v1 }
0x18eb   :  { %v2903_v36 = vmul.f32 %v4780_v22, %v2902_v35 }
0x18ec   :  { %v2889_v5 = vadd.f32 %v4778_v8, %v2888_v53 }
0x18ed   :  { %v2904_v6 = vadd.f32 %v4780_v22, %v2903_v36 }
0x18ee   :  { %v2893_v46 = vsel %vm2892_vm1, %v4778_v8, %v2889_v5 }
0x18ef   :  { %v2908_v47 = vsel %vm2907_vm13, %v4780_v22, %v2904_v6  ;;  %v2898_v24 = vsel %vm2895_vm14, %v2897_v0, %v2893_v46 }
0x18f0   :  { %v2913_v45 = vsel %vm2910_vm8, %v2912_v41, %v2908_v47  ;;  %v2961_v51 = vmul.f32 2.0, %v2898_v24  ;;  %v2959_v8 = vmul.f32 %v2955_v44, %v2898_v24 }
0x18f1   :  { %v2962_v57 = vmul.f32 2.0, %v2913_v45  ;;  %v2960_v59 = vmul.f32 %v2956_v42, %v2913_v45 }
0x18f2   :  { %v4453_v30 = vadd.f32 -1.0, %v2961_v51 }
0x18f3   :  { %v4454_v11 = vadd.f32 -1.0, %v2962_v57  ;;  %v4919_v57 = vld [vmem:[#allocation13 + $0x8] sm:$0xff] }
0x18f4   :  { %2967 = vrot.lane.b32.xlu2 %v4453_v30, %s5164_s3 }
0x18f5   :  { %2969 = vrot.lane.b32.xlu0 %v4454_v11, %s5164_s3  ;;  %v4921_v11 = vld [vmem:[%s6688_s11 + $0x18] sm:$0xff] }
0x18fc   :  { %3013 = vrot.lane.b32.xlu2 %v4456_v31, %s5164_s3  ;;  %v4924_v31 = vld [vmem:[%s6688_s11] sm:$0xff] }
0x1942   :  { %v3012_v38 = vpop.permute.xlu1 %3011 }
0x1943   :  { %v3017_v18 = vmul.f32 %v3012_v38, %v6191_v56 }
0x1945   :  { %3021 = vrot.lane.b32.xlu2 %v3017_v18, %s5165_s6 }
0x194e   :  { %v2968_v19 = vpop.permute.xlu2 %2967 }
0x194f   :  { %v2973_v9 = vmul.f32 %v2968_v19, %v2898_v24 }
0x1951   :  { %2977 = vrot.lane.b32.xlu0 %v2973_v9, %s5165_s6 }
0x1956   :  { %v3014_v49 = vpop.permute.xlu2 %3013 }
0x1957   :  { %v3018_v62 = vmul.f32 %v3014_v49, %v2951_v12 }
0x1959   :  { %3023 = vrot.lane.b32.xlu0 %v3018_v62, %s5165_s6 }
0x1967   :  { %v2970_v10 = vpop.permute.xlu0 %2969 }
0x1968   :  { %v2974_v21 = vmul.f32 %v2970_v10, %v2913_v45 }
0x196a   :  { %2979 = vrot.lane.b32.xlu1 %v2974_v21, %s5165_s6 }
0x199f   :  { %v3022_v7 = vpop.permute.xlu2 %3021 }
0x19a0   :  { %v6208_v4 = vadd.f32 %v3022_v7, %v3003_v63 }
0x19a2   :  { %4781 = vtanh.f32 %v6208_v4 }
0x19a8   :  { %v4782_v37 = vpop.eup %4781 }
0x19a9   :  { %3033 = vrot.lane.b32.xlu0 %v4782_v37, %s5164_s3 }
0x19c3   :  { %v2978_v22 = vpop.permute.xlu0 %2977 }
0x19c4   :  { %v6213_v3 = vadd.f32 %v2978_v22, %v2959_v8 }
0x19c6   :  { %4783 = vtanh.f32 %v6213_v3 }
0x19cb   :  { %v3024_v1 = vpop.permute.xlu0 %3023 }
0x19cc   :  { %v4784_v25 = vpop.eup %4783  ;;  %v6217_v35 = vadd.f32 %v3024_v1, %v3004_v16 }
0x19cd   :  { %2989 = vrot.lane.b32.xlu1 %v4784_v25, %s5164_s3 }
0x19ce   :  { %4785 = vtanh.f32 %v6217_v35 }
0x19d4   :  { %v4786_v52 = vpop.eup %4785 }
0x19d5   :  { %3035 = vrot.lane.b32.xlu1 %v4786_v52, %s5164_s3 }
0x19dc   :  { %v2980_v53 = vpop.permute.xlu1 %2979 }
0x19dd   :  { %v6223_v2 = vadd.f32 %v2980_v53, %v2960_v59 }
0x19df   :  { %4787 = vtanh.f32 %v6223_v2 }
0x19e5   :  { %v4788_v54 = vpop.eup %4787 }
0x19e6   :  { %2991 = vrot.lane.b32.xlu2 %v4788_v54, %s5164_s3 }
0x1a1b   :  { %v3034_v0 = vpop.permute.xlu0 %3033 }
0x1a1c   :  { %v6235_v41 = vmul.f32 %v3034_v0, %v6191_v56  ;;  %v4918_v56 = vld [vmem:[#allocation13 + $0x10] sm:$0xff] }
0x1a1e   :  { %v3095_v47 = vrot.slane %v6235_v41, 5 }
0x1a3f   :  { %v2990_v36 = vpop.permute.xlu1 %2989 }
0x1a40   :  { %v2992_v58 = vpop.permute.xlu2 %2991  ;;  %v6227_v5 = vmul.f32 %v2990_v36, %v2898_v24 }
0x1a41   :  { %v6229_v15 = vmul.f32 %v2992_v58, %v2913_v45 }
0x1a42   :  { %v3061_v6 = vrot.slane %v6227_v5, 2 }
0x1a43   :  { %v3062_v20 = vrot.slane %v6229_v15, 1 }
0x1a45   :  { %v3063_v26 = vsel %vm476_vm2, %v3062_v20, %v3061_v6 }
0x1a46   :  { %3064 = vrot.lane.b32.xlu2 %v3063_v26, %s5165_s6 }
0x1a47   :  { %v3036_v46 = vpop.permute.xlu1 %3035 }
0x1a48   :  { %v6238_v17 = vmul.f32 %v3036_v46, %v2951_v12  ;;  %v4922_v12 = vld [vmem:[%s6688_s11 + $0x10] sm:$0xff]  ;;  %s5166_s11 = smov [#allocation18]  }
0x1a49   :  { %s4322_s10 = sshll.u32 %s5166_s11, 4  ;;  %s4323_s10 = int_to_ptr.vmem [resolvable:$true] %s4322_s10 }
0x1a4a   :  { %v3096_v24 = vrot.slane %v6238_v17, 4 }
0x1a4c   :  { %v3097_v45 = vsel %vm476_vm2, %v3096_v24, %v3095_v47 }
0x1a4d   :  { %3098 = vrot.lane.b32.xlu0 %v3097_v45, %s5165_s6 }
0x1aa0   :  { %v3065_v51 = vpop.permute.xlu2 %3064 }
0x1aa1   :  { %4457 = vmatmul.msk.f32.vlgmr.msrb.gmra.mxu0 %vm244_vm3, %v3065_v51 }
0x1aa2   :  { %4087 = vmatpush.msrb.mxu0 %v4917_v39 }
0x1aa4   :  { %4088 = vmatpush.msrb.mxu0 %v4918_v56 }
0x1aa6   :  { %4089 = vmatpush.msrb.mxu0 %v4919_v57 }
0x1aa8   :  { %4090 = vmatpush.msrb.mxu0 %v4920_v60 }
0x1abf   :  { %v3099_v30 = vpop.permute.xlu0 %3098 }
0x1ac0   :  { %4458 = vmatmul.msk.f32.vlgmr.msrb.gmra.mxu1 %vm244_vm3, %v3099_v30 }
0x1ac1   :  { %4120 = vmatpush.msrb.mxu1 %v4921_v11 }
0x1ac3   :  { %4121 = vmatpush.msrb.mxu1 %v4922_v12 }
0x1ac5   :  { %4122 = vmatpush.msrb.mxu1 %v4923_v28 }
0x1ac7   :  { %4123 = vmatpush.msrb.mxu1 %v4924_v31 }
0x1b1e   :  { %v3085_v38 = vpop.f32.mrf.mxu0 }
0x1b1f   :  { %v3089_v18 = vrot.slane %v3085_v38, 5  ;;  %v3090_v19 = vrot.slane %v3085_v38, 6 }
0x1b21   :  { %v3093_v9 = vadd.f32 %v3089_v18, %v6043_v13  ;;  %v3094_v49 = vadd.f32 %v3090_v19, %v6047_v34 }
0x1b23   :  { %v4459_v62 = vmul.f32 -1.442695, %v3093_v9  ;;  %v4460_v10 = vmul.f32 -1.442695, %v3094_v49 }
0x1b25   :  { %4789 = vpow2.f32 %v4459_v62 }
0x1b26   :  { %4791 = vpow2.f32 %v4460_v10 }
0x1b2b   :  { %v4790_v21 = vpop.eup %4789 }
0x1b2c   :  { %v4792_v61 = vpop.eup %4791  ;;  %v3135_v63 = vadd.f32 1.0, %v4790_v21 }
0x1b2d   :  { %v3136_v7 = vadd.f32 1.0, %v4792_v61 }
0x1b2e   :  { %4793 = vrcp.f32 %v3135_v63  ;;  %v3146_v1 = vand.u32 2147483647, %v3135_v63  ;;  %v3148_v25 = vand.u32 2147483648, %v3135_v63  ;;  %vm3142_vm6 = vweird.f32 %v3135_v63 }
0x1b2f   :  { %4795 = vrcp.f32 %v3136_v7  ;;  %v3161_v52 = vand.u32 2147483647, %v3136_v7  ;;  %v3163_v42 = vand.u32 2147483648, %v3136_v7  ;;  %vm3157_vm9 = vweird.f32 %v3136_v7 }
0x1b30   :  { %v3149_v58 = vor.u32 1.1754944e-38, %v3148_v25  ;;  %vm3147_vm0 = vcmp.eq.f32.partialorder %v3146_v1, 8.507059e+37 }
0x1b31   :  { %vm3162_vm15 = vcmp.eq.f32.partialorder %v3161_v52, 8.507059e+37  ;;  %v3164_v0 = vor.u32 1.1754944e-38, %v3163_v42 }
0x1b34   :  { %v4794_v37 = vpop.eup %4793 }
0x1b35   :  { %v4796_v44 = vpop.eup %4795  ;;  %v3138_v8 = vmul.f32 %v4794_v37, %v3135_v63  ;;  %vm3143_vm5 = vweird.f32 %v4794_v37 }
0x1b36   :  { %v3153_v22 = vmul.f32 %v4796_v44, %v3136_v7  ;;  %vm3158_vm11 = vweird.f32 %v4796_v44  ;;  %vm3144_vm10 = vmor %vm3142_vm6, %vm3143_vm5 }
0x1b37   :  { %v3139_v40 = vsub.f32 1.0, %v3138_v8  ;;  %vm3159_vm12 = vmor %vm3157_vm9, %vm3158_vm11 }
0x1b38   :  { %v3154_v16 = vsub.f32 1.0, %v3153_v22 }
0x1b39   :  { %v3140_v59 = vmul.f32 %v4794_v37, %v3139_v40 }
0x1b3a   :  { %v3155_v53 = vmul.f32 %v4796_v44, %v3154_v16 }
0x1b3b   :  { %v3141_v54 = vadd.f32 %v4794_v37, %v3140_v59 }
0x1b3c   :  { %v3156_v36 = vadd.f32 %v4796_v44, %v3155_v53 }
0x1b3d   :  { %v3119_v6 = vpop.f32.mrf.mxu1  ;;  %v3145_v20 = vsel %vm3144_vm10, %v4794_v37, %v3141_v54 }
0x1b3e   :  { %v3123_v26 = vrot.slane %v3119_v6, 4  ;;  %v3124_v46 = vrot.slane %v3119_v6, 5  ;;  %v3160_v47 = vsel %vm3159_vm12, %v4796_v44, %v3156_v36  ;;  %v6260_v24 = vsel %vm3147_vm0, %v3149_v58, %v3145_v20 }
0x1b3f   :  { %v6262_v45 = vsel %vm3162_vm15, %v3164_v0, %v3160_v47  ;;  %v3213_v51 = vmul.f32 2.0, %v6260_v24 }
0x1b40   :  { %v3127_v39 = vadd.f32 %v3123_v26, %v6041_v43  ;;  %v3128_v56 = vadd.f32 %v3124_v46, %v6049_v55  ;;  %v3214_v57 = vmul.f32 2.0, %v6262_v45 }
0x1b41   :  { %v4463_v60 = vadd.f32 -1.0, %v3213_v51 }
0x1b42   :  { %v4461_v30 = vmul.f32 -1.442695, %v3127_v39  ;;  %v4462_v11 = vmul.f32 -1.442695, %v3128_v56  ;;  %v4464_v12 = vadd.f32 -1.0, %v3214_v57  ;;  %v3207_v56 = vrot.slane %v6213_v3, 7 }
0x1b43   :  { %3219 = vrot.lane.b32.xlu1 %v4463_v60, %s5164_s3  ;;  %v3208_v57 = vrot.slane %v6223_v2, 7  ;;  %v3252_v3 = vrot.slane %v6217_v35, 1 }
0x1b44   :  { %4797 = vpow2.f32 %v4461_v30  ;;  %3221 = vrot.lane.b32.xlu2 %v4464_v12, %s5164_s3  ;;  %v3211_v60 = vmul.f32 %v3207_v56, %v6260_v24 }
0x1b45   :  { %4799 = vpow2.f32 %v4462_v11  ;;  %v3212_v11 = vmul.f32 %v3208_v57, %v6262_v45 }
0x1b4a   :  { %v4798_v28 = vpop.eup %4797 }
0x1b4b   :  { %v4800_v31 = vpop.eup %4799  ;;  %v3173_v38 = vadd.f32 1.0, %v4798_v28 }
0x1b4c   :  { %v3174_v18 = vadd.f32 1.0, %v4800_v31 }
0x1b4d   :  { %4801 = vrcp.f32 %v3173_v38  ;;  %v3186_v61 = vand.u32 2147483648, %v3173_v38  ;;  %v3184_v37 = vand.u32 2147483647, %v3173_v38  ;;  %vm3180_vm14 = vweird.f32 %v3173_v38 }
0x1b4e   :  { %4803 = vrcp.f32 %v3174_v18  ;;  %v3201_v63 = vand.u32 2147483648, %v3174_v18  ;;  %v3199_v8 = vand.u32 2147483647, %v3174_v18  ;;  %vm3195_vm8 = vweird.f32 %v3174_v18 }
0x1b4f   :  { %v3187_v16 = vor.u32 1.1754944e-38, %v3186_v61  ;;  %vm3185_vm6 = vcmp.eq.f32.partialorder %v3184_v37, 8.507059e+37 }
0x1b50   :  { %v3202_v1 = vor.u32 1.1754944e-38, %v3201_v63  ;;  %vm3200_vm9 = vcmp.eq.f32.partialorder %v3199_v8, 8.507059e+37 }
0x1b53   :  { %v4802_v19 = vpop.eup %4801 }
0x1b54   :  { %v4804_v9 = vpop.eup %4803  ;;  %v3176_v49 = vmul.f32 %v4802_v19, %v3173_v38  ;;  %vm3181_vm1 = vweird.f32 %v4802_v19 }
0x1b55   :  { %v3191_v62 = vmul.f32 %v4804_v9, %v3174_v18  ;;  %vm3196_vm13 = vweird.f32 %v4804_v9  ;;  %vm3182_vm5 = vmor %vm3180_vm14, %vm3181_vm1 }
0x1b56   :  { %v3177_v10 = vsub.f32 1.0, %v3176_v49  ;;  %vm3197_vm11 = vmor %vm3195_vm8, %vm3196_vm13 }
0x1b57   :  { %v3192_v21 = vsub.f32 1.0, %v3191_v62  ;;  %v3251_v62 = vrot.slane %v6208_v4, 1 }
0x1b58   :  { %v3178_v7 = vmul.f32 %v4802_v19, %v3177_v10 }
0x1b59   :  { %v3193_v44 = vmul.f32 %v4804_v9, %v3192_v21 }
0x1b5a   :  { %v3179_v22 = vadd.f32 %v4802_v19, %v3178_v7 }
0x1b5b   :  { %v3194_v40 = vadd.f32 %v4804_v9, %v3193_v44 }
0x1b5c   :  { %v3183_v25 = vsel %vm3182_vm5, %v4802_v19, %v3179_v22 }
0x1b5d   :  { %v3198_v52 = vsel %vm3197_vm11, %v4804_v9, %v3194_v40  ;;  %v3188_v42 = vsel %vm3185_vm6, %v3187_v16, %v3183_v25 }
0x1b5e   :  { %v3203_v59 = vsel %vm3200_vm9, %v3202_v1, %v3198_v52  ;;  %v3257_v53 = vmul.f32 2.0, %v3188_v42  ;;  %v3255_v10 = vmul.f32 %v3251_v62, %v3188_v42 }
0x1b5f   :  { %v3258_v54 = vmul.f32 2.0, %v3203_v59  ;;  %v3256_v2 = vmul.f32 %v3252_v3, %v3203_v59 }
0x1b60   :  { %v4465_v36 = vadd.f32 -1.0, %v3257_v53 }
0x1b61   :  { %v4466_v58 = vadd.f32 -1.0, %v3258_v54 }
0x1b62   :  { %3263 = vrot.lane.b32.xlu0 %v4465_v36, %s5164_s3 }
0x1b63   :  { %3265 = vrot.lane.b32.xlu1 %v4466_v58, %s5164_s3 }
0x1b9e   :  { %v3222_v6 = vpop.permute.xlu2 %3221 }
0x1b9f   :  { %v3226_v0 = vmul.f32 %v3222_v6, %v6262_v45 }
0x1ba1   :  { %3231 = vrot.lane.b32.xlu0 %v3226_v0, %s5165_s6 }
0x1bb5   :  { %v3220_v20 = vpop.permute.xlu1 %3219 }
0x1bb6   :  { %v3225_v26 = vmul.f32 %v3220_v20, %v6260_v24 }
0x1bb8   :  { %3229 = vrot.lane.b32.xlu2 %v3225_v26, %s5165_s6 }
0x1bd4   :  { %v3264_v46 = vpop.permute.xlu0 %3263 }
0x1bd5   :  { %v3266_v47 = vpop.permute.xlu1 %3265  ;;  %v3269_v51 = vmul.f32 %v3264_v46, %v3188_v42 }
0x1bd6   :  { %v3270_v39 = vmul.f32 %v3266_v47, %v3203_v59 }
0x1bd7   :  { %3273 = vrot.lane.b32.xlu1 %v3269_v51, %s5165_s6 }
0x1bd8   :  { %3275 = vrot.lane.b32.xlu2 %v3270_v39, %s5165_s6 }
0x1c12   :  { %v3230_v30 = vpop.permute.xlu2 %3229 }
0x1c13   :  { %v6282_v12 = vadd.f32 %v3230_v30, %v3211_v60  ;;  %v3232_v28 = vpop.permute.xlu0 %3231 }
0x1c14   :  { %v6284_v31 = vadd.f32 %v3232_v28, %v3212_v11 }
0x1c15   :  { %4805 = vtanh.f32 %v6282_v12 }
0x1c16   :  { %4807 = vtanh.f32 %v6284_v31 }
0x1c1b   :  { %v4806_v38 = vpop.eup %4805 }
0x1c1c   :  { %v4808_v18 = vpop.eup %4807  ;;  %3241 = vrot.lane.b32.xlu0 %v4806_v38, %s5164_s3 }
0x1c1d   :  { %3243 = vrot.lane.b32.xlu1 %v4808_v18, %s5164_s3 }
0x1c32   :  { %v3276_v19 = vpop.permute.xlu2 %3275 }
0x1c33   :  { %v6291_v9 = vadd.f32 %v3276_v19, %v3256_v2 }
0x1c35   :  { %4809 = vtanh.f32 %v6291_v9 }
0x1c3b   :  { %v4810_v49 = vpop.eup %4809 }
0x1c3c   :  { %3287 = vrot.lane.b32.xlu0 %v4810_v49, %s5164_s3 }
0x1c49   :  { %v3274_v21 = vpop.permute.xlu1 %3273 }
0x1c4a   :  { %v6296_v61 = vadd.f32 %v3274_v21, %v3255_v10 }
0x1c4c   :  { %4811 = vtanh.f32 %v6296_v61 }
0x1c52   :  { %v4812_v63 = vpop.eup %4811 }
0x1c53   :  { %3285 = vrot.lane.b32.xlu2 %v4812_v63, %s5164_s3 }
0x1c8e   :  { %v3242_v35 = vpop.permute.xlu0 %3241 }
0x1c8f   :  { %v3244_v7 = vpop.permute.xlu1 %3243  ;;  %v6301_v37 = vmul.f32 %v3242_v35, %v6260_v24 }
0x1c90   :  { %v6304_v44 = vmul.f32 %v3244_v7, %v6262_v45 }
0x1c91   :  { %v3313_v8 = vrot.slane %v6301_v37, 3 }
0x1c92   :  { %v3314_v4 = vrot.slane %v6304_v44, 2 }
0x1c94   :  { %v3315_v22 = vsel %vm476_vm2, %v3314_v4, %v3313_v8 }
0x1c95   :  { %3316 = vrot.lane.b32.xlu1 %v3315_v22, %s5165_s6 }
0x1cad   :  { %v3286_v40 = vpop.permute.xlu2 %3285 }
0x1cae   :  { %v3288_v16 = vpop.permute.xlu0 %3287  ;;  %v6310_v1 = vmul.f32 %v3286_v40, %v3188_v42 }
0x1caf   :  { %v6312_v25 = vmul.f32 %v3288_v16, %v3203_v59 }
0x1cb0   :  { %v3347_v24 = vrot.slane %v6310_v1, 4 }
0x1cb1   :  { %v3348_v52 = vrot.slane %v6312_v25, 3 }
0x1cb3   :  { %v3349_v45 = vsel %vm476_vm2, %v3348_v52, %v3347_v24 }
0x1cb4   :  { %3350 = vrot.lane.b32.xlu2 %v3349_v45, %s5165_s6 }
0x1d07   :  { %v3317_v53 = vpop.permute.xlu1 %3316 }
0x1d08   :  { %4467 = vmatmul.msk.f32.vlgmr.msra.gmra.mxu2 %vm244_vm3, %v3317_v53 }
0x1d0e   :  { %v3351_v54 = vpop.permute.xlu2 %3350 }
0x1d0f   :  { %4468 = vmatmul.msk.f32.vlgmr.msra.gmra.mxu3 %vm244_vm3, %v3351_v54 }
0x1d8b   :  { %v3337_v36 = vpop.f32.mrf.mxu2 }
0x1d8c   :  { %v3341_v58 = vrot.slane %v3337_v36, 4  ;;  %v3342_v42 = vrot.slane %v3337_v36, 5 }
0x1d8e   :  { %v3345_v59 = vadd.f32 %v3341_v58, %v6043_v13  ;;  %v3346_v6 = vadd.f32 %v3342_v42, %v6047_v34 }
0x1d90   :  { %v4469_v0 = vmul.f32 -1.442695, %v3345_v59  ;;  %v4470_v20 = vmul.f32 -1.442695, %v3346_v6 }
0x1d92   :  { %4813 = vpow2.f32 %v4469_v0  ;;  %v3371_v26 = vpop.f32.mrf.mxu3 }
0x1d93   :  { %4815 = vpow2.f32 %v4470_v20  ;;  %v3375_v46 = vrot.slane %v3371_v26, 5  ;;  %v3376_v47 = vrot.slane %v3371_v26, 6 }
0x1d95   :  { %v3379_v51 = vadd.f32 %v3375_v46, %v6041_v43  ;;  %v3380_v39 = vadd.f32 %v3376_v47, %v6049_v55 }
0x1d97   :  { %v4471_v56 = vmul.f32 -1.442695, %v3379_v51  ;;  %v4472_v57 = vmul.f32 -1.442695, %v3380_v39 }
0x1d98   :  { %v4814_v60 = vpop.eup %4813 }
0x1d99   :  { %v4816_v30 = vpop.eup %4815  ;;  %v3387_v11 = vadd.f32 1.0, %v4814_v60  ;;  %4817 = vpow2.f32 %v4471_v56 }
0x1d9a   :  { %v3388_v28 = vadd.f32 1.0, %v4816_v30  ;;  %4819 = vpow2.f32 %v4472_v57 }
0x1d9b   :  { %4821 = vrcp.f32 %v3387_v11  ;;  %v3398_v35 = vand.u32 2147483647, %v3387_v11  ;;  %v3400_v7 = vand.u32 2147483648, %v3387_v11  ;;  %vm3394_vm0 = vweird.f32 %v3387_v11 }
0x1d9c   :  { %4823 = vrcp.f32 %v3388_v28  ;;  %v3413_v8 = vand.u32 2147483647, %v3388_v28  ;;  %v3415_v4 = vand.u32 2147483648, %v3388_v28  ;;  %vm3409_vm15 = vweird.f32 %v3388_v28 }
0x1d9d   :  { %vm3399_vm13 = vcmp.eq.f32.partialorder %v3398_v35, 8.507059e+37  ;;  %v3401_v54 = vor.u32 1.1754944e-38, %v3400_v7 }
0x1d9e   :  { %vm3414_vm8 = vcmp.eq.f32.partialorder %v3413_v8, 8.507059e+37  ;;  %v3416_v58 = vor.u32 1.1754944e-38, %v3415_v4 }
0x1d9f   :  { %v4818_v38 = vpop.eup %4817 }
0x1da0   :  { %v4820_v18 = vpop.eup %4819  ;;  %v3425_v3 = vadd.f32 1.0, %v4818_v38 }
0x1da1   :  { %v4822_v2 = vpop.eup %4821  ;;  %v3426_v19 = vadd.f32 1.0, %v4820_v18 }
0x1da2   :  { %v4824_v49 = vpop.eup %4823  ;;  %v3390_v62 = vmul.f32 %v4822_v2, %v3387_v11  ;;  %4825 = vrcp.f32 %v3425_v3  ;;  %vm3395_vm10 = vweird.f32 %v4822_v2  ;;  %v3438_v51 = vand.u32 2147483648, %v3425_v3 }
0x1da3   :  { %v3405_v10 = vmul.f32 %v4824_v49, %v3388_v28  ;;  %4827 = vrcp.f32 %v3426_v19  ;;  %vm3410_vm12 = vweird.f32 %v4824_v49  ;;  %vm3396_vm1 = vmor %vm3394_vm0, %vm3395_vm10  ;;  %v3453_v20 = vand.u32 2147483648, %v3426_v19 }
0x1da4   :  { %v3391_v21 = vsub.f32 1.0, %v3390_v62  ;;  %vm3411_vm14 = vmor %vm3409_vm15, %vm3410_vm12  ;;  %v3436_v57 = vand.u32 2147483647, %v3425_v3  ;;  %v3451_v11 = vand.u32 2147483647, %v3426_v19  ;;  %vm3432_vm6 = vweird.f32 %v3425_v3 }
0x1da5   :  { %v3406_v63 = vsub.f32 1.0, %v3405_v10  ;;  %vm3447_vm9 = vweird.f32 %v3426_v19 }
0x1da6   :  { %v3392_v22 = vmul.f32 %v4822_v2, %v3391_v21  ;;  %vm3437_vm15 = vcmp.eq.f32.partialorder %v3436_v57, 8.507059e+37  ;;  %vm3452_vm0 = vcmp.eq.f32.partialorder %v3451_v11, 8.507059e+37 }
0x1da7   :  { %v3407_v40 = vmul.f32 %v4824_v49, %v3406_v63 }
0x1da8   :  { %v4826_v16 = vpop.eup %4825  ;;  %v3393_v24 = vadd.f32 %v4822_v2, %v3392_v22 }
0x1da9   :  { %v4828_v52 = vpop.eup %4827  ;;  %v3428_v45 = vmul.f32 %v4826_v16, %v3425_v3  ;;  %v3408_v53 = vadd.f32 %v4824_v49, %v3407_v40  ;;  %vm3433_vm5 = vweird.f32 %v4826_v16 }
0x1daa   :  { %v3443_v36 = vmul.f32 %v4828_v52, %v3426_v19  ;;  %v3397_v42 = vsel %vm3396_vm1, %v4822_v2, %v3393_v24  ;;  %vm3448_vm11 = vweird.f32 %v4828_v52  ;;  %vm3434_vm10 = vmor %vm3432_vm6, %vm3433_vm5  ;;  %v3439_v2 = vor.u32 1.1754944e-38, %v3438_v51 }
0x1dab   :  { %v3429_v59 = vsub.f32 1.0, %v3428_v45  ;;  %v3412_v6 = vsel %vm3411_vm14, %v4824_v49, %v3408_v53  ;;  %v6324_v0 = vsel %vm3399_vm13, %v3401_v54, %v3397_v42  ;;  %vm3449_vm12 = vmor %vm3447_vm9, %vm3448_vm11  ;;  %v3454_v49 = vor.u32 1.1754944e-38, %v3453_v20 }
0x1dac   :  { %v3444_v26 = vsub.f32 1.0, %v3443_v36  ;;  %v6326_v46 = vsel %vm3414_vm8, %v3416_v58, %v3412_v6  ;;  %v3465_v47 = vmul.f32 2.0, %v6324_v0  ;;  %v3460_v53 = vrot.slane %v6284_v31, 7 }
0x1dad   :  { %v3466_v39 = vmul.f32 2.0, %v6326_v46  ;;  %v3430_v56 = vmul.f32 %v4826_v16, %v3429_v59  ;;  %v3503_v42 = vrot.slane %v6296_v61, 1  ;;  %v3459_v31 = vrot.slane %v6282_v12, 7 }
0x1dae   :  { %v4473_v60 = vadd.f32 -1.0, %v3465_v47  ;;  %v3445_v30 = vmul.f32 %v4828_v52, %v3444_v26  ;;  %v3464_v54 = vmul.f32 %v3460_v53, %v6326_v46 }
0x1daf   :  { %v4474_v28 = vadd.f32 -1.0, %v3466_v39  ;;  %v3431_v38 = vadd.f32 %v4826_v16, %v3430_v56  ;;  %v3463_v51 = vmul.f32 %v3459_v31, %v6324_v0  ;;  %v3504_v56 = vrot.slane %v6291_v9, 1 }
0x1db0   :  { %3471 = vrot.lane.b32.xlu0 %v4473_v60, %s5164_s3  ;;  %v3446_v18 = vadd.f32 %v4828_v52, %v3445_v30 }
0x1db1   :  { %3473 = vrot.lane.b32.xlu1 %v4474_v28, %s5164_s3  ;;  %v3435_v62 = vsel %vm3434_vm10, %v4826_v16, %v3431_v38 }
0x1db2   :  { %v3450_v10 = vsel %vm3449_vm12, %v4828_v52, %v3446_v18  ;;  %v3440_v21 = vsel %vm3437_vm15, %v3439_v2, %v3435_v62 }
0x1db3   :  { %v3455_v63 = vsel %vm3452_vm0, %v3454_v49, %v3450_v10  ;;  %v3509_v35 = vmul.f32 2.0, %v3440_v21  ;;  %v3507_v59 = vmul.f32 %v3503_v42, %v3440_v21 }
0x1db4   :  { %v3510_v7 = vmul.f32 2.0, %v3455_v63  ;;  %v3508_v57 = vmul.f32 %v3504_v56, %v3455_v63 }
0x1db5   :  { %v4475_v8 = vadd.f32 -1.0, %v3509_v35 }
0x1db6   :  { %v4476_v3 = vadd.f32 -1.0, %v3510_v7 }
0x1db7   :  { %3515 = vrot.lane.b32.xlu2 %v4475_v8, %s5164_s3 }
0x1db8   :  { %3517 = vrot.lane.b32.xlu0 %v4476_v3, %s5164_s3 }
0x1e11   :  { %v3516_v19 = vpop.permute.xlu2 %3515 }
0x1e12   :  { %v3521_v4 = vmul.f32 %v3516_v19, %v3440_v21 }
0x1e14   :  { %3525 = vrot.lane.b32.xlu0 %v3521_v4, %s5165_s6 }
0x1e22   :  { %v3472_v22 = vpop.permute.xlu0 %3471 }
0x1e23   :  { %v3474_v40 = vpop.permute.xlu1 %3473  ;;  %v3477_v16 = vmul.f32 %v3472_v22, %v6324_v0 }
0x1e24   :  { %v3478_v24 = vmul.f32 %v3474_v40, %v6326_v46 }
0x1e25   :  { %3481 = vrot.lane.b32.xlu1 %v3477_v16, %s5165_s6 }
0x1e26   :  { %3483 = vrot.lane.b32.xlu2 %v3478_v24, %s5165_s6 }
0x1e2a   :  { %v3518_v52 = vpop.permute.xlu0 %3517 }
0x1e2b   :  { %v3522_v45 = vmul.f32 %v3518_v52, %v3455_v63 }
0x1e2d   :  { %3527 = vrot.lane.b32.xlu1 %v3522_v45, %s5165_s6 }
0x1e80   :  { %v3484_v36 = vpop.permute.xlu2 %3483 }
0x1e81   :  { %v6342_v58 = vadd.f32 %v3484_v36, %v3464_v54 }
0x1e83   :  { %4829 = vtanh.f32 %v6342_v58 }
0x1e86   :  { %v3526_v6 = vpop.permute.xlu0 %3525 }
0x1e87   :  { %v6346_v20 = vadd.f32 %v3526_v6, %v3507_v59 }
0x1e89   :  { %v4830_v26 = vpop.eup %4829  ;;  %4831 = vtanh.f32 %v6346_v20 }
0x1e8a   :  { %3495 = vrot.lane.b32.xlu0 %v4830_v26, %s5164_s3 }
0x1e8f   :  { %v4832_v47 = vpop.eup %4831 }
0x1e90   :  { %3537 = vrot.lane.b32.xlu1 %v4832_v47, %s5164_s3 }
0x1e97   :  { %v3482_v39 = vpop.permute.xlu1 %3481 }
0x1e98   :  { %v6353_v61 = vadd.f32 %v3482_v39, %v3463_v51 }
0x1e9a   :  { %4833 = vtanh.f32 %v6353_v61 }
0x1e9f   :  { %v3528_v60 = vpop.permute.xlu1 %3527 }
0x1ea0   :  { %v4834_v30 = vpop.eup %4833  ;;  %v6357_v11 = vadd.f32 %v3528_v60, %v3508_v57 }
0x1ea1   :  { %3493 = vrot.lane.b32.xlu2 %v4834_v30, %s5164_s3 }
0x1ea2   :  { %4835 = vtanh.f32 %v6357_v11 }
0x1ea8   :  { %v4836_v28 = vpop.eup %4835 }
0x1ea9   :  { %3539 = vrot.lane.b32.xlu2 %v4836_v28, %s5164_s3 }
0x1efb   :  { %v3494_v12 = vpop.permute.xlu2 %3493 }
0x1efc   :  { %v3496_v38 = vpop.permute.xlu0 %3495  ;;  %v6363_v18 = vmul.f32 %v3494_v12, %v6324_v0 }
0x1efd   :  { %v6366_v2 = vmul.f32 %v3496_v38, %v6326_v46 }
0x1efe   :  { %v3565_v9 = vrot.slane %v6363_v18, 4 }
0x1eff   :  { %v3566_v49 = vrot.slane %v6366_v2, 3 }
0x1f01   :  { %v3567_v62 = vsel %vm476_vm2, %v3566_v49, %v3565_v9 }
0x1f02   :  { %3568 = vrot.lane.b32.xlu0 %v3567_v62, %s5165_s6  ;;  %v3538_v10 = vpop.permute.xlu1 %3537 }
0x1f03   :  { %v3540_v35 = vpop.permute.xlu2 %3539  ;;  %v6372_v7 = vmul.f32 %v3538_v10, %v3440_v21 }
0x1f04   :  { %v6374_v8 = vmul.f32 %v3540_v35, %v3455_v63 }
0x1f05   :  { %v3599_v0 = vrot.slane %v6372_v7, 3 }
0x1f06   :  { %v3600_v3 = vrot.slane %v6374_v8, 2 }
0x1f08   :  { %v3601_v46 = vsel %vm476_vm2, %v3600_v3, %v3599_v0 }
0x1f09   :  { %3602 = vrot.lane.b32.xlu1 %v3601_v46, %s5165_s6 }
0x1f74   :  { %v3569_v19 = vpop.permute.xlu0 %3568 }
0x1f75   :  { %4477 = vmatmul.msk.f32.vlgmr.msra.gmra.mxu0 %vm244_vm3, %v3569_v19 }
0x1f7b   :  { %v3603_v4 = vpop.permute.xlu1 %3602 }
0x1f7c   :  { %4478 = vmatmul.msk.f32.vlgmr.msra.gmra.mxu1 %vm244_vm3, %v3603_v4 }
0x1ff2   :  { %v3589_v22 = vpop.f32.mrf.mxu0 }
0x1ff3   :  { %v3593_v40 = vrot.slane %v3589_v22, 3  ;;  %v3594_v21 = vrot.slane %v3589_v22, 4 }
0x1ff5   :  { %v3597_v63 = vadd.f32 %v3593_v40, %v6043_v13  ;;  %v3598_v16 = vadd.f32 %v3594_v21, %v6047_v34 }
0x1ff7   :  { %v4479_v24 = vmul.f32 -1.442695, %v3597_v63  ;;  %v4480_v52 = vmul.f32 -1.442695, %v3598_v16 }
0x1ff9   :  { %4837 = vpow2.f32 %v4479_v24  ;;  %v3623_v45 = vpop.f32.mrf.mxu1 }
0x1ffa   :  { %4839 = vpow2.f32 %v4480_v52  ;;  %v3627_v53 = vrot.slane %v3623_v45, 6  ;;  %v3628_v54 = vrot.slane %v3623_v45, 7 }
0x1ffc   :  { %v3631_v36 = vadd.f32 %v3627_v53, %v6041_v43  ;;  %v3632_v42 = vadd.f32 %v3628_v54, %v6049_v55 }
0x1ffe   :  { %v4481_v59 = vmul.f32 -1.442695, %v3631_v36  ;;  %v4482_v6 = vmul.f32 -1.442695, %v3632_v42 }
0x1fff   :  { %v4838_v26 = vpop.eup %4837 }
0x2000   :  { %v4840_v47 = vpop.eup %4839  ;;  %v3639_v31 = vadd.f32 1.0, %v4838_v26  ;;  %4841 = vpow2.f32 %v4481_v59 }
0x2001   :  { %v3640_v51 = vadd.f32 1.0, %v4840_v47  ;;  %4843 = vpow2.f32 %v4482_v6 }
0x2002   :  { %4845 = vrcp.f32 %v3639_v31  ;;  %v3650_v62 = vand.u32 2147483647, %v3639_v31  ;;  %v3652_v10 = vand.u32 2147483648, %v3639_v31  ;;  %vm3646_vm8 = vweird.f32 %v3639_v31 }
0x2003   :  { %4847 = vrcp.f32 %v3640_v51  ;;  %v3665_v35 = vand.u32 2147483647, %v3640_v51  ;;  %v3667_v0 = vand.u32 2147483648, %v3640_v51  ;;  %vm3661_vm14 = vweird.f32 %v3640_v51 }
0x2004   :  { %vm3651_vm11 = vcmp.eq.f32.partialorder %v3650_v62, 8.507059e+37  ;;  %v3653_v63 = vor.u32 1.1754944e-38, %v3652_v10 }
0x2005   :  { %vm3666_vm9 = vcmp.eq.f32.partialorder %v3665_v35, 8.507059e+37  ;;  %v3668_v24 = vor.u32 1.1754944e-38, %v3667_v0 }
0x2006   :  { %v4842_v39 = vpop.eup %4841 }
0x2007   :  { %v4844_v56 = vpop.eup %4843  ;;  %v3677_v57 = vadd.f32 1.0, %v4842_v39 }
0x2008   :  { %v4846_v60 = vpop.eup %4845  ;;  %v3678_v30 = vadd.f32 1.0, %v4844_v56 }
0x2009   :  { %v4848_v28 = vpop.eup %4847  ;;  %v3642_v12 = vmul.f32 %v4846_v60, %v3639_v31  ;;  %4849 = vrcp.f32 %v3677_v57  ;;  %vm3647_vm1 = vweird.f32 %v4846_v60  ;;  %v3690_v26 = vand.u32 2147483648, %v3677_v57 }
0x200a   :  { %v3657_v38 = vmul.f32 %v4848_v28, %v3640_v51  ;;  %4851 = vrcp.f32 %v3678_v30  ;;  %vm3662_vm13 = vweird.f32 %v4848_v28  ;;  %vm3648_vm5 = vmor %vm3646_vm8, %vm3647_vm1  ;;  %v3705_v36 = vand.u32 2147483648, %v3678_v30 }
0x200b   :  { %v3643_v9 = vsub.f32 1.0, %v3642_v12  ;;  %vm3663_vm6 = vmor %vm3661_vm14, %vm3662_vm13  ;;  %v3688_v51 = vand.u32 2147483647, %v3677_v57  ;;  %vm3684_vm15 = vweird.f32 %v3677_v57  ;;  %vm3699_vm0 = vweird.f32 %v3678_v30 }
0x200c   :  { %v3658_v49 = vsub.f32 1.0, %v3657_v38 }
0x200d   :  { %v3644_v3 = vmul.f32 %v4846_v60, %v3643_v9  ;;  %v3691_v9 = vor.u32 1.1754944e-38, %v3690_v26  ;;  %vm3689_vm14 = vcmp.eq.f32.partialorder %v3688_v51, 8.507059e+37 }
0x200e   :  { %v3659_v46 = vmul.f32 %v4848_v28, %v3658_v49  ;;  %v3706_v49 = vor.u32 1.1754944e-38, %v3705_v36 }
0x200f   :  { %v4850_v19 = vpop.eup %4849  ;;  %v3645_v4 = vadd.f32 %v4846_v60, %v3644_v3 }
0x2010   :  { %v4852_v22 = vpop.eup %4851  ;;  %v3680_v40 = vmul.f32 %v4850_v19, %v3677_v57  ;;  %v3660_v21 = vadd.f32 %v4848_v28, %v3659_v46  ;;  %vm3685_vm10 = vweird.f32 %v4850_v19 }
0x2011   :  { %v3695_v16 = vmul.f32 %v4852_v22, %v3678_v30  ;;  %v3649_v52 = vsel %vm3648_vm5, %v4846_v60, %v3645_v4  ;;  %vm3700_vm12 = vweird.f32 %v4852_v22  ;;  %v3703_v60 = vand.u32 2147483647, %v3678_v30  ;;  %vm3686_vm1 = vmor %vm3684_vm15, %vm3685_vm10 }
0x2012   :  { %v3681_v45 = vsub.f32 1.0, %v3680_v40  ;;  %v3664_v53 = vsel %vm3663_vm6, %v4848_v28, %v3660_v21  ;;  %v6386_v54 = vsel %vm3651_vm11, %v3653_v63, %v3649_v52  ;;  %vm3701_vm13 = vmor %vm3699_vm0, %vm3700_vm12  ;;  %v3711_v52 = vrot.slane %v6353_v61, 7 }
0x2013   :  { %v3696_v42 = vsub.f32 1.0, %v3695_v16  ;;  %v6388_v59 = vsel %vm3666_vm9, %v3668_v24, %v3664_v53  ;;  %v3717_v6 = vmul.f32 2.0, %v6386_v54  ;;  %vm3704_vm8 = vcmp.eq.f32.partialorder %v3703_v60, 8.507059e+37 }
0x2014   :  { %v3718_v47 = vmul.f32 2.0, %v6388_v59  ;;  %v3682_v31 = vmul.f32 %v4850_v19, %v3681_v45  ;;  %v3715_v45 = vmul.f32 %v3711_v52, %v6386_v54 }
0x2015   :  { %v4483_v39 = vadd.f32 -1.0, %v3717_v6  ;;  %v3697_v56 = vmul.f32 %v4852_v22, %v3696_v42  ;;  %v3755_v42 = vrot.slane %v6346_v20, 1  ;;  %v3756_v6 = vrot.slane %v6357_v11, 1 }
0x2016   :  { %v4484_v12 = vadd.f32 -1.0, %v3718_v47  ;;  %v3683_v28 = vadd.f32 %v4850_v19, %v3682_v31  ;;  %v3712_v20 = vrot.slane %v6342_v58, 7 }
0x2017   :  { %3723 = vrot.lane.b32.xlu2 %v4483_v39, %s5164_s3  ;;  %v3698_v38 = vadd.f32 %v4852_v22, %v3697_v56 }
0x2018   :  { %3725 = vrot.lane.b32.xlu0 %v4484_v12, %s5164_s3  ;;  %v3687_v62 = vsel %vm3686_vm1, %v4850_v19, %v3683_v28  ;;  %v3716_v11 = vmul.f32 %v3712_v20, %v6388_v59 }
0x2019   :  { %v3702_v10 = vsel %vm3701_vm13, %v4852_v22, %v3698_v38  ;;  %v3692_v35 = vsel %vm3689_vm14, %v3691_v9, %v3687_v62 }
0x201a   :  { %v3707_v0 = vsel %vm3704_vm8, %v3706_v49, %v3702_v10  ;;  %v3761_v3 = vmul.f32 2.0, %v3692_v35  ;;  %v3759_v26 = vmul.f32 %v3755_v42, %v3692_v35 }
0x201b   :  { %v3762_v46 = vmul.f32 2.0, %v3707_v0  ;;  %v3760_v47 = vmul.f32 %v3756_v6, %v3707_v0 }
0x201c   :  { %v4485_v4 = vadd.f32 -1.0, %v3761_v3 }
0x201d   :  { %v4486_v57 = vadd.f32 -1.0, %v3762_v46 }
0x201e   :  { %3767 = vrot.lane.b32.xlu1 %v4485_v4, %s5164_s3 }
0x201f   :  { %3769 = vrot.lane.b32.xlu2 %v4486_v57, %s5164_s3 }
0x2071   :  { %v3724_v30 = vpop.permute.xlu2 %3723 }
0x2072   :  { %v3729_v40 = vmul.f32 %v3724_v30, %v6386_v54 }
0x2074   :  { %3733 = vrot.lane.b32.xlu0 %v3729_v40, %s5165_s6 }
0x2079   :  { %v3770_v21 = vpop.permute.xlu2 %3769 }
0x207a   :  { %v3774_v19 = vmul.f32 %v3770_v21, %v3707_v0 }
0x207c   :  { %3779 = vrot.lane.b32.xlu0 %v3774_v19, %s5165_s6 }
0x208a   :  { %v3726_v22 = vpop.permute.xlu0 %3725 }
0x208b   :  { %v3730_v63 = vmul.f32 %v3726_v22, %v6388_v59 }
0x208d   :  { %3735 = vrot.lane.b32.xlu1 %v3730_v63, %s5165_s6 }
0x2090   :  { %v3768_v16 = vpop.permute.xlu1 %3767 }
0x2091   :  { %v3773_v24 = vmul.f32 %v3768_v16, %v3692_v35 }
0x2093   :  { %3777 = vrot.lane.b32.xlu2 %v3773_v24, %s5165_s6 }
0x20e6   :  { %v3734_v53 = vpop.permute.xlu0 %3733 }
0x20e7   :  { %v6404_v36 = vadd.f32 %v3734_v53, %v3715_v45 }
0x20e9   :  { %4853 = vtanh.f32 %v6404_v36 }
0x20ed   :  { %v3778_v31 = vpop.permute.xlu2 %3777 }
0x20ee   :  { %v3780_v51 = vpop.permute.xlu0 %3779  ;;  %v6409_v39 = vadd.f32 %v3778_v31, %v3759_v26 }
0x20ef   :  { %v4854_v56 = vpop.eup %4853  ;;  %v6411_v60 = vadd.f32 %v3780_v51, %v3760_v47 }
0x20f0   :  { %4855 = vtanh.f32 %v6409_v39  ;;  %3745 = vrot.lane.b32.xlu1 %v4854_v56, %s5164_s3 }
0x20f1   :  { %4857 = vtanh.f32 %v6411_v60 }
0x20f6   :  { %v4856_v61 = vpop.eup %4855 }
0x20f7   :  { %v4858_v12 = vpop.eup %4857  ;;  %3789 = vrot.lane.b32.xlu0 %v4856_v61, %s5164_s3 }
0x20f8   :  { %3791 = vrot.lane.b32.xlu1 %v4858_v12, %s5164_s3 }
0x20ff   :  { %v3736_v28 = vpop.permute.xlu1 %3735 }
0x2100   :  { %v6420_v38 = vadd.f32 %v3736_v28, %v3716_v11 }
0x2102   :  { %4859 = vtanh.f32 %v6420_v38 }
0x2108   :  { %v4860_v9 = vpop.eup %4859 }
0x2109   :  { %3747 = vrot.lane.b32.xlu2 %v4860_v9, %s5164_s3 }
0x2162   :  { %v3746_v49 = vpop.permute.xlu1 %3745 }
0x2163   :  { %v3748_v62 = vpop.permute.xlu2 %3747  ;;  %v6425_v10 = vmul.f32 %v3746_v49, %v6386_v54 }
0x2164   :  { %v6428_v3 = vmul.f32 %v3748_v62, %v6388_v59 }
0x2165   :  { %v3817_v58 = vrot.slane %v6425_v10, 5 }
0x2166   :  { %v3818_v46 = vrot.slane %v6428_v3, 4 }
0x2168   :  { %v3819_v4 = vsel %vm476_vm2, %v3818_v46, %v3817_v58 }
0x2169   :  { %3820 = vrot.lane.b32.xlu2 %v3819_v4, %s5165_s6  ;;  %v3790_v57 = vpop.permute.xlu0 %3789 }
0x216a   :  { %v3792_v30 = vpop.permute.xlu1 %3791  ;;  %v6434_v40 = vmul.f32 %v3790_v57, %v3692_v35 }
0x216b   :  { %v6436_v21 = vmul.f32 %v3792_v30, %v3707_v0 }
0x216c   :  { %v3851_v54 = vrot.slane %v6434_v40, 2 }
0x216d   :  { %v3852_v19 = vrot.slane %v6436_v21, 1 }
0x216f   :  { %v3853_v59 = vsel %vm476_vm2, %v3852_v19, %v3851_v54 }
0x2170   :  { %3854 = vrot.lane.b32.xlu0 %v3853_v59, %s5165_s6 }
0x21c3   :  { %v3821_v22 = vpop.permute.xlu2 %3820 }
0x21c4   :  { %4487 = vmatmul.msk.f32.vlgmr.msrb.gmra.mxu2 %vm244_vm3, %v3821_v22 }
0x21e2   :  { %v3855_v63 = vpop.permute.xlu0 %3854 }
0x21e3   :  { %4488 = vmatmul.msk.f32.vlgmr.msrb.gmra.mxu3 %vm244_vm3, %v3855_v63 }
0x2247   :  { %v3841_v16 = vpop.f32.mrf.mxu2 }
0x2248   :  { %v3845_v24 = vrot.slane %v3841_v16, 2  ;;  %v3846_v35 = vrot.slane %v3841_v16, 3 }
0x224a   :  { %v3849_v0 = vadd.f32 %v3845_v24, %v6043_v13  ;;  %v3850_v52 = vadd.f32 %v3846_v35, %v6047_v34 }
0x224c   :  { %v4489_v45 = vmul.f32 -1.442695, %v3849_v0  ;;  %v4490_v53 = vmul.f32 -1.442695, %v3850_v52 }
0x224e   :  { %4861 = vpow2.f32 %v4489_v45 }
0x224f   :  { %4863 = vpow2.f32 %v4490_v53 }
0x2254   :  { %v4862_v42 = vpop.eup %4861 }
0x2255   :  { %v4864_v6 = vpop.eup %4863  ;;  %v3890_v26 = vadd.f32 1.0, %v4862_v42 }
0x2256   :  { %v3891_v47 = vadd.f32 1.0, %v4864_v6 }
0x2257   :  { %4865 = vrcp.f32 %v3890_v26  ;;  %v3901_v11 = vand.u32 2147483647, %v3890_v26  ;;  %v3903_v28 = vand.u32 2147483648, %v3890_v26  ;;  %vm3897_vm6 = vweird.f32 %v3890_v26 }
0x2258   :  { %4867 = vrcp.f32 %v3891_v47  ;;  %v3916_v49 = vand.u32 2147483647, %v3891_v47  ;;  %v3918_v62 = vand.u32 2147483648, %v3891_v47  ;;  %vm3912_vm9 = vweird.f32 %v3891_v47 }
0x2259   :  { %v3904_v57 = vor.u32 1.1754944e-38, %v3903_v28  ;;  %vm3902_vm0 = vcmp.eq.f32.partialorder %v3901_v11, 8.507059e+37 }
0x225a   :  { %vm3917_vm15 = vcmp.eq.f32.partialorder %v3916_v49, 8.507059e+37  ;;  %v3919_v54 = vor.u32 1.1754944e-38, %v3918_v62 }
0x225d   :  { %v4866_v31 = vpop.eup %4865 }
0x225e   :  { %v4868_v51 = vpop.eup %4867  ;;  %v3893_v56 = vmul.f32 %v4866_v31, %v3890_v26  ;;  %vm3898_vm5 = vweird.f32 %v4866_v31 }
0x225f   :  { %v3908_v61 = vmul.f32 %v4868_v51, %v3891_v47  ;;  %vm3913_vm11 = vweird.f32 %v4868_v51  ;;  %vm3899_vm10 = vmor %vm3897_vm6, %vm3898_vm5 }
0x2260   :  { %v3894_v12 = vsub.f32 1.0, %v3893_v56  ;;  %vm3914_vm12 = vmor %vm3912_vm9, %vm3913_vm11 }
0x2261   :  { %v3909_v20 = vsub.f32 1.0, %v3908_v61 }
0x2262   :  { %v3895_v9 = vmul.f32 %v4866_v31, %v3894_v12 }
0x2263   :  { %v3910_v58 = vmul.f32 %v4868_v51, %v3909_v20 }
0x2264   :  { %v3896_v46 = vadd.f32 %v4866_v31, %v3895_v9 }
0x2265   :  { %v3911_v4 = vadd.f32 %v4868_v51, %v3910_v58 }
0x2266   :  { %v3875_v30 = vpop.f32.mrf.mxu3  ;;  %v3900_v19 = vsel %vm3899_vm10, %v4866_v31, %v3896_v46 }
0x2267   :  { %v3879_v59 = vrot.slane %v3875_v30, 7  ;;  %v3883_v22 = vadd.f32 %v3875_v30, %v6049_v55  ;;  %v3915_v63 = vsel %vm3914_vm12, %v4868_v51, %v3911_v4  ;;  %v6447_v16 = vsel %vm3902_vm0, %v3904_v57, %v3900_v19 }
0x2268   :  { %v6449_v24 = vsel %vm3917_vm15, %v3919_v54, %v3915_v63  ;;  %v3968_v35 = vmul.f32 2.0, %v6447_v16 }
0x2269   :  { %v3882_v0 = vadd.f32 %v3879_v59, %v6041_v43  ;;  %v4492_v52 = vmul.f32 -1.442695, %v3883_v22  ;;  %v3969_v45 = vmul.f32 2.0, %v6449_v24 }
0x226a   :  { %v4493_v53 = vadd.f32 -1.0, %v3968_v35 }
0x226b   :  { %v4491_v42 = vmul.f32 -1.442695, %v3882_v0  ;;  %4869 = vpow2.f32 %v4492_v52  ;;  %v4494_v6 = vadd.f32 -1.0, %v3969_v45 }
0x226c   :  { %3974 = vrot.lane.b32.xlu1 %v4493_v53, %s5164_s3 }
0x226d   :  { %4871 = vpow2.f32 %v4491_v42  ;;  %3976 = vrot.lane.b32.xlu2 %v4494_v6, %s5164_s3 }
0x2271   :  { %v4870_v26 = vpop.eup %4869 }
0x2272   :  { %v3929_v47 = vadd.f32 1.0, %v4870_v26 }
0x2273   :  { %v4872_v31 = vpop.eup %4871 }
0x2274   :  { %v3928_v51 = vadd.f32 1.0, %v4872_v31  ;;  %4873 = vrcp.f32 %v3929_v47  ;;  %v3956_v28 = vand.u32 2147483648, %v3929_v47  ;;  %v3954_v62 = vand.u32 2147483647, %v3929_v47 }
0x2275   :  { %vm3950_vm13 = vweird.f32 %v3929_v47 }
0x2276   :  { %4875 = vrcp.f32 %v3928_v51  ;;  %v3941_v58 = vand.u32 2147483648, %v3928_v51  ;;  %v3939_v57 = vand.u32 2147483647, %v3928_v51  ;;  %v3957_v30 = vor.u32 1.1754944e-38, %v3956_v28 }
0x2277   :  { %vm3955_vm5 = vcmp.eq.f32.partialorder %v3954_v62, 8.507059e+37  ;;  %vm3935_vm11 = vweird.f32 %v3928_v51 }
0x2278   :  { %v3942_v22 = vor.u32 1.1754944e-38, %v3941_v58  ;;  %vm3940_vm9 = vcmp.eq.f32.partialorder %v3939_v57, 8.507059e+37 }
0x227a   :  { %v4874_v56 = vpop.eup %4873 }
0x227b   :  { %v3946_v61 = vmul.f32 %v4874_v56, %v3929_v47  ;;  %vm3951_vm1 = vweird.f32 %v4874_v56 }
0x227c   :  { %v4876_v12 = vpop.eup %4875  ;;  %vm3952_vm8 = vmor %vm3950_vm13, %vm3951_vm1 }
0x227d   :  { %v3931_v20 = vmul.f32 %v4876_v12, %v3928_v51  ;;  %v3947_v11 = vsub.f32 1.0, %v3946_v61  ;;  %vm3936_vm14 = vweird.f32 %v4876_v12 }
0x227e   :  { %vm3937_vm6 = vmor %vm3935_vm11, %vm3936_vm14 }
0x227f   :  { %v3932_v9 = vsub.f32 1.0, %v3931_v20  ;;  %v3948_v49 = vmul.f32 %v4874_v56, %v3947_v11  ;;  %v3963_v20 = vrot.slane %v6420_v38, 7 }
0x2281   :  { %v3933_v46 = vmul.f32 %v4876_v12, %v3932_v9  ;;  %v3949_v4 = vadd.f32 %v4874_v56, %v3948_v49  ;;  %v3967_v9 = vmul.f32 %v3963_v20, %v6449_v24 }
0x2283   :  { %v3953_v54 = vsel %vm3952_vm8, %v4874_v56, %v3949_v4  ;;  %v3934_v19 = vadd.f32 %v4876_v12, %v3933_v46 }
0x2284   :  { %v6456_v59 = vsel %vm3955_vm5, %v3957_v30, %v3953_v54 }
0x2285   :  { %v4013_v63 = vmul.f32 2.0, %v6456_v59  ;;  %v3938_v35 = vsel %vm3937_vm6, %v4876_v12, %v3934_v19  ;;  %v3962_v12 = vrot.slane %v6404_v36, 7  ;;  %v4007_v36 = vrot.slane %v6411_v60, 1 }
0x2286   :  { %v3943_v0 = vsel %vm3940_vm9, %v3942_v22, %v3938_v35  ;;  %v4006_v19 = vrot.slane %v6409_v39, 1 }
0x2287   :  { %v4496_v52 = vadd.f32 -1.0, %v4013_v63  ;;  %v4012_v45 = vmul.f32 2.0, %v3943_v0  ;;  %v3966_v11 = vmul.f32 %v3962_v12, %v6447_v16  ;;  %v4011_v38 = vmul.f32 %v4007_v36, %v6456_v59 }
0x2288   :  { %v4010_v22 = vmul.f32 %v4006_v19, %v3943_v0 }
0x2289   :  { %4020 = vrot.lane.b32.xlu1 %v4496_v52, %s5164_s3  ;;  %v4495_v53 = vadd.f32 -1.0, %v4012_v45 }
0x228b   :  { %4018 = vrot.lane.b32.xlu0 %v4495_v53, %s5164_s3 }
0x22c7   :  { %v3977_v42 = vpop.permute.xlu2 %3976 }
0x22c8   :  { %v3981_v6 = vmul.f32 %v3977_v42, %v6449_v24 }
0x22ca   :  { %3986 = vrot.lane.b32.xlu0 %v3981_v6, %s5165_s6 }
0x22de   :  { %v3975_v26 = vpop.permute.xlu1 %3974 }
0x22df   :  { %v3980_v47 = vmul.f32 %v3975_v26, %v6447_v16 }
0x22e1   :  { %3984 = vrot.lane.b32.xlu2 %v3980_v47, %s5165_s6 }
0x22fb   :  { %v4021_v31 = vpop.permute.xlu1 %4020 }
0x22fc   :  { %v4025_v51 = vmul.f32 %v4021_v31, %v6456_v59 }
0x22fd   :  { %v4019_v56 = vpop.permute.xlu0 %4018 }
0x22fe   :  { %v4024_v61 = vmul.f32 %v4019_v56, %v3943_v0  ;;  %4030 = vrot.lane.b32.xlu2 %v4025_v51, %s5165_s6 }
0x2300   :  { %4028 = vrot.lane.b32.xlu1 %v4024_v61, %s5165_s6 }
0x233b   :  { %v3985_v28 = vpop.permute.xlu2 %3984 }
0x233c   :  { %v6472_v49 = vadd.f32 %v3985_v28, %v3966_v11  ;;  %v3987_v62 = vpop.permute.xlu0 %3986 }
0x233d   :  { %v6474_v58 = vadd.f32 %v3987_v62, %v3967_v9 }
0x233e   :  { %4877 = vtanh.f32 %v6472_v49 }
0x233f   :  { %4879 = vtanh.f32 %v6474_v58 }
0x2344   :  { %v4878_v46 = vpop.eup %4877 }
0x2345   :  { %v4880_v4 = vpop.eup %4879  ;;  %3996 = vrot.lane.b32.xlu0 %v4878_v46, %s5164_s3 }
0x2346   :  { %3998 = vrot.lane.b32.xlu1 %v4880_v4, %s5164_s3 }
0x2358   :  { %v4031_v57 = vpop.permute.xlu2 %4030 }
0x2359   :  { %v6482_v30 = vadd.f32 %v4031_v57, %v4011_v38 }
0x235b   :  { %4881 = vtanh.f32 %v6482_v30 }
0x2361   :  { %v4882_v54 = vpop.eup %4881 }
0x2362   :  { %4042 = vrot.lane.b32.xlu0 %v4882_v54, %s5164_s3 }
0x2372   :  { %v4029_v63 = vpop.permute.xlu1 %4028 }
0x2373   :  { %v6487_v35 = vadd.f32 %v4029_v63, %v4010_v22 }
0x2375   :  { %4883 = vtanh.f32 %v6487_v35 }
0x237b   :  { %v4884_v52 = vpop.eup %4883 }
0x237c   :  { %4040 = vrot.lane.b32.xlu2 %v4884_v52, %s5164_s3 }
0x23b7   :  { %v3997_v60 = vpop.permute.xlu0 %3996 }
0x23b8   :  { %v3999_v45 = vpop.permute.xlu1 %3998  ;;  %v6492_v53 = vmul.f32 %v3997_v60, %v6447_v16 }
0x23b9   :  { %v6495_v42 = vmul.f32 %v3999_v45, %v6449_v24 }
0x23ba   :  { %v4068_v6 = vrot.slane %v6492_v53, 6 }
0x23bb   :  { %v4069_v39 = vrot.slane %v6495_v42, 5 }
0x23bd   :  { %v4070_v26 = vsel %vm476_vm2, %v4069_v39, %v4068_v6 }
0x23be   :  { %4071 = vrot.lane.b32.xlu1 %v4070_v26, %s5165_s6 }
0x23d4   :  { %v4043_v47 = vpop.permute.xlu0 %4042 }
0x23d5   :  { %v6504_v56 = vmul.f32 %v4043_v47, %v6456_v59 }
0x23d6   :  { %v4041_v31 = vpop.permute.xlu2 %4040 }
0x23d7   :  { %v6501_v51 = vmul.f32 %v4041_v31, %v3943_v0 }
0x23d9   :  { %v4102_v16 = vrot.slane %v6501_v51, 1 }
0x23db   :  { %v4103_v24 = vsel %vm476_vm2, %v6504_v56, %v4102_v16 }
0x23dc   :  { %4104 = vrot.lane.b32.xlu2 %v4103_v24, %s5165_s6 }
0x2430   :  { %v4072_v61 = vpop.permute.xlu1 %4071 }
0x2431   :  { %4497 = vmatmul.msk.f32.vlgmr.msrb.gmra.mxu0 %vm244_vm3, %v4072_v61 }
0x2436   :  { %v4105_v12 = vpop.permute.xlu2 %4104 }
0x2437   :  { %4498 = vmatmul.msk.f32.vlgmr.msrb.gmra.mxu1 %vm244_vm3, %v4105_v12 }
0x24ae   :  { %v4092_v20 = vpop.f32.mrf.mxu0 }
0x24af   :  { %v4096_v11 = vrot.slane %v4092_v20, 1  ;;  %v4097_v0 = vrot.slane %v4092_v20, 2 }
0x24b1   :  { %v4100_v28 = vadd.f32 %v4096_v11, %v6043_v13  ;;  %v4101_v59 = vadd.f32 %v4097_v0, %v6047_v34 }
0x24b3   :  { %v4499_v9 = vmul.f32 -1.442695, %v4100_v28  ;;  %v4500_v62 = vmul.f32 -1.442695, %v4101_v59 }
0x24b4   :  { %v4125_v46 = vpop.f32.mrf.mxu1 }
0x24b5   :  { %4885 = vpow2.f32 %v4499_v9  ;;  %v4129_v4 = vrot.slane %v4125_v46, 1  ;;  %v4132_v36 = vadd.f32 %v4125_v46, %v6041_v43 }
0x24b6   :  { %4887 = vpow2.f32 %v4500_v62 }
0x24b7   :  { %v4133_v38 = vadd.f32 %v4129_v4, %v6049_v55  ;;  %v4501_v57 = vmul.f32 -1.442695, %v4132_v36 }
0x24b9   :  { %4889 = vpow2.f32 %v4501_v57  ;;  %v4502_v54 = vmul.f32 -1.442695, %v4133_v38 }
0x24bb   :  { %v4886_v19 = vpop.eup %4885  ;;  %4891 = vpow2.f32 %v4502_v54 }
0x24bc   :  { %v4888_v22 = vpop.eup %4887  ;;  %v4140_v63 = vadd.f32 1.0, %v4886_v19 }
0x24bd   :  { %v4141_v13 = vadd.f32 1.0, %v4888_v22 }
0x24be   :  { %4893 = vrcp.f32 %v4140_v63  ;;  %v4151_v55 = vand.u32 2147483647, %v4140_v63  ;;  %v4153_v26 = vand.u32 2147483648, %v4140_v63  ;;  %vm4147_vm3 = vweird.f32 %v4140_v63 }
0x24bf   :  { %v4890_v34 = vpop.eup %4889  ;;  %4895 = vrcp.f32 %v4141_v13  ;;  %v4166_v31 = vand.u32 2147483647, %v4141_v13  ;;  %v4168_v16 = vand.u32 2147483648, %v4141_v13  ;;  %vm4162_vm2 = vweird.f32 %v4141_v13 }
0x24c0   :  { %v4178_v52 = vadd.f32 1.0, %v4890_v34  ;;  %vm6519_vm10 = vcmp.eq.f32.partialorder %v4151_v55, 8.507059e+37  ;;  %v4154_v28 = vor.u32 1.1754944e-38, %v4153_v26 }
0x24c1   :  { %v4892_v60 = vpop.eup %4891  ;;  %vm6523_vm0 = vcmp.eq.f32.partialorder %v4166_v31, 8.507059e+37  ;;  %v4169_v46 = vor.u32 1.1754944e-38, %v4168_v16 }
0x24c2   :  { %v6516_v45 = vadd.f32 1.0, %v4892_v60  ;;  %4897 = vrcp.f32 %v4178_v52  ;;  %vm4185_vm1 = vweird.f32 %v4178_v52  ;;  %v4191_v57 = vand.u32 2147483648, %v4178_v52 }
0x24c3   :  { %v4189_v19 = vand.u32 2147483647, %v4178_v52 }
0x24c4   :  { %v4894_v43 = vpop.eup %4893  ;;  %4899 = vrcp.f32 %v6516_v45  ;;  %v4204_v22 = vand.u32 2147483647, %v6516_v45  ;;  %vm4200_vm6 = vweird.f32 %v6516_v45 }
0x24c5   :  { %v4896_v6 = vpop.eup %4895  ;;  %v4143_v39 = vmul.f32 %v4894_v43, %v4140_v63  ;;  %vm4148_vm12 = vweird.f32 %v4894_v43  ;;  %vm4190_vm9 = vcmp.eq.f32.partialorder %v4189_v19, 8.507059e+37 }
0x24c6   :  { %v4158_v47 = vmul.f32 %v4896_v6, %v4141_v13  ;;  %vm4163_vm15 = vweird.f32 %v4896_v6  ;;  %vm4149_vm13 = vmor %vm4147_vm3, %vm4148_vm12  ;;  %v4192_v13 = vor.u32 1.1754944e-38, %v4191_v57  ;;  %vm4205_vm3 = vcmp.eq.f32.partialorder %v4204_v22, 8.507059e+37 }
0x24c7   :  { %v4144_v24 = vsub.f32 1.0, %v4143_v39  ;;  %vm4164_vm14 = vmor %vm4162_vm2, %vm4163_vm15  ;;  %vm6714_vm15 = vcmask 521477  }
0x24c8   :  { %v4898_v61 = vpop.eup %4897  ;;  %v4159_v12 = vsub.f32 1.0, %v4158_v47  ;;  %v4206_v47 = vand.u32 2147483648, %v6516_v45 }
0x24c9   :  { %v4145_v11 = vmul.f32 %v4894_v43, %v4144_v24  ;;  %v4181_v0 = vmul.f32 %v4898_v61, %v4178_v52  ;;  %vm4186_vm8 = vweird.f32 %v4898_v61 }
0x24ca   :  { %v4900_v59 = vpop.eup %4899  ;;  %v4160_v9 = vmul.f32 %v4896_v6, %v4159_v12  ;;  %vm4187_vm11 = vmor %vm4185_vm1, %vm4186_vm8  ;;  %vm6716_vm1 = vcmask 257027  }
0x24cb   :  { %v4182_v4 = vsub.f32 1.0, %v4181_v0  ;;  %v4196_v36 = vmul.f32 %v4900_v59, %v6516_v45  ;;  %v4146_v38 = vadd.f32 %v4894_v43, %v4145_v11  ;;  %vm4201_vm5 = vweird.f32 %v4900_v59  ;;  %vm6720_vm8 = vmmov %vm6716_vm1 }
0x24cc   :  { %v4161_v54 = vadd.f32 %v4896_v6, %v4160_v9  ;;  %vm4202_vm2 = vmor %vm4200_vm6, %vm4201_vm5  ;;  %vm6721_vm5 = vcmask 520452   ;;  %vm6723_vm6 = vcmask 519427  }
0x24cd   :  { %v4183_v34 = vmul.f32 %v4898_v61, %v4182_v4  ;;  %v4197_v60 = vsub.f32 1.0, %v4196_v36  ;;  %v4150_v55 = vsel %vm4149_vm13, %v4894_v43, %v4146_v38 }
0x24ce   :  { %v4165_v39 = vsel %vm4164_vm14, %v4896_v6, %v4161_v54  ;;  %v6533_v26 = vsel %vm6519_vm10, %v4154_v28, %v4150_v55  ;;  %v4207_v28 = vor.u32 1.1754944e-38, %v4206_v47  ;;  %vm6711_vm10 = vcmask 254977   ;;  %vm6719_vm14 = vmmov %vm6714_vm15 }
0x24cf   :  { %v4198_v31 = vmul.f32 %v4900_v59, %v4197_v60  ;;  %v6538_v63 = vsel %vm6523_vm0, %v4169_v46, %v4165_v39  ;;  %v4218_v16 = vmul.f32 2.0, %v6533_v26  ;;  %v4184_v24 = vadd.f32 %v4898_v61, %v4183_v34  ;;  %vm6717_vm13 = vmmov %vm6711_vm10 }
0x24d0   :  { %v4219_v43 = vmul.f32 2.0, %v6538_v63  ;;  %v4257_v39 = vrot.slane %v6482_v30, 1  ;;  %vm6715_vm0 = vcmask 256002  }
0x24d1   :  { %v4503_v6 = vadd.f32 -1.0, %v4218_v16  ;;  %v4188_v12 = vsel %vm4187_vm11, %v4898_v61, %v4184_v24  ;;  %v4199_v20 = vadd.f32 %v4900_v59, %v4198_v31  ;;  %vm6722_vm11 = vmmov %vm6721_vm5 }
0x24d2   :  { %v4504_v11 = vadd.f32 -1.0, %v4219_v43  ;;  %v6544_v0 = vsel %vm4190_vm9, %v4192_v13, %v4188_v12  ;;  %vm6724_vm9 = vcmask 258052  }
0x24d3   :  { %4224 = vrot.lane.b32.xlu0 %v4503_v6, %s5164_s3  ;;  %v4262_v9 = vmul.f32 2.0, %v6544_v0  ;;  %v4203_v62 = vsel %vm4202_vm2, %v4900_v59, %v4199_v20  ;;  %vm6725_vm2 = vmmov %vm6723_vm6 }
0x24d4   :  { %4226 = vrot.lane.b32.xlu1 %v4504_v11, %s5164_s3  ;;  %v6550_v52 = vsel %vm4205_vm3, %v4207_v28, %v4203_v62  ;;  %vm6726_vm3 = vmmov %vm6724_vm9 }
0x24d5   :  { %v4505_v45 = vadd.f32 -1.0, %v4262_v9  ;;  %v4263_v61 = vmul.f32 2.0, %v6550_v52 }
0x24d7   :  { %4268 = vrot.lane.b32.xlu2 %v4505_v45, %s5164_s3  ;;  %v4506_v46 = vadd.f32 -1.0, %v4263_v61 }
0x24db   :  { %4270 = vrot.lane.b32.xlu0 %v4506_v46, %s5164_s3 }
0x2531   :  { %v4269_v4 = vpop.permute.xlu2 %4268 }
0x2532   :  { %v4274_v36 = vmul.f32 %v4269_v4, %v6544_v0 }
0x2534   :  { %4278 = vrot.lane.b32.xlu0 %v4274_v36, %s5165_s6 }
0x253c   :  { %2544 = vrot.lane.b32.xlu0 %v6100_v50, %s5165_s6  ;;  %v4256_v50 = vrot.slane %v6487_v35, 1 }
0x2544   :  { %2792 = vrot.lane.b32.xlu0 %v6171_v14, %s5165_s6 }
0x2545   :  { %v4225_v59 = vpop.permute.xlu0 %4224 }
0x2546   :  { %v4227_v38 = vpop.permute.xlu1 %4226  ;;  %v4230_v57 = vmul.f32 %v4225_v59, %v6533_v26 }
0x2547   :  { %v4231_v54 = vmul.f32 %v4227_v38, %v6538_v63 }
0x2548   :  { %4234 = vrot.lane.b32.xlu1 %v4230_v57, %s5165_s6 }
0x2549   :  { %4236 = vrot.lane.b32.xlu2 %v4231_v54, %s5165_s6 }
0x254c   :  { %2804 = vrot.lane.b32.xlu0 %v6165_v23, %s5164_s3  ;;  %v4260_v23 = vmul.f32 %v4256_v50, %v6544_v0 }
0x254d   :  { %v4271_v19 = vpop.permute.xlu0 %4270 }
0x254e   :  { %v4275_v22 = vmul.f32 %v4271_v19, %v6550_v52 }
0x2550   :  { %4280 = vrot.lane.b32.xlu1 %v4275_v22, %s5165_s6 }
0x2551   :  { %2542 = vrot.lane.b32.xlu2 %v6104_v29, %s5165_s6 }
0x2554   :  { %3045 = vrot.lane.b32.xlu0 %v6229_v15, %s5165_s6 }
0x2558   :  { %2552 = vrot.lane.b32.xlu1 %v6093_v27, %s5164_s3  ;;  %v4213_v27 = vrot.slane %v6474_v58, 7  ;;  %v4212_v58 = vrot.slane %v6472_v49, 7 }
0x2559   :  { %2554 = vrot.lane.b32.xlu2 %v6095_v48, %s5164_s3 }
0x255a   :  { %v4217_v48 = vmul.f32 %v4213_v27, %v6538_v63  ;;  %v4216_v35 = vmul.f32 %v4212_v58, %v6533_v26 }
0x255c   :  { %3295 = vrot.lane.b32.xlu0 %v6301_v37, %s5165_s6 }
0x2560   :  { %2794 = vrot.lane.b32.xlu1 %v6174_v33, %s5165_s6 }
0x2561   :  { %2802 = vrot.lane.b32.xlu2 %v6162_v32, %s5164_s3 }
0x2568   :  { %3043 = vrot.lane.b32.xlu1 %v6227_v5, %s5165_s6 }
0x2569   :  { %3055 = vrot.lane.b32.xlu2 %v6238_v17, %s5164_s3 }
0x2570   :  { %3053 = vrot.lane.b32.xlu1 %v6235_v41, %s5164_s3 }
0x2578   :  { %3297 = vrot.lane.b32.xlu1 %v6304_v44, %s5165_s6 }
0x25a3   :  { %v4237_v29 = vpop.permute.xlu2 %4236 }
0x25a4   :  { %v4241_v32 = vadd.f32 %v4237_v29, %v4217_v48 }
0x25a6   :  { %4901 = vtanh.f32 %v4241_v32  ;;  %v4279_v14 = vpop.permute.xlu0 %4278 }
0x25a7   :  { %v4284_v33 = vadd.f32 %v4279_v14, %v4260_v23 }
0x25a9   :  { %4903 = vtanh.f32 %v4284_v33 }
0x25ab   :  { %v2543_v5 = vpop.permute.xlu2 %2542 }
0x25ac   :  { %v4902_v15 = vpop.eup %4901  ;;  %2548 = vst.msk [vmem:[#allocation18] sm:$0x1] %vm461_vm4, %v2543_v5 }
0x25ad   :  { %4248 = vrot.lane.b32.xlu0 %v4902_v15, %s5164_s3 }
0x25ae   :  { %v2545_v41 = vpop.permute.xlu0 %2544 }
0x25af   :  { %v4904_v17 = vpop.eup %4903  ;;  %2549 = vst.msk [vmem:[#allocation18 + $0x8] sm:$0x1] %vm461_vm4, %v2545_v41  ;;  %vm6712_vm4 = vcmask 522502  }
0x25b0   :  { %4290 = vrot.lane.b32.xlu1 %v4904_v17, %s5164_s3  ;;  %vm6713_vm12 = vmmov %vm6712_vm4 }
0x25b3   :  { %v2555_v37 = vpop.permute.xlu2 %2554 }
0x25b4   :  { %2559 = vst.msk [vmem:[#allocation18 + $0x8] sm:$0x80] %vm472_vm7, %v2555_v37 }
0x25b5   :  { %3307 = vrot.lane.b32.xlu0 %v6312_v25, %s5164_s3 }
0x25b6   :  { %v2793_v44 = vpop.permute.xlu0 %2792 }
0x25b7   :  { %2798 = vst.msk [vmem:[#allocation18] sm:$0x2] %vm6711_vm10, %v2793_v44  ;;  %vm6727_vm10 = vcmask 259077  }
0x25b8   :  { %3547 = vrot.lane.b32.xlu1 %v6363_v18, %s5165_s6  ;;  %v4261_v18 = vmul.f32 %v4257_v39, %v6550_v52 }
0x25ba   :  { %v4235_v34 = vpop.permute.xlu1 %4234 }
0x25bb   :  { %v4240_v60 = vadd.f32 %v4235_v34, %v4216_v35  ;;  %v2803_v55 = vpop.permute.xlu2 %2802 }
0x25bc   :  { %2808 = vst.msk [vmem:[#allocation18] sm:$0x40] %vm6712_vm4, %v2803_v55  ;;  %vm6728_vm4 = vcmask 518402  }
0x25bd   :  { %4905 = vtanh.f32 %v4240_v60  ;;  %3557 = vrot.lane.b32.xlu0 %v6372_v7, %s5164_s3 }
0x25be   :  { %v2805_v25 = vpop.permute.xlu0 %2804 }
0x25bf   :  { %2809 = vst.msk [vmem:[#allocation18 + $0x8] sm:$0x40] %vm6713_vm12, %v2805_v25  ;;  %vm6729_vm12 = vmmov %vm6727_vm10 }
0x25c0   :  { %3559 = vrot.lane.b32.xlu1 %v6374_v8, %s5164_s3 }
0x25c2   :  { %v4281_v49 = vpop.permute.xlu1 %4280 }
0x25c3   :  { %v4906_v47 = vpop.eup %4905  ;;  %v3056_v31 = vpop.permute.xlu2 %3055  ;;  %v4285_v16 = vadd.f32 %v4281_v49, %v4261_v18 }
0x25c4   :  { %3060 = vst.msk [vmem:[#allocation18 + $0x8] sm:$0x20] %vm6714_vm15, %v3056_v31  ;;  %4246 = vrot.lane.b32.xlu2 %v4906_v47, %s5164_s3  ;;  %vm6730_vm15 = vcmask 260102  }
0x25c5   :  { %4907 = vtanh.f32 %v4285_v16  ;;  %3801 = vrot.lane.b32.xlu0 %v6428_v3, %s5165_s6 }
0x25c6   :  { %v3046_v7 = vpop.permute.xlu0 %3045 }
0x25c7   :  { %3050 = vst.msk [vmem:[#allocation18 + $0x8] sm:$0x4] %vm6715_vm0, %v3046_v7 }
0x25c8   :  { %3809 = vrot.lane.b32.xlu1 %v6434_v40, %s5164_s3 }
0x25ca   :  { %v2553_v8 = vpop.permute.xlu1 %2552 }
0x25cb   :  { %v4908_v30 = vpop.eup %4907  ;;  %2558 = vst.msk [vmem:[#allocation18] sm:$0x80] %vm472_vm7, %v2553_v8  ;;  %vm6718_vm7 = vmmov %vm6715_vm0 }
0x25cc   :  { %4292 = vrot.lane.b32.xlu2 %v4908_v30, %s5164_s3  ;;  %vm6731_vm0 = vmmov %vm6730_vm15 }
0x25cd   :  { %4050 = vrot.lane.b32.xlu0 %v6492_v53, %s5165_s6 }
0x25ce   :  { %v3296_v24 = vpop.permute.xlu0 %3295 }
0x25cf   :  { %3301 = vst.msk [vmem:[#allocation18] sm:$0x8] %vm6716_vm1, %v3296_v24  ;;  %vm6732_vm1 = vmmov %vm6728_vm4 }
0x25d0   :  { %4052 = vrot.lane.b32.xlu1 %v6495_v42, %s5165_s6 }
0x25d2   :  { %v2795_v3 = vpop.permute.xlu1 %2794 }
0x25d3   :  { %2799 = vst.msk [vmem:[#allocation18 + $0x8] sm:$0x2] %vm6717_vm13, %v2795_v3  ;;  %vm6733_vm13 = vcmask 517377  }
0x25d4   :  { %3305 = vrot.lane.b32.xlu2 %v6310_v1, %s5164_s3 }
0x25d5   :  { %4062 = vrot.lane.b32.xlu0 %v6504_v56, %s5164_s3 }
0x25da   :  { %v3044_v40 = vpop.permute.xlu1 %3043 }
0x25db   :  { %3049 = vst.msk [vmem:[#allocation18] sm:$0x4] %vm6718_vm7, %v3044_v40  ;;  %vm6734_vm7 = vmmov %vm6733_vm13 }
0x25dc   :  { %3549 = vrot.lane.b32.xlu2 %v6366_v2, %s5165_s6 }
0x25e2   :  { %v3054_v53 = vpop.permute.xlu1 %3053 }
0x25e3   :  { %3059 = vst.msk [vmem:[#allocation18] sm:$0x20] %vm6719_vm14, %v3054_v53  ;;  %vm6735_vm14 = vcmask 261127  }
0x25e4   :  { %3799 = vrot.lane.b32.xlu2 %v6425_v10, %s5165_s6 }
0x25ea   :  { %v3298_v42 = vpop.permute.xlu1 %3297 }
0x25eb   :  { %3302 = vst.msk [vmem:[#allocation18 + $0x8] sm:$0x8] %vm6720_vm8, %v3298_v42  ;;  %vm6736_vm8 = vmmov %vm6735_vm14 }
0x25ec   :  { %3811 = vrot.lane.b32.xlu2 %v6436_v21, %s5164_s3 }
0x25f4   :  { %4060 = vrot.lane.b32.xlu2 %v6501_v51, %s5164_s3 }
0x261e   :  { %v4247_v1 = vpop.permute.xlu2 %4246 }
0x261f   :  { %v4252_v56 = vmul.f32 %v4247_v1, %v6533_v26  ;;  %v4249_v13 = vpop.permute.xlu0 %4248 }
0x2620   :  { %v4253_v2 = vmul.f32 %v4249_v13, %v6538_v63 }
0x2621   :  { %4300 = vrot.lane.b32.xlu1 %v4252_v56, %s5165_s6 }
0x2622   :  { %4302 = vrot.lane.b32.xlu2 %v4253_v2, %s5165_s6  ;;  %v4291_v10 = vpop.permute.xlu1 %4290 }
0x2623   :  { %v4296_v43 = vmul.f32 %v4291_v10, %v6544_v0 }
0x2625   :  { %4310 = vrot.lane.b32.xlu0 %v4296_v43, %s5164_s3 }
0x2626   :  { %v4293_v6 = vpop.permute.xlu2 %4292 }
0x2627   :  { %v3308_v21 = vpop.permute.xlu0 %3307  ;;  %v4297_v12 = vmul.f32 %v4293_v6, %v6550_v52 }
0x2628   :  { %3312 = vst.msk [vmem:[#allocation18 + $0x8] sm:$0x10] %vm6721_vm5, %v3308_v21  ;;  %vm6737_vm5 = vcmask 516352  }
0x2629   :  { %4312 = vrot.lane.b32.xlu1 %v4297_v12, %s5164_s3 }
0x262a   :  { %v3548_v51 = vpop.permute.xlu1 %3547 }
0x262e   :  { %v3306_v26 = vpop.permute.xlu2 %3305 }
0x262f   :  { %v3558_v63 = vpop.permute.xlu0 %3557  ;;  %3311 = vst.msk [vmem:[#allocation18] sm:$0x10] %vm6722_vm11, %v3306_v26  ;;  %vm6738_vm11 = vmmov %vm6737_vm5 }
0x2630   :  { %3563 = vst.msk [vmem:[#allocation18] sm:$0x8] %vm6723_vm6, %v3558_v63 }
0x2631   :  { %3553 = vst.msk [vmem:[#allocation18] sm:$0x10] %vm6724_vm9, %v3548_v51 }
0x2632   :  { %v3560_v20 = vpop.permute.xlu1 %3559 }
0x2633   :  { %3564 = vst.msk [vmem:[#allocation18 + $0x8] sm:$0x8] %vm6725_vm2, %v3560_v20 }
0x2636   :  { %v3550_v11 = vpop.permute.xlu2 %3549 }
0x2637   :  { %v3802_v0 = vpop.permute.xlu0 %3801  ;;  %3554 = vst.msk [vmem:[#allocation18 + $0x8] sm:$0x10] %vm6726_vm3, %v3550_v11 }
0x2638   :  { %3806 = vst.msk [vmem:[#allocation18 + $0x8] sm:$0x20] %vm6727_vm10, %v3802_v0 }
0x263a   :  { %v3810_v28 = vpop.permute.xlu1 %3809 }
0x263b   :  { %3815 = vst.msk [vmem:[#allocation18] sm:$0x4] %vm6728_vm4, %v3810_v28 }
0x263e   :  { %v3800_v9 = vpop.permute.xlu2 %3799 }
0x263f   :  { %v4051_v62 = vpop.permute.xlu0 %4050  ;;  %3805 = vst.msk [vmem:[#allocation18] sm:$0x20] %vm6729_vm12, %v3800_v9 }
0x2640   :  { %4056 = vst.msk [vmem:[#allocation18] sm:$0x40] %vm6730_vm15, %v4051_v62 }
0x2642   :  { %v4053_v52 = vpop.permute.xlu1 %4052 }
0x2643   :  { %4057 = vst.msk [vmem:[#allocation18 + $0x8] sm:$0x40] %vm6731_vm0, %v4053_v52 }
0x2646   :  { %v3812_v45 = vpop.permute.xlu2 %3811 }
0x2647   :  { %v4063_v61 = vpop.permute.xlu0 %4062  ;;  %3816 = vst.msk [vmem:[#allocation18 + $0x8] sm:$0x4] %vm6732_vm1, %v3812_v45 }
0x2648   :  { %4067 = vst.msk [vmem:[#allocation18 + $0x8] sm:$0x2] %vm6733_vm13, %v4063_v61 }
0x264e   :  { %v4061_v46 = vpop.permute.xlu2 %4060 }
0x264f   :  { %4066 = vst.msk [vmem:[#allocation18] sm:$0x2] %vm6734_vm7, %v4061_v46 }
0x267c   :  { %v4303_v4 = vpop.permute.xlu2 %4302 }
0x267d   :  { %4307 = vst.msk [vmem:[#allocation18 + $0x8] sm:$0x80] %vm6735_vm14, %v4303_v4 }
0x2693   :  { %v4301_v36 = vpop.permute.xlu1 %4300 }
0x2694   :  { %4306 = vst.msk [vmem:[#allocation18] sm:$0x80] %vm6736_vm8, %v4301_v36 }
0x2697   :  { %v4311_v59 = vpop.permute.xlu0 %4310 }
0x2698   :  { %4316 = vst.msk [vmem:[#allocation18] sm:$0x1] %vm6737_vm5, %v4311_v59 }
0x269b   :  { %v4313_v38 = vpop.permute.xlu1 %4312 }
0x269c   :  { %4317 = vst.msk [vmem:[#allocation18 + $0x8] sm:$0x1] %vm6738_vm11, %v4313_v38 }
0x269d   :  { %4330 = dma.vmem_to_hbm [thread:$0]  %s4323_s10, 256, %s4325_s0, [#allocation6], %s5154_s16, %s5154_s16, %s5155_s17  }
0x269e   :  { %5151 = dma.done.wait [#allocation6], 256  }
0x269f   :  { %5152 = vsyncadd [#allocation6], 4294967040 }
0x26a0   :  { %4335 = vsyncpa [#allocation5], 1 }
0x26a1   :  { %4336 = vsyncpa [#allocation8], 1 }
0x26a2   :  { %4337 = vsyncpa [#allocation11], 1 }
0x26a3   :  { %4338 = vsyncpa [#allocation14], 1 }
0x26a4   :  { %4339 = vsyncpa [#allocation17], 1 }
0x26a5   :  { %4340 = vsyncpa [#allocation6], 1 }

</bundles_post_ra>
